<compile_context>
chip_gen: v7x
topology: tpu7x:2x2x1
jax: 0.10.0
libtpu: 0.0.40
codegen_flags: <defaults>
</compile_context>

<pallas_src>
import functools

import jax
import jax.numpy as jnp
from jax.experimental import pallas as pl
from jax.experimental.pallas import tpu as pltpu

IC = 2048   # input channels  (fixed by the module)
OC = 1024   # output channels (fixed by the module, per branch)
BN_EPS = 1e-5


def _fused_linear_bn_kernel(x_ref, w_ref, shift_ref, o_ref):
    """One branch-tile of the fused (2-branch) Linear + folded BatchNorm1d."""
    tn = o_ref.shape[1]
    j = pl.program_id(0)
    # bf16 x bf16 MXU matmul, f32 accumulation.  scale is pre-folded into W.
    acc = jnp.dot(x_ref[...], w_ref[...], preferred_element_type=jnp.float32)
    shift = shift_ref[:, pl.ds(pl.multiple_of(j * tn, tn), tn)]     # [1, tn]
    o_ref[...] = (acc + shift).astype(o_ref.dtype)


@jax.jit
def fused_linear_bn(x, w_tiled, shift):
    """x: [B, IC], w_tiled: [T, IC, tn] bf16 (scale folded), shift: [1, T*tn] f32.

    Returns [B, T*tn] f32 = concat over branches of (x @ W_b^T)*scale_b + shift_b.
    """
    B, ic = x.shape
    n_tiles, ic_w, tn = w_tiled.shape
    n = n_tiles * tn
    assert ic_w == ic and shift.shape == (1, n)
    assert tn % 128 == 0 and B % 8 == 0

    x_bf = x.astype(jnp.bfloat16)   # cast once in the wrapper, not per grid step

    flops = 2 * B * ic * n
    bytes_accessed = (
        x_bf.size * 2                 # bf16 activations
        + w_tiled.size * 2            # bf16 weights (dominant stream)
        + shift.size * 4              # f32 shift
        + B * n * 4                   # f32 output
    )

    return pl.pallas_call(
        _fused_linear_bn_kernel,
        out_shape=jax.ShapeDtypeStruct((B, n), jnp.float32),
        grid_spec=pltpu.PrefetchScalarGridSpec(
            num_scalar_prefetch=0,
            grid=(n_tiles,),
            in_specs=[
                # activations: full row, grid-invariant -> DMA'd once, resident
                pl.BlockSpec((B, ic), lambda j: (0, 0)),
                # weights: one fully contiguous [IC, tn] bf16 tile per step
                pl.BlockSpec((None, ic, tn), lambda j: (j, 0, 0)),
                # folded-BN shift: grid-invariant, sliced per tile in-kernel
                pl.BlockSpec((1, n), lambda j: (0, 0)),
            ],
            out_specs=pl.BlockSpec((B, tn), lambda j: (0, j)),
        ),
        compiler_params=pltpu.CompilerParams(
            dimension_semantics=("parallel",),   # one tile per TC on v7x
        ),
        cost_estimate=pl.CostEstimate(
            flops=flops, transcendentals=0, bytes_accessed=bytes_accessed
        ),
    )(x_bf, w_tiled, shift)


def make_branch_params(key):
    """Synthetic params for Linear(IC->OC, no bias) + BatchNorm1d(OC)."""
    kw, kg, kb, km, kv = jax.random.split(key, 5)
    w = jax.random.normal(kw, (OC, IC), jnp.float32) * (2.0 / IC) ** 0.5  # kaiming-ish
    gamma = 1.0 + 0.02 * jax.random.normal(kg, (OC,), jnp.float32)
    beta = 0.01 * jax.random.normal(kb, (OC,), jnp.float32)
    running_mean = 0.1 * jax.random.normal(km, (OC,), jnp.float32)
    running_var = jax.random.uniform(kv, (OC,), jnp.float32, 0.5, 1.5)
    return w, gamma, beta, running_mean, running_var


def fold_branch(w, gamma, beta, mean, var):
    """Fold inference-mode BN into the weights (scale) and a shift vector."""
    scale = gamma / jnp.sqrt(var + BN_EPS)                  # [OC]
    shift = beta - mean * scale                             # [OC]
    # Fold scale into W in f32, transpose to [IC, OC], single cast to bf16.
    w_scaled_t = jnp.transpose(w * scale[:, None]).astype(jnp.bfloat16)
    return w_scaled_t, shift


def fuse_branch_params(p1, p2):
    """Pre-tile both branches for the kernel: [2, IC, OC] bf16 + [1, 2*OC] f32."""
    w1, s1 = fold_branch(*p1)
    w2, s2 = fold_branch(*p2)
    w_tiled = jnp.stack([w1, w2], axis=0)                       # [2, IC, OC] bf16
    shift = jnp.concatenate([s1, s2]).reshape(1, 2 * OC)        # [1, 2*OC]   f32
    return w_tiled, shift


def feature_decoupling_forward(features, fused_params):
    """Pallas equivalent of FeatureDecouplingNet.forward (inference-mode BN)."""
    # TODO(synk): training-mode BatchNorm1d (batch statistics + running-stat
    # updates) is not implemented; this is the folded inference form.
    out = fused_linear_bn(features, *fused_params)   # [B, 2*OC]
    shared_features = out[:, :OC]
    special_features = out[:, OC:]
    return shared_features, special_features


if __name__ == "__main__":
    key = jax.random.PRNGKey(0)
    kx, k1, k2 = jax.random.split(key, 3)

    B = 8  # small batch; channel dims (2048 -> 1024) are fixed by the module
    features = jax.random.normal(kx, (B, IC), jnp.float32)

    params1 = make_branch_params(k1)
    params2 = make_branch_params(k2)
    fused_params = fuse_branch_params(params1, params2)

    shared, special = feature_decoupling_forward(features, fused_params)
    jax.block_until_ready((shared, special))

    # Pure-JAX reference using the same folded bf16 weights (only the matmul
    # engine differs), so tolerance covers MXU-vs-XLA accumulation only.
    w_tiled, shift = fused_params
    def ref_branch(x, w_bf16_t, shift_row):
        xb = x.astype(jnp.bfloat16).astype(jnp.float32)
        wb = w_bf16_t.astype(jnp.float32)
        return xb @ wb + shift_row

    ref_shared = ref_branch(features, w_tiled[0], shift[0, :OC])
    ref_special = ref_branch(features, w_tiled[1], shift[0, OC:])

    assert shared.shape == (B, OC) and special.shape == (B, OC)
    assert jnp.allclose(shared, ref_shared, atol=1e-2, rtol=1e-2)
    assert jnp.allclose(special, ref_special, atol=1e-2, rtol=1e-2)

    print("KERNEL_OK")
</pallas_src>

<mosaic_0001>
module attributes {stable_mosaic.version = 11 : i64} {
  func.func @_fused_linear_bn_kernel(%arg0: i32, %arg1: memref<8x2048xbf16, #tpu.memory_space<vmem>>, %arg2: memref<1x2048x1024xbf16, #tpu.memory_space<vmem>>, %arg3: memref<1x2048xf32, #tpu.memory_space<vmem>>, %arg4: memref<8x1024xf32, #tpu.memory_space<vmem>>) attributes {dimension_semantics = [#tpu.dimension_semantics<parallel>], iteration_bounds = array<i64: 2>, scalar_prefetch = 0 : i64, scratch_operands = 0 : i64, tpu.core_type = #tpu.core_type<tc>, window_params = [{pipeline_mode = #tpu.pipeline_mode<synchronous>, transform_indices = @transform_0, window_bounds = array<i64: 8, 2048>}, {transform_indices = @transform_1, window_bounds = array<i64: 1, 2048, 1024>}, {pipeline_mode = #tpu.pipeline_mode<synchronous>, transform_indices = @transform_2, window_bounds = array<i64: 1, 2048>}, {transform_indices = @transform_3, window_bounds = array<i64: 8, 1024>}]} {
    %c0 = arith.constant 0 : index
    %c0_0 = arith.constant 0 : index
    %0 = vector.load %arg1[%c0, %c0_0] : memref<8x2048xbf16, #tpu.memory_space<vmem>>, vector<8x2048xbf16>
    %c0_1 = arith.constant 0 : index
    %c0_2 = arith.constant 0 : index
    %c0_3 = arith.constant 0 : index
    %1 = vector.load %arg2[%c0_1, %c0_2, %c0_3] : memref<1x2048x1024xbf16, #tpu.memory_space<vmem>>, vector<1x2048x1024xbf16>
    %2 = vector.shape_cast %1 : vector<1x2048x1024xbf16> to vector<2048x1024xbf16>
    %cst = arith.constant dense<0.000000e+00> : vector<8x1024xf32>
    %3 = tpu.matmul %0, %2, %cst {dimension_numbers = #tpu.dot_dimension_numbers<[1], [0], [0], [1], [0, 0, 1, 1], [], []>} : vector<8x2048xbf16>, vector<2048x1024xbf16>, vector<8x1024xf32> -> vector<8x1024xf32>
    %c1024_i32 = arith.constant 1024 : i32
    %4 = arith.muli %arg0, %c1024_i32 : i32
    %5 = tpu.assume_multiple %4, 1024 : i32
    %c0_4 = arith.constant 0 : index
    %6 = arith.index_cast %5 : i32 to index
    %7 = vector.load %arg3[%c0_4, %6] : memref<1x2048xf32, #tpu.memory_space<vmem>>, vector<1x1024xf32>
    %8 = vector.broadcast %7 : vector<1x1024xf32> to vector<8x1024xf32>
    %9 = arith.addf %3, %8 : vector<8x1024xf32>
    %c0_5 = arith.constant 0 : index
    %c0_6 = arith.constant 0 : index
    %10 = vector.load %arg4[%c0_5, %c0_6] : memref<8x1024xf32, #tpu.memory_space<vmem>>, vector<8x1024xf32>
    tpu.vector_store %arg4[%c0_5, %c0_6], %9 {strides = array<i32>} : memref<8x1024xf32, #tpu.memory_space<vmem>>, vector<8x1024xf32>,
    return
  }
  func.func @transform_0(%arg0: i32) -> (i32, i32) {
    %c0_i32 = arith.constant 0 : i32
    %c0_i32_0 = arith.constant 0 : i32
    %c0_i32_1 = arith.constant 0 : i32
    return %c0_i32, %c0_i32_0 : i32, i32
  }
  func.func @transform_1(%arg0: i32) -> (i32, i32, i32) {
    %c0_i32 = arith.constant 0 : i32
    %c0_i32_0 = arith.constant 0 : i32
    %c0_i32_1 = arith.constant 0 : i32
    return %arg0, %c0_i32, %c0_i32_0 : i32, i32, i32
  }
  func.func @transform_2(%arg0: i32) -> (i32, i32) {
    %c0_i32 = arith.constant 0 : i32
    %c0_i32_0 = arith.constant 0 : i32
    %c0_i32_1 = arith.constant 0 : i32
    return %c0_i32, %c0_i32_0 : i32, i32
  }
  func.func @transform_3(%arg0: i32) -> (i32, i32) {
    %c0_i32 = arith.constant 0 : i32
    %c0_i32_0 = arith.constant 0 : i32
    return %c0_i32, %arg0 : i32, i32
  }
}

</mosaic_0001>

<bundles_post_ra>
// kernel: fused_linear_bn.1
= control target key start
LH: loop header
LB: loop body
LE: loop exit
PB: predicated region body
PF: predicated region fallthrough
CT: control target
= control target key end

     0   :  { %8 = vsyncpa [#allocation3], 0  ;;  %s10706_s0 = inlined_call_operand.vmem [shape: bf16[8,2048], index: 0, kind: input, shape index: {}]   ;;  %s10707_s1 = inlined_call_operand.hbm [shape: bf16[2,2048,1024], index: 1, kind: input, shape index: {}]   ;;  %s10708_s2 = inlined_call_operand.hbm [shape: f32[1,2048], index: 2, kind: input, shape index: {}]   ;;  %s10709_s3 = inlined_call_operand.hbm [shape: f32[8,2048], index: 3, kind: output, shape index: {}]  }
   0x1   :  { %10 = vsyncpa [#allocation3 + $0x1], 0 }
   0x2   :  { %11 = vsyncpa [#allocation6], 0 }
   0x3   :  { %12 = vsyncpa [#allocation4], 0 }
   0x4   :  { %14 = vsyncpa [#allocation4 + $0x1], 0  ;;  %s9283_s12 = smov 0   ;;  %s9285_s13 = smov 0  }
   0x5   :  { %s9287_s14 = smov 0   ;;  %s9289_s15 = smov 0  }
   0x6 LB: > { %s9304_s16 = sadd.s32 4294967295, %s9256_s15   ;;  %s7873_s17 = sadd.s32 4294967294, %s9256_s15   ;;  %s9256_s15 = sphi %s9289_s15, %s10734_s15   ;;  %s9252_s14 = sphi %s9287_s14, %s10733_s14   ;;  %s9248_s13 = sphi %s9285_s13, %s10732_s13   ;;  %s9244_s12 = sphi %s9283_s12, %s10731_s12  }
   0x7   : > { %s9308_s18 = sadd.s32 1, %s9256_s15   ;;  %s48_s19 = sadd.s32 1, %s9252_s14 }
   0x8   : > { %s45_s20 = ssub.s32 %s9256_s15, %s9308_s18  ;;  %p55_p0 = scmp.ne.s32.totalorder %s9252_s14, %s9248_s13 }
   0x9   : > { %p46_p1 = scmp.eq.s32.totalorder %s45_s20, 0  ;;  %p56_p2 = scmp.eq.s32.totalorder %s9256_s15, 0 }
   0xa   : > { %p61_p3 = scmp.ne.s32.totalorder %s9248_s13, %s9244_s12  ;;  %p10710_p4 = scmp.eq.s32.totalorder %s9304_s16, 0 }
   0xb   : > { %s9320_s21 = scalar_select %p46_p1, %s9252_s14, %s48_s19  }
   0xc   : > { %p9322_p5 = por %p56_p2, %p55_p0  ;;  %p9328_p6 = por %p10710_p4, %p61_p3 }
   0xd   : > { %p106_p7 = scmp.eq.s32.totalorder %s9304_s16, 1  ;;  %p112_p8 = scmp.eq.s32.totalorder %s7873_s17, 1 }
   0xe   : > { %s10716_s23 = scalar_select %p9328_p6, 1, 0 }
   0xf   : > { %p7874_p9 = scmp.ge.s32.totalorder %s9256_s15, 1  ;;  %p119_p10 = scmp.lt.s32.totalorder %s9256_s15, 3 }
  0x10   : > { %p9335_p11 = por %p106_p7, %p55_p0  ;;  %p9339_p12 = por %p112_p8, %p61_p3 }
  0x11   : > { %p9343_p13 = pnand %p7874_p9, %p119_p10  ;;  %s9258_s27 = smov [#allocation5]  }
  0x12   : > { %s10717_s24 = scalar_select %p9335_p11, 1, 0 }
  0x13   : > { %s10718_s25 = scalar_select %p9339_p12, 1, 0 }
  0x14   : > { %s10719_s26 = scalar_select %p9343_p13, 1, 0 }
  0x15   : > { %p9060_p2 = pneg %p9343_p13  ;;  %s135_s28 = sshll.u32 %s9258_s27, 4  ;;  %s136_s28 = int_to_ptr.vmem [resolvable:$true] %s135_s28 }
  0x16   : > { %p9073_p4 = scmp.lt.s32.totalorder %s9256_s15, 2  ;;  %p10720_p0 = scmp.eq.s32.totalorder %s9304_s16, 0 }
  0x17   : > { %s146_s30 = sand.u32 1, %s9252_s14   ;;  %s9128_s8 = scalar_lea.hbm %s10708_s2, 256 }
  0x18   : > { %p9353_p7 = pnand %p9060_p2, %p10720_p0  ;;  %p9360_p3 = pnand %p9073_p4, %p9322_p5 }
  0x19   : > { %s7877_s5 = sshll.u32 %s146_s30, 13  ;;  %p9129_p8 = scmp.ne.s32.totalorder %s10708_s2, %s9128_s8 }
  0x1a   : > { %s10722_s4 = scalar_select %p9360_p3, 1, 0 }
  0x1b   : > { %p9130_p9 = pneg %p9353_p7  ;;  %p9135_p4 = scmp.lt.u32.totalorder %s9128_s8, %s10708_s2 }
  0x1d   : > { %p9131_p10 = pnand %p9130_p9, %p9129_p8 }
  0x1f   : > { %p9132_p2 = pneg %p9131_p10 }
  0x21   : > { %p9137_p5 = pnand %p9135_p4, %p9132_p2 }
  0x23   : > { %9140 = shalt.err (!%p9137_p5)
}
  0x24   : > { %s9141_s19 = scalar_lea.vmem %s136_s28, 256  ;;  %p9149_p11 = scmp.lt.s32.totalorder %s136_s28, %s136_s28 }
  0x25   : > { %p9142_p0 = scmp.ne.s32.totalorder %s136_s28, %s9141_s19  ;;  %p9150_p6 = scmp.lt.s32.totalorder %s9141_s19, %s9141_s19 }
  0x27   : > { %p9144_p1 = pnand %p9142_p0, %p9130_p9  ;;  %p9151_p13 = por %p9150_p6, %p9149_p11 }
  0x29   : > { %p9145_p12 = pneg %p9144_p1 }
  0x2b   : > { %p9152_p3 = pnand %p9151_p13, %p9145_p12 }
  0x2d   : > { %9155 = shalt.err (!%p9152_p3)
}
  0x2e   : > { %9063 = dma.hbm_to_vmem [thread:$0]  (!%p9353_p7), %s10708_s2, 256, %s136_s28, [#allocation6]  }
  0x2f   : > { %s8930_s27 = sshll.u32 %s9256_s15, 17  ;;  %s150_s6 = scalar_lea.vmem [#allocation2], %s7877_s5 }
  0x30   : > { %s157_s7 = sshll.u32 %s150_s6, 4  ;;  %s9384_s10 = scalar_lea.hbm %s10707_s1, %s8930_s27  ;;  %s9386_s7 = int_to_ptr.vmem [resolvable:$true] %s157_s7 }
  0x31   : > { %s9388_s29 = scalar_lea.sflag [#allocation3], %s146_s30  ;;  %s9156_s11 = scalar_lea.hbm %s9384_s10, 131072 }
  0x32   : > { %p9157_p6 = scmp.ne.s32.totalorder %s9384_s10, %s9156_s11  ;;  %p10723_p11 = scmp.ne.s32.totalorder %s10722_s4, 0 }
  0x33   : > { %s9161_s17 = scalar_lea.hbm %s10707_s1, 262144  ;;  %p9162_p7 = scmp.lt.u32.totalorder %s9384_s10, %s10707_s1 }
  0x34   : > { %p9158_p12 = pneg %p10723_p11  ;;  %p9163_p3 = scmp.lt.u32.totalorder %s9161_s17, %s9156_s11 }
  0x35   : > { %p9165_p9 = scmp.lt.u32.totalorder %s9156_s11, %s9384_s10 }
  0x36   : > { %p9159_p13 = pnand %p9158_p12, %p9157_p6  ;;  %p9164_p8 = por %p9163_p3, %p9162_p7 }
  0x38   : > { %p9160_p1 = pneg %p9159_p13  ;;  %p9166_p10 = por %p9165_p9, %p9164_p8 }
  0x3a   : > { %p9167_p2 = pnand %p9166_p10, %p9160_p1 }
  0x3c   : > { %9170 = shalt.err (!%p9167_p2)
}
  0x3d   : > { %s9171_s30 = scalar_lea.vmem %s9386_s7, 131072  ;;  %s9259_s22 = smov [#allocation2]  }
  0x3e   : > { %p9172_p4 = scmp.ne.s32.totalorder %s9386_s7, %s9171_s30  ;;  %s9176_s27 = sshll.u32 %s9259_s22, 4  ;;  %s9177_s27 = int_to_ptr.vmem [resolvable:$false] %s9176_s27 }
  0x3f   : > { %s9178_s6 = scalar_lea.vmem %s9177_s27, 262144  ;;  %p9179_p6 = scmp.lt.s32.totalorder %s9386_s7, %s9177_s27 }
  0x40   : > { %p9174_p5 = pnand %p9172_p4, %p9158_p12  ;;  %p9180_p13 = scmp.lt.s32.totalorder %s9178_s6, %s9171_s30 }
  0x42   : > { %p9175_p0 = pneg %p9174_p5  ;;  %p9181_p7 = por %p9180_p13, %p9179_p6 }
  0x44   : > { %p9182_p3 = pnand %p9181_p7, %p9175_p0 }
  0x46   : > { %9185 = shalt.err (!%p9182_p3)
}
  0x47   : > { %s9260_s8 = smov 512   ;;  %s9261_s9 = smov 32  }
  0x48   : > { %9067 = dma.hbm_to_vmem [thread:$0]  (!%p10723_p11), %s9384_s10, 131072, %s9386_s7, %s9388_s29, %s9260_s8, %s9260_s8, %s9261_s9  }
  0x49   : > { %p10724_p12 = scmp.ne.s32.totalorder %s10719_s26, 0 }
  0x4a   : > { %s9419_s11 = sand.u32 (!%p10724_p12), 1, %s9248_s13   ;;  %p10725_p1 = scmp.ne.s32.totalorder (!%p10724_p12), %s10716_s23, 0 }
  0x4b   : > { %169 = sbr.rel (%p10724_p12) target bundleno = 1343 (0x53f), region = 32  ;;  %s7881_s28 = sshll.u32 (!%p10724_p12), %s9419_s11, 13 }
  0x4c   : > { %s172_s5 = scalar_lea.sflag (!%p10724_p12), [#allocation3], %s9419_s11  ;;  %s9423_s17 = scalar_lea.vmem (!%p10724_p12), [#allocation2], %s7881_s28 }
  0x52   : > { %9231 = dma.done.wait (%p10725_p1), %s172_s5, 131072  }
  0x53   : > { %9233 = vsyncadd (%p10725_p1), %s172_s5, 4294836224  ;;  %p10726_p11 = scmp.eq.s32.totalorder %s9304_s16, 0 }
  0x55   : > { %9235 = dma.done.wait (%p10726_p11), [#allocation6], 256   ;;  %p10727_p8 = pmov %p10726_p11 }
  0x56   : > { %v211_v0 = vld [vmem:[%s9423_s17] sm:$0xff]  ;;  %v212_v2 = vld [vmem:[%s9423_s17 + $0x8] sm:$0xff]  ;;  %s7884_s23 = sshll.u32 %s9304_s16, 10  ;;  %s7883_s7 = sshll.u32 %s9419_s11, 6 }
  0x57   : > { %9237 = vsyncadd (%p10727_p8), [#allocation6], 4294967040  ;;  %v215_v1 = vld [vmem:[%s9423_s17 + $0x20] sm:$0xff]  ;;  %v216_v4 = vld [vmem:[%s9423_s17 + $0x28] sm:$0xff]  ;;  %s10308_s26 = sshra.s32 %s7884_s23, 7  ;;  %s10334_s10 = scalar_lea.vmem [#allocation7], %s7883_s7 }
  0x58   : > { %v7902_v3 = vcombine.high %v211_v0, %v215_v1  ;;  %v7901_v5 = vcombine.low %v211_v0, %v215_v1  ;;  %v219_v6 = vld [vmem:[%s9423_s17 + $0x40] sm:$0xff]  ;;  %v7904_v8 = vcombine.high %v212_v2, %v216_v4  ;;  %v7903_v9 = vcombine.low %v212_v2, %v216_v4  ;;  %v220_v11 = vld [vmem:[%s9423_s17 + $0x48] sm:$0xff]  ;;  %s1238_s4 = scalar_lea.vmem [#allocation5], %s10308_s26  ;;  %s10658_s20 = scalar_lea.hbm %s10709_s3, %s7884_s23 }
  0x59   : > { %v223_v7 = vld [vmem:[%s9423_s17 + $0x60] sm:$0xff]  ;;  %v224_v12 = vld [vmem:[%s9423_s17 + $0x68] sm:$0xff]  ;;  %s7778_s16 = scalar_lea.sflag [#allocation4], %s9419_s11  ;;  %p10728_p10 = scmp.ne.s32.totalorder %s10717_s24, 0 }
  0x5a   : > { %v7910_v10 = vcombine.high %v219_v6, %v223_v7  ;;  %v227_v13 = vld [vmem:[%s9423_s17 + $0x80] sm:$0xff]  ;;  %6457 = vmatprep.subr.bf16.mxu0 %v7902_v3  ;;  %v7912_v14 = vcombine.high %v220_v11, %v224_v12  ;;  %v228_v16 = vld [vmem:[%s9423_s17 + $0x88] sm:$0xff]  ;;  %6785 = vmatprep.subr.bf16.mxu1 %v7904_v8  ;;  %v7909_v18 = vcombine.low %v219_v6, %v223_v7  ;;  %s9262_s22 = smov [#allocation7]  }
  0x5b   : > { %v231_v15 = vld [vmem:[%s9423_s17 + $0xa0] sm:$0xff]  ;;  %v232_v17 = vld [vmem:[%s9423_s17 + $0xa8] sm:$0xff]  ;;  %6458 = vmatpush1.bf16.msra.mxu0 %v7901_v5  ;;  %6786 = vmatpush1.bf16.msra.mxu1 %v7903_v9  ;;  %v7911_v19 = vcombine.low %v220_v11, %v224_v12  ;;  %s9190_s27 = sshll.u32 %s9262_s22, 4  ;;  %s9191_s27 = int_to_ptr.vmem [resolvable:$false] %s9190_s27 }
  0x5c   : > { %6459 = vmatprep.subr.bf16.mxu0 %v7910_v10  ;;  %v7918_v20 = vcombine.high %v227_v13, %v231_v15  ;;  %6787 = vmatprep.subr.bf16.mxu1 %v7912_v14  ;;  %v7920_v21 = vcombine.high %v228_v16, %v232_v17  ;;  %v235_v22 = vld [vmem:[%s9423_s17 + $0xc0] sm:$0xff]  ;;  %v236_v24 = vld [vmem:[%s9423_s17 + $0xc8] sm:$0xff]  ;;  %v7917_v26 = vcombine.low %v227_v13, %v231_v15  ;;  %s9192_s6 = scalar_lea.vmem %s9191_s27, 2048 }
  0x5d   : > { %v239_v23 = vld [vmem:[%s9423_s17 + $0xe0] sm:$0xff]  ;;  %v240_v25 = vld [vmem:[%s9423_s17 + $0xe8] sm:$0xff]  ;;  %v7919_v27 = vcombine.low %v228_v16, %v232_v17 }
  0x5e   : > { %v7926_v28 = vcombine.high %v235_v22, %v239_v23  ;;  %v7928_v29 = vcombine.high %v236_v24, %v240_v25  ;;  %v243_v30 = vld [vmem:[%s9423_s17 + $0x100] sm:$0xff]  ;;  %v244_v32 = vld [vmem:[%s9423_s17 + $0x108] sm:$0xff]  ;;  %v7925_v34 = vcombine.low %v235_v22, %v239_v23  ;;  %v7927_v35 = vcombine.low %v236_v24, %v240_v25 }
  0x5f   : > { %6460 = vmatpush1.bf16.msra.mxu0 %v7909_v18  ;;  %6788 = vmatpush1.bf16.msra.mxu1 %v7911_v19  ;;  %v247_v31 = vld [vmem:[%s9423_s17 + $0x120] sm:$0xff]  ;;  %v248_v33 = vld [vmem:[%s9423_s17 + $0x128] sm:$0xff] }
  0x60   : > { %6461 = vmatprep.subr.bf16.mxu0 %v7918_v20  ;;  %6789 = vmatprep.subr.bf16.mxu1 %v7920_v21  ;;  %v7934_v36 = vcombine.high %v243_v30, %v247_v31  ;;  %v7936_v37 = vcombine.high %v244_v32, %v248_v33  ;;  %v251_v38 = vld [vmem:[%s9423_s17 + $0x140] sm:$0xff]  ;;  %v252_v40 = vld [vmem:[%s9423_s17 + $0x148] sm:$0xff]  ;;  %v7933_v42 = vcombine.low %v243_v30, %v247_v31 }
  0x61   : > { %v255_v39 = vld [vmem:[%s9423_s17 + $0x160] sm:$0xff]  ;;  %v256_v41 = vld [vmem:[%s9423_s17 + $0x168] sm:$0xff]  ;;  %v7935_v43 = vcombine.low %v244_v32, %v248_v33 }
  0x62   : > { %v7942_v44 = vcombine.high %v251_v38, %v255_v39  ;;  %v7944_v45 = vcombine.high %v252_v40, %v256_v41  ;;  %v259_v46 = vld [vmem:[%s9423_s17 + $0x180] sm:$0xff]  ;;  %v260_v48 = vld [vmem:[%s9423_s17 + $0x188] sm:$0xff]  ;;  %v7941_v50 = vcombine.low %v251_v38, %v255_v39  ;;  %v7943_v51 = vcombine.low %v252_v40, %v256_v41 }
  0x63   : > { %6462 = vmatpush1.bf16.msra.mxu0 %v7917_v26  ;;  %6790 = vmatpush1.bf16.msra.mxu1 %v7919_v27  ;;  %v263_v47 = vld [vmem:[%s9423_s17 + $0x1a0] sm:$0xff]  ;;  %v264_v49 = vld [vmem:[%s9423_s17 + $0x1a8] sm:$0xff] }
  0x64   : > { %6463 = vmatprep.subr.bf16.mxu0 %v7926_v28  ;;  %6791 = vmatprep.subr.bf16.mxu1 %v7928_v29  ;;  %v7950_v52 = vcombine.high %v259_v46, %v263_v47  ;;  %v9464_v53 = vld [vmem:[%s10706_s0] sm:$0xff]  ;;  %v7952_v54 = vcombine.high %v260_v48, %v264_v49  ;;  %v268_v58 = vld [vmem:[%s9423_s17 + $0x1c8] sm:$0xff]  ;;  %v7949_v60 = vcombine.low %v259_v46, %v263_v47 }
  0x65   : > { %v267_v55 = vld [vmem:[%s9423_s17 + $0x1c0] sm:$0xff]  ;;  %v9470_v57 = vcombine.high %v9464_v53, %v9464_v53  ;;  %v272_v59 = vld [vmem:[%s9423_s17 + $0x1e8] sm:$0xff]  ;;  %v7951_v61 = vcombine.low %v260_v48, %v264_v49 }
  0x66   : > { %v271_v56 = vld [vmem:[%s9423_s17 + $0x1e0] sm:$0xff]  ;;  %v7960_v63 = vcombine.high %v268_v58, %v272_v59  ;;  %v276_v2 = vld [vmem:[%s9423_s17 + $0x208] sm:$0xff]  ;;  %v7959_v5 = vcombine.low %v268_v58, %v272_v59 }
  0x67   : > { %6464 = vmatpush1.bf16.msra.mxu0 %v7925_v34  ;;  %6792 = vmatpush1.bf16.msra.mxu1 %v7927_v35  ;;  %v7958_v62 = vcombine.high %v267_v55, %v271_v56  ;;  %v275_v0 = vld [vmem:[%s9423_s17 + $0x200] sm:$0xff]  ;;  %v280_v3 = vld [vmem:[%s9423_s17 + $0x228] sm:$0xff]  ;;  %v7957_v4 = vcombine.low %v267_v55, %v271_v56 }
  0x68   : > { %6465 = vmatprep.subr.bf16.mxu0 %v7934_v36  ;;  %6793 = vmatprep.subr.bf16.mxu1 %v7936_v37  ;;  %v279_v1 = vld [vmem:[%s9423_s17 + $0x220] sm:$0xff]  ;;  %v7968_v7 = vcombine.high %v276_v2, %v280_v3  ;;  %v284_v10 = vld [vmem:[%s9423_s17 + $0x248] sm:$0xff]  ;;  %v7967_v13 = vcombine.low %v276_v2, %v280_v3 }
  0x69   : > { %6489 = vmatprep.mubr.bf16.mxu0 %v9470_v57  ;;  %6817 = vmatprep.mubr.bf16.mxu1 %v9470_v57  ;;  %v7966_v6 = vcombine.high %v275_v0, %v279_v1  ;;  %v283_v8 = vld [vmem:[%s9423_s17 + $0x240] sm:$0xff]  ;;  %v288_v11 = vld [vmem:[%s9423_s17 + $0x268] sm:$0xff]  ;;  %v7965_v12 = vcombine.low %v275_v0, %v279_v1 }
  0x6a   : > { %v287_v9 = vld [vmem:[%s9423_s17 + $0x260] sm:$0xff]  ;;  %v7976_v15 = vcombine.high %v284_v10, %v288_v11  ;;  %v292_v18 = vld [vmem:[%s9423_s17 + $0x288] sm:$0xff]  ;;  %v7975_v21 = vcombine.low %v284_v10, %v288_v11 }
  0x6b   : > { %6466 = vmatpush1.bf16.msra.mxu0 %v7933_v42  ;;  %6794 = vmatpush1.bf16.msra.mxu1 %v7935_v43  ;;  %v7974_v14 = vcombine.high %v283_v8, %v287_v9  ;;  %v291_v16 = vld [vmem:[%s9423_s17 + $0x280] sm:$0xff]  ;;  %v296_v19 = vld [vmem:[%s9423_s17 + $0x2a8] sm:$0xff]  ;;  %v7973_v20 = vcombine.low %v283_v8, %v287_v9 }
  0x6c   : > { %6467 = vmatprep.subr.bf16.mxu0 %v7942_v44  ;;  %6795 = vmatprep.subr.bf16.mxu1 %v7944_v45  ;;  %v295_v17 = vld [vmem:[%s9423_s17 + $0x2a0] sm:$0xff]  ;;  %v7984_v23 = vcombine.high %v292_v18, %v296_v19  ;;  %v300_v26 = vld [vmem:[%s9423_s17 + $0x2c8] sm:$0xff]  ;;  %v7983_v29 = vcombine.low %v292_v18, %v296_v19 }
  0x6d   : > { %v7982_v22 = vcombine.high %v291_v16, %v295_v17  ;;  %v299_v24 = vld [vmem:[%s9423_s17 + $0x2c0] sm:$0xff]  ;;  %v304_v27 = vld [vmem:[%s9423_s17 + $0x2e8] sm:$0xff]  ;;  %v7981_v28 = vcombine.low %v291_v16, %v295_v17 }
  0x6e   : > { %v303_v25 = vld [vmem:[%s9423_s17 + $0x2e0] sm:$0xff]  ;;  %v7992_v31 = vcombine.high %v300_v26, %v304_v27  ;;  %v308_v34 = vld [vmem:[%s9423_s17 + $0x308] sm:$0xff]  ;;  %v7991_v37 = vcombine.low %v300_v26, %v304_v27 }
  0x6f   : > { %6468 = vmatpush1.bf16.msra.mxu0 %v7941_v50  ;;  %6796 = vmatpush1.bf16.msra.mxu1 %v7943_v51  ;;  %v7990_v30 = vcombine.high %v299_v24, %v303_v25  ;;  %v307_v32 = vld [vmem:[%s9423_s17 + $0x300] sm:$0xff]  ;;  %v312_v35 = vld [vmem:[%s9423_s17 + $0x328] sm:$0xff]  ;;  %v7989_v36 = vcombine.low %v299_v24, %v303_v25 }
  0x70   : > { %6469 = vmatprep.subr.bf16.mxu0 %v7950_v52  ;;  %6797 = vmatprep.subr.bf16.mxu1 %v7952_v54  ;;  %v311_v33 = vld [vmem:[%s9423_s17 + $0x320] sm:$0xff]  ;;  %v8000_v39 = vcombine.high %v308_v34, %v312_v35  ;;  %v316_v42 = vld [vmem:[%s9423_s17 + $0x348] sm:$0xff]  ;;  %v7999_v45 = vcombine.low %v308_v34, %v312_v35 }
  0x71   : > { %v7998_v38 = vcombine.high %v307_v32, %v311_v33  ;;  %v315_v40 = vld [vmem:[%s9423_s17 + $0x340] sm:$0xff]  ;;  %v320_v43 = vld [vmem:[%s9423_s17 + $0x368] sm:$0xff]  ;;  %v7997_v44 = vcombine.low %v307_v32, %v311_v33 }
  0x72   : > { %v319_v41 = vld [vmem:[%s9423_s17 + $0x360] sm:$0xff]  ;;  %v8008_v47 = vcombine.high %v316_v42, %v320_v43  ;;  %v324_v50 = vld [vmem:[%s9423_s17 + $0x388] sm:$0xff]  ;;  %v8007_v54 = vcombine.low %v316_v42, %v320_v43 }
  0x73   : > { %6470 = vmatpush1.bf16.msra.mxu0 %v7949_v60  ;;  %6798 = vmatpush1.bf16.msra.mxu1 %v7951_v61  ;;  %v8006_v46 = vcombine.high %v315_v40, %v319_v41  ;;  %v323_v48 = vld [vmem:[%s9423_s17 + $0x380] sm:$0xff]  ;;  %v328_v51 = vld [vmem:[%s9423_s17 + $0x3a8] sm:$0xff]  ;;  %v8005_v52 = vcombine.low %v315_v40, %v319_v41 }
  0x74   : > { %6471 = vmatprep.subr.bf16.mxu0 %v7958_v62  ;;  %6799 = vmatprep.subr.bf16.mxu1 %v7960_v63  ;;  %v327_v49 = vld [vmem:[%s9423_s17 + $0x3a0] sm:$0xff]  ;;  %v8016_v56 = vcombine.high %v324_v50, %v328_v51  ;;  %v332_v60 = vld [vmem:[%s9423_s17 + $0x3c8] sm:$0xff]  ;;  %v8015_v63 = vcombine.low %v324_v50, %v328_v51 }
  0x75   : > { %v8014_v55 = vcombine.high %v323_v48, %v327_v49  ;;  %v331_v58 = vld [vmem:[%s9423_s17 + $0x3c0] sm:$0xff]  ;;  %v336_v61 = vld [vmem:[%s9423_s17 + $0x3e8] sm:$0xff]  ;;  %v8013_v62 = vcombine.low %v323_v48, %v327_v49 }
  0x76   : > { %v335_v59 = vld [vmem:[%s9423_s17 + $0x3e0] sm:$0xff]  ;;  %v8024_v1 = vcombine.high %v332_v60, %v336_v61 }
  0x77   : > { %6472 = vmatpush1.bf16.msra.mxu0 %v7957_v4  ;;  %6800 = vmatpush1.bf16.msra.mxu1 %v7959_v5  ;;  %v8022_v0 = vcombine.high %v331_v58, %v335_v59  ;;  %v339_v2 = vld [vmem:[%s9423_s17 + $0x400] sm:$0xff]  ;;  %v340_v4 = vld [vmem:[%s9423_s17 + $0x408] sm:$0xff] }
  0x78   : > { %6473 = vmatprep.subr.bf16.mxu0 %v7966_v6  ;;  %6801 = vmatprep.subr.bf16.mxu1 %v7968_v7  ;;  %v343_v3 = vld [vmem:[%s9423_s17 + $0x420] sm:$0xff]  ;;  %v344_v5 = vld [vmem:[%s9423_s17 + $0x428] sm:$0xff]  ;;  %v8021_v6 = vcombine.low %v331_v58, %v335_v59  ;;  %v8023_v7 = vcombine.low %v332_v60, %v336_v61 }
  0x79   : > { %v8030_v8 = vcombine.high %v339_v2, %v343_v3  ;;  %v8032_v9 = vcombine.high %v340_v4, %v344_v5  ;;  %v347_v10 = vld [vmem:[%s9423_s17 + $0x440] sm:$0xff]  ;;  %v8029_v16 = vcombine.low %v339_v2, %v343_v3  ;;  %v8031_v17 = vcombine.low %v340_v4, %v344_v5 }
  0x7a   : > { %v351_v11 = vld [vmem:[%s9423_s17 + $0x460] sm:$0xff] }
  0x7b   : > { %6474 = vmatpush1.bf16.msra.mxu0 %v7965_v12  ;;  %6802 = vmatpush1.bf16.msra.mxu1 %v7967_v13  ;;  %v9516_v12 = vcombine.low %v9464_v53, %v9464_v53  ;;  %v348_v13 = vld [vmem:[%s9423_s17 + $0x448] sm:$0xff]  ;;  %v8038_v18 = vcombine.high %v347_v10, %v351_v11  ;;  %v355_v53 = vld [vmem:[%s9423_s17 + $0x480] sm:$0xff]  ;;  %v8037_v24 = vcombine.low %v347_v10, %v351_v11 }
  0x7c   : > { %6475 = vmatprep.subr.bf16.mxu0 %v7974_v14  ;;  %6803 = vmatprep.subr.bf16.mxu1 %v7976_v15  ;;  %v352_v14 = vld [vmem:[%s9423_s17 + $0x468] sm:$0xff] }
  0x7d   : > { %v9523_v15 = vld [vmem:[%s10706_s0 + $0x8] sm:$0xff]  ;;  %v8040_v19 = vcombine.high %v348_v13, %v352_v14  ;;  %v8039_v25 = vcombine.low %v348_v13, %v352_v14 }
  0x7f   : > { %6476 = vmatpush1.bf16.msra.mxu0 %v7973_v20  ;;  %6804 = vmatpush1.bf16.msra.mxu1 %v7975_v21  ;;  %v359_v20 = vld [vmem:[%s9423_s17 + $0x4a0] sm:$0xff]  ;;  %v9529_v21 = vcombine.high %v9523_v15, %v9523_v15 }
  0x80   : > { %6477 = vmatprep.subr.bf16.mxu0 %v7982_v22  ;;  %6805 = vmatprep.subr.bf16.mxu1 %v7984_v23  ;;  %v356_v22 = vld [vmem:[%s9423_s17 + $0x488] sm:$0xff]  ;;  %v8046_v26 = vcombine.high %v355_v53, %v359_v20  ;;  %v8045_v32 = vcombine.low %v355_v53, %v359_v20 }
  0x81   : > { %v360_v23 = vld [vmem:[%s9423_s17 + $0x4a8] sm:$0xff] }
  0x82   : > { %v8048_v27 = vcombine.high %v356_v22, %v360_v23  ;;  %v8047_v33 = vcombine.low %v356_v22, %v360_v23 }
  0x83   : > { %6478 = vmatpush1.bf16.msra.mxu0 %v7981_v28  ;;  %6806 = vmatpush1.bf16.msra.mxu1 %v7983_v29  ;;  %v363_v28 = vld [vmem:[%s9423_s17 + $0x4c0] sm:$0xff] }
  0x84   : > { %6479 = vmatprep.subr.bf16.mxu0 %v7990_v30  ;;  %6807 = vmatprep.subr.bf16.mxu1 %v7992_v31  ;;  %v367_v29 = vld [vmem:[%s9423_s17 + $0x4e0] sm:$0xff]  ;;  %v364_v30 = vld [vmem:[%s9423_s17 + $0x4c8] sm:$0xff] }
  0x85   : > { %v368_v31 = vld [vmem:[%s9423_s17 + $0x4e8] sm:$0xff]  ;;  %v8054_v34 = vcombine.high %v363_v28, %v367_v29  ;;  %v8053_v40 = vcombine.low %v363_v28, %v367_v29 }
  0x86   : > { %v8056_v35 = vcombine.high %v364_v30, %v368_v31  ;;  %v8055_v41 = vcombine.low %v364_v30, %v368_v31 }
  0x87   : > { %6480 = vmatpush1.bf16.msra.mxu0 %v7989_v36  ;;  %6808 = vmatpush1.bf16.msra.mxu1 %v7991_v37  ;;  %v371_v36 = vld [vmem:[%s9423_s17 + $0x500] sm:$0xff] }
  0x88   : > { %6481 = vmatprep.subr.bf16.mxu0 %v7998_v38  ;;  %6809 = vmatprep.subr.bf16.mxu1 %v8000_v39  ;;  %v375_v37 = vld [vmem:[%s9423_s17 + $0x520] sm:$0xff]  ;;  %v372_v38 = vld [vmem:[%s9423_s17 + $0x508] sm:$0xff] }
  0x89   : > { %v376_v39 = vld [vmem:[%s9423_s17 + $0x528] sm:$0xff]  ;;  %v8062_v42 = vcombine.high %v371_v36, %v375_v37  ;;  %v8061_v48 = vcombine.low %v371_v36, %v375_v37 }
  0x8a   : > { %v8064_v43 = vcombine.high %v372_v38, %v376_v39  ;;  %v8063_v49 = vcombine.low %v372_v38, %v376_v39 }
  0x8b   : > { %6482 = vmatpush1.bf16.msra.mxu0 %v7997_v44  ;;  %6810 = vmatpush1.bf16.msra.mxu1 %v7999_v45  ;;  %v379_v44 = vld [vmem:[%s9423_s17 + $0x540] sm:$0xff] }
  0x8c   : > { %6483 = vmatprep.subr.bf16.mxu0 %v8006_v46  ;;  %6811 = vmatprep.subr.bf16.mxu1 %v8008_v47  ;;  %v383_v45 = vld [vmem:[%s9423_s17 + $0x560] sm:$0xff]  ;;  %v380_v46 = vld [vmem:[%s9423_s17 + $0x548] sm:$0xff] }
  0x8d   : > { %v384_v47 = vld [vmem:[%s9423_s17 + $0x568] sm:$0xff]  ;;  %v8070_v50 = vcombine.high %v379_v44, %v383_v45  ;;  %v8069_v58 = vcombine.low %v379_v44, %v383_v45 }
  0x8e   : > { %v8072_v51 = vcombine.high %v380_v46, %v384_v47  ;;  %v8071_v59 = vcombine.low %v380_v46, %v384_v47 }
  0x8f   : > { %6484 = vmatpush1.bf16.msra.mxu0 %v8005_v52  ;;  %6812 = vmatpush1.bf16.msra.mxu1 %v8007_v54  ;;  %v387_v52 = vld [vmem:[%s9423_s17 + $0x580] sm:$0xff] }
  0x90   : > { %6485 = vmatprep.subr.bf16.mxu0 %v8014_v55  ;;  %6813 = vmatprep.subr.bf16.mxu1 %v8016_v56  ;;  %v391_v54 = vld [vmem:[%s9423_s17 + $0x5a0] sm:$0xff]  ;;  %v388_v55 = vld [vmem:[%s9423_s17 + $0x588] sm:$0xff] }
  0x91   : > { %v392_v56 = vld [vmem:[%s9423_s17 + $0x5a8] sm:$0xff]  ;;  %v8078_v60 = vcombine.high %v387_v52, %v391_v54  ;;  %v8077_v2 = vcombine.low %v387_v52, %v391_v54 }
  0x92   : > { %v8080_v61 = vcombine.high %v388_v55, %v392_v56  ;;  %v8079_v3 = vcombine.low %v388_v55, %v392_v56 }
  0x93   : > { %6486 = vmatpush1.bf16.msra.mxu0 %v8013_v62  ;;  %6814 = vmatpush1.bf16.msra.mxu1 %v8015_v63  ;;  %v395_v62 = vld [vmem:[%s9423_s17 + $0x5c0] sm:$0xff] }
  0x94   : > { %6487 = vmatprep.subr.bf16.mxu0 %v8022_v0  ;;  %6815 = vmatprep.subr.bf16.mxu1 %v8024_v1  ;;  %v399_v63 = vld [vmem:[%s9423_s17 + $0x5e0] sm:$0xff]  ;;  %v396_v0 = vld [vmem:[%s9423_s17 + $0x5c8] sm:$0xff] }
  0x95   : > { %v400_v1 = vld [vmem:[%s9423_s17 + $0x5e8] sm:$0xff]  ;;  %v8086_v4 = vcombine.high %v395_v62, %v399_v63  ;;  %v8085_v10 = vcombine.low %v395_v62, %v399_v63 }
  0x96   : > { %v8088_v5 = vcombine.high %v396_v0, %v400_v1  ;;  %v8087_v11 = vcombine.low %v396_v0, %v400_v1 }
  0x97   : > { %6488 = vmatpush1.bf16.msra.mxu0 %v8021_v6  ;;  %6816 = vmatpush1.bf16.msra.mxu1 %v8023_v7  ;;  %v403_v6 = vld [vmem:[%s9423_s17 + $0x600] sm:$0xff] }
  0x98   : > { %6498 = vmatprep.subr.bf16.mxu0 %v8030_v8  ;;  %6826 = vmatprep.subr.bf16.mxu1 %v8032_v9  ;;  %v407_v7 = vld [vmem:[%s9423_s17 + $0x620] sm:$0xff]  ;;  %v404_v8 = vld [vmem:[%s9423_s17 + $0x608] sm:$0xff] }
  0x99   : > { %v408_v9 = vld [vmem:[%s9423_s17 + $0x628] sm:$0xff]  ;;  %v8094_v13 = vcombine.high %v403_v6, %v407_v7  ;;  %v8093_v53 = vcombine.low %v403_v6, %v407_v7 }
  0x9a   : > { %6490 = vmatmul.mubr.bf16.vlgmr.msra.gmra.mrb[0].mxu0 %v9516_v12  ;;  %6818 = vmatmul.mubr.bf16.vlgmr.msra.gmra.mrb[0].mxu1 %v9516_v12  ;;  %v8096_v14 = vcombine.high %v404_v8, %v408_v9  ;;  %v8095_v20 = vcombine.low %v404_v8, %v408_v9 }
  0x9b   : > { %6499 = vmatpush1.bf16.msra.mxu0 %v8029_v16  ;;  %6827 = vmatpush1.bf16.msra.mxu1 %v8031_v17  ;;  %v411_v16 = vld [vmem:[%s9423_s17 + $0x640] sm:$0xff] }
  0x9c   : > { %6500 = vmatprep.subr.bf16.mxu0 %v8038_v18  ;;  %6828 = vmatprep.subr.bf16.mxu1 %v8040_v19  ;;  %v415_v17 = vld [vmem:[%s9423_s17 + $0x660] sm:$0xff]  ;;  %v412_v18 = vld [vmem:[%s9423_s17 + $0x648] sm:$0xff] }
  0x9d   : > { %6530 = vmatprep.mubr.bf16.mxu0 %v9529_v21  ;;  %6858 = vmatprep.mubr.bf16.mxu1 %v9529_v21  ;;  %v416_v19 = vld [vmem:[%s9423_s17 + $0x668] sm:$0xff]  ;;  %v8102_v22 = vcombine.high %v411_v16, %v415_v17  ;;  %v8101_v28 = vcombine.low %v411_v16, %v415_v17 }
  0x9e   : > { %v8104_v23 = vcombine.high %v412_v18, %v416_v19  ;;  %v8103_v29 = vcombine.low %v412_v18, %v416_v19 }
  0x9f   : > { %6501 = vmatpush1.bf16.msra.mxu0 %v8037_v24  ;;  %6829 = vmatpush1.bf16.msra.mxu1 %v8039_v25  ;;  %v419_v24 = vld [vmem:[%s9423_s17 + $0x680] sm:$0xff] }
  0xa0   : > { %6502 = vmatprep.subr.bf16.mxu0 %v8046_v26  ;;  %6830 = vmatprep.subr.bf16.mxu1 %v8048_v27  ;;  %v423_v25 = vld [vmem:[%s9423_s17 + $0x6a0] sm:$0xff]  ;;  %v420_v26 = vld [vmem:[%s9423_s17 + $0x688] sm:$0xff] }
  0xa1   : > { %v424_v27 = vld [vmem:[%s9423_s17 + $0x6a8] sm:$0xff]  ;;  %v8110_v30 = vcombine.high %v419_v24, %v423_v25  ;;  %v8109_v36 = vcombine.low %v419_v24, %v423_v25  ;;  %v9604_v25 = vld [vmem:[%s10706_s0 + $0x10] sm:$0xff] }
  0xa2   : > { %v8112_v31 = vcombine.high %v420_v26, %v424_v27  ;;  %v8111_v37 = vcombine.low %v420_v26, %v424_v27  ;;  %v480_v24 = vld [vmem:[%s9423_s17 + $0x868] sm:$0xff] }
  0xa3   : > { %6503 = vmatpush1.bf16.msra.mxu0 %v8045_v32  ;;  %6831 = vmatpush1.bf16.msra.mxu1 %v8047_v33  ;;  %v427_v32 = vld [vmem:[%s9423_s17 + $0x6c0] sm:$0xff] }
  0xa4   : > { %6504 = vmatprep.subr.bf16.mxu0 %v8054_v34  ;;  %6832 = vmatprep.subr.bf16.mxu1 %v8056_v35  ;;  %v431_v33 = vld [vmem:[%s9423_s17 + $0x6e0] sm:$0xff]  ;;  %v428_v34 = vld [vmem:[%s9423_s17 + $0x6c8] sm:$0xff] }
  0xa5   : > { %v432_v35 = vld [vmem:[%s9423_s17 + $0x6e8] sm:$0xff]  ;;  %v8118_v38 = vcombine.high %v427_v32, %v431_v33  ;;  %v8117_v44 = vcombine.low %v427_v32, %v431_v33 }
  0xa6   : > { %v8120_v39 = vcombine.high %v428_v34, %v432_v35  ;;  %v8119_v45 = vcombine.low %v428_v34, %v432_v35  ;;  %v484_v32 = vld [vmem:[%s9423_s17 + $0x888] sm:$0xff] }
  0xa7   : > { %6505 = vmatpush1.bf16.msra.mxu0 %v8053_v40  ;;  %6833 = vmatpush1.bf16.msra.mxu1 %v8055_v41  ;;  %v435_v40 = vld [vmem:[%s9423_s17 + $0x700] sm:$0xff]  ;;  %v488_v33 = vld [vmem:[%s9423_s17 + $0x8a8] sm:$0xff] }
  0xa8   : > { %6506 = vmatprep.subr.bf16.mxu0 %v8062_v42  ;;  %6834 = vmatprep.subr.bf16.mxu1 %v8064_v43  ;;  %v439_v41 = vld [vmem:[%s9423_s17 + $0x720] sm:$0xff]  ;;  %v436_v42 = vld [vmem:[%s9423_s17 + $0x708] sm:$0xff] }
  0xa9   : > { %v440_v43 = vld [vmem:[%s9423_s17 + $0x728] sm:$0xff]  ;;  %v8126_v46 = vcombine.high %v435_v40, %v439_v41  ;;  %v8125_v52 = vcombine.low %v435_v40, %v439_v41 }
  0xaa   : > { %v8128_v47 = vcombine.high %v436_v42, %v440_v43  ;;  %v8127_v54 = vcombine.low %v436_v42, %v440_v43  ;;  %v492_v40 = vld [vmem:[%s9423_s17 + $0x8c8] sm:$0xff]  ;;  %v8175_v43 = vcombine.low %v484_v32, %v488_v33 }
  0xab   : > { %6507 = vmatpush1.bf16.msra.mxu0 %v8061_v48  ;;  %6835 = vmatpush1.bf16.msra.mxu1 %v8063_v49  ;;  %v443_v48 = vld [vmem:[%s9423_s17 + $0x740] sm:$0xff]  ;;  %v496_v41 = vld [vmem:[%s9423_s17 + $0x8e8] sm:$0xff] }
  0xac   : > { %6508 = vmatprep.subr.bf16.mxu0 %v8070_v50  ;;  %6836 = vmatprep.subr.bf16.mxu1 %v8072_v51  ;;  %v447_v49 = vld [vmem:[%s9423_s17 + $0x760] sm:$0xff]  ;;  %v444_v50 = vld [vmem:[%s9423_s17 + $0x748] sm:$0xff] }
  0xad   : > { %v448_v51 = vld [vmem:[%s9423_s17 + $0x768] sm:$0xff]  ;;  %v8134_v55 = vcombine.high %v443_v48, %v447_v49  ;;  %v8133_v62 = vcombine.low %v443_v48, %v447_v49 }
  0xae   : > { %v8136_v56 = vcombine.high %v444_v50, %v448_v51  ;;  %v8135_v63 = vcombine.low %v444_v50, %v448_v51  ;;  %v500_v48 = vld [vmem:[%s9423_s17 + $0x908] sm:$0xff]  ;;  %v8183_v51 = vcombine.low %v492_v40, %v496_v41 }
  0xaf   : > { %6509 = vmatpush1.bf16.msra.mxu0 %v8069_v58  ;;  %6837 = vmatpush1.bf16.msra.mxu1 %v8071_v59  ;;  %v451_v58 = vld [vmem:[%s9423_s17 + $0x780] sm:$0xff]  ;;  %v504_v49 = vld [vmem:[%s9423_s17 + $0x928] sm:$0xff] }
  0xb0   : > { %6510 = vmatprep.subr.bf16.mxu0 %v8078_v60  ;;  %6838 = vmatprep.subr.bf16.mxu1 %v8080_v61  ;;  %v455_v59 = vld [vmem:[%s9423_s17 + $0x7a0] sm:$0xff]  ;;  %v452_v60 = vld [vmem:[%s9423_s17 + $0x788] sm:$0xff] }
  0xb1   : > { %v456_v61 = vld [vmem:[%s9423_s17 + $0x7a8] sm:$0xff]  ;;  %v8142_v0 = vcombine.high %v451_v58, %v455_v59  ;;  %v8141_v6 = vcombine.low %v451_v58, %v455_v59 }
  0xb2   : > { %v8144_v1 = vcombine.high %v452_v60, %v456_v61  ;;  %v8143_v7 = vcombine.low %v452_v60, %v456_v61  ;;  %v508_v58 = vld [vmem:[%s9423_s17 + $0x948] sm:$0xff]  ;;  %v8191_v61 = vcombine.low %v500_v48, %v504_v49 }
  0xb3   : > { %6511 = vmatpush1.bf16.msra.mxu0 %v8077_v2  ;;  %6839 = vmatpush1.bf16.msra.mxu1 %v8079_v3  ;;  %v459_v2 = vld [vmem:[%s9423_s17 + $0x7c0] sm:$0xff]  ;;  %v512_v59 = vld [vmem:[%s9423_s17 + $0x968] sm:$0xff] }
  0xb4   : > { %6512 = vmatprep.subr.bf16.mxu0 %v8086_v4  ;;  %6840 = vmatprep.subr.bf16.mxu1 %v8088_v5  ;;  %v463_v3 = vld [vmem:[%s9423_s17 + $0x7e0] sm:$0xff]  ;;  %v460_v4 = vld [vmem:[%s9423_s17 + $0x7c8] sm:$0xff] }
  0xb5   : > { %v464_v5 = vld [vmem:[%s9423_s17 + $0x7e8] sm:$0xff]  ;;  %v8150_v8 = vcombine.high %v459_v2, %v463_v3  ;;  %v8149_v16 = vcombine.low %v459_v2, %v463_v3 }
  0xb6   : > { %v8152_v9 = vcombine.high %v460_v4, %v464_v5  ;;  %v8151_v17 = vcombine.low %v460_v4, %v464_v5  ;;  %v516_v2 = vld [vmem:[%s9423_s17 + $0x988] sm:$0xff]  ;;  %v8199_v5 = vcombine.low %v508_v58, %v512_v59 }
  0xb7   : > { %6513 = vmatpush1.bf16.msra.mxu0 %v8085_v10  ;;  %6841 = vmatpush1.bf16.msra.mxu1 %v8087_v11  ;;  %v467_v10 = vld [vmem:[%s9423_s17 + $0x800] sm:$0xff]  ;;  %v520_v3 = vld [vmem:[%s9423_s17 + $0x9a8] sm:$0xff] }
  0xb8   : > { %6514 = vmatprep.subr.bf16.mxu0 %v8094_v13  ;;  %6842 = vmatprep.subr.bf16.mxu1 %v8096_v14  ;;  %v471_v11 = vld [vmem:[%s9423_s17 + $0x820] sm:$0xff]  ;;  %v468_v13 = vld [vmem:[%s9423_s17 + $0x808] sm:$0xff] }
  0xb9   : > { %v472_v14 = vld [vmem:[%s9423_s17 + $0x828] sm:$0xff]  ;;  %v8158_v18 = vcombine.high %v467_v10, %v471_v11  ;;  %v8157_v26 = vcombine.low %v467_v10, %v471_v11 }
  0xba   : > { %v8160_v19 = vcombine.high %v468_v13, %v472_v14  ;;  %v8159_v27 = vcombine.low %v468_v13, %v472_v14  ;;  %v524_v10 = vld [vmem:[%s9423_s17 + $0x9c8] sm:$0xff]  ;;  %v8207_v14 = vcombine.low %v516_v2, %v520_v3 }
  0xbb   : > { %6515 = vmatpush1.bf16.msra.mxu0 %v8093_v53  ;;  %6843 = vmatpush1.bf16.msra.mxu1 %v8095_v20  ;;  %v475_v53 = vld [vmem:[%s9423_s17 + $0x840] sm:$0xff]  ;;  %v528_v11 = vld [vmem:[%s9423_s17 + $0x9e8] sm:$0xff] }
  0xbc   : > { %6516 = vmatprep.subr.bf16.mxu0 %v8102_v22  ;;  %6844 = vmatprep.subr.bf16.mxu1 %v8104_v23  ;;  %v479_v20 = vld [vmem:[%s9423_s17 + $0x860] sm:$0xff]  ;;  %v9597_v22 = vcombine.low %v9523_v15, %v9523_v15  ;;  %v476_v23 = vld [vmem:[%s9423_s17 + $0x848] sm:$0xff] }
  0xbd   : > { %v483_v15 = vld [vmem:[%s9423_s17 + $0x880] sm:$0xff]  ;;  %v8165_v34 = vcombine.low %v475_v53, %v479_v20  ;;  %v8167_v35 = vcombine.low %v476_v23, %v480_v24 }
  0xbf   : > { %6517 = vmatpush1.bf16.msra.mxu0 %v8101_v28  ;;  %6845 = vmatpush1.bf16.msra.mxu1 %v8103_v29  ;;  %v8166_v28 = vcombine.high %v475_v53, %v479_v20  ;;  %v8168_v29 = vcombine.high %v476_v23, %v480_v24  ;;  %v532_v53 = vld [vmem:[%s9423_s17 + $0xa08] sm:$0xff]  ;;  %v8215_v24 = vcombine.low %v524_v10, %v528_v11 }
  0xc0   : > { %6518 = vmatprep.subr.bf16.mxu0 %v8110_v30  ;;  %6846 = vmatprep.subr.bf16.mxu1 %v8112_v31  ;;  %v487_v30 = vld [vmem:[%s9423_s17 + $0x8a0] sm:$0xff]  ;;  %v9610_v31 = vcombine.high %v9604_v25, %v9604_v25  ;;  %v536_v20 = vld [vmem:[%s9423_s17 + $0xa28] sm:$0xff] }
  0xc1   : > { %v8173_v42 = vcombine.low %v483_v15, %v487_v30 }
  0xc3   : > { %6519 = vmatpush1.bf16.msra.mxu0 %v8109_v36  ;;  %6847 = vmatpush1.bf16.msra.mxu1 %v8111_v37  ;;  %v8174_v36 = vcombine.high %v483_v15, %v487_v30  ;;  %v8176_v37 = vcombine.high %v484_v32, %v488_v33  ;;  %v540_v15 = vld [vmem:[%s9423_s17 + $0xa48] sm:$0xff]  ;;  %v8223_v33 = vcombine.low %v532_v53, %v536_v20 }
  0xc4   : > { %6520 = vmatprep.subr.bf16.mxu0 %v8118_v38  ;;  %6848 = vmatprep.subr.bf16.mxu1 %v8120_v39  ;;  %v491_v38 = vld [vmem:[%s9423_s17 + $0x8c0] sm:$0xff]  ;;  %v544_v30 = vld [vmem:[%s9423_s17 + $0xa68] sm:$0xff] }
  0xc5   : > { %v495_v39 = vld [vmem:[%s9423_s17 + $0x8e0] sm:$0xff] }
  0xc6   : > { %v8181_v50 = vcombine.low %v491_v38, %v495_v39 }
  0xc7   : > { %6521 = vmatpush1.bf16.msra.mxu0 %v8117_v44  ;;  %6849 = vmatpush1.bf16.msra.mxu1 %v8119_v45  ;;  %v8182_v44 = vcombine.high %v491_v38, %v495_v39  ;;  %v8184_v45 = vcombine.high %v492_v40, %v496_v41  ;;  %v548_v38 = vld [vmem:[%s9423_s17 + $0xa88] sm:$0xff]  ;;  %v8231_v41 = vcombine.low %v540_v15, %v544_v30 }
  0xc8   : > { %6522 = vmatprep.subr.bf16.mxu0 %v8126_v46  ;;  %6850 = vmatprep.subr.bf16.mxu1 %v8128_v47  ;;  %v499_v46 = vld [vmem:[%s9423_s17 + $0x900] sm:$0xff]  ;;  %v552_v39 = vld [vmem:[%s9423_s17 + $0xaa8] sm:$0xff] }
  0xc9   : > { %v503_v47 = vld [vmem:[%s9423_s17 + $0x920] sm:$0xff] }
  0xca   : > { %v8189_v60 = vcombine.low %v499_v46, %v503_v47 }
  0xcb   : > { %6523 = vmatpush1.bf16.msra.mxu0 %v8125_v52  ;;  %6851 = vmatpush1.bf16.msra.mxu1 %v8127_v54  ;;  %v8190_v52 = vcombine.high %v499_v46, %v503_v47  ;;  %v8192_v54 = vcombine.high %v500_v48, %v504_v49  ;;  %v556_v46 = vld [vmem:[%s9423_s17 + $0xac8] sm:$0xff]  ;;  %v8239_v49 = vcombine.low %v548_v38, %v552_v39 }
  0xcc   : > { %6524 = vmatprep.subr.bf16.mxu0 %v8134_v55  ;;  %6852 = vmatprep.subr.bf16.mxu1 %v8136_v56  ;;  %v507_v55 = vld [vmem:[%s9423_s17 + $0x940] sm:$0xff]  ;;  %v560_v47 = vld [vmem:[%s9423_s17 + $0xae8] sm:$0xff] }
  0xcd   : > { %v511_v56 = vld [vmem:[%s9423_s17 + $0x960] sm:$0xff] }
  0xce   : > { %v8197_v4 = vcombine.low %v507_v55, %v511_v56 }
  0xcf   : > { %6525 = vmatpush1.bf16.msra.mxu0 %v8133_v62  ;;  %6853 = vmatpush1.bf16.msra.mxu1 %v8135_v63  ;;  %v8198_v62 = vcombine.high %v507_v55, %v511_v56  ;;  %v8200_v63 = vcombine.high %v508_v58, %v512_v59  ;;  %v564_v55 = vld [vmem:[%s9423_s17 + $0xb08] sm:$0xff]  ;;  %v8247_v59 = vcombine.low %v556_v46, %v560_v47 }
  0xd0   : > { %6526 = vmatprep.subr.bf16.mxu0 %v8142_v0  ;;  %6854 = vmatprep.subr.bf16.mxu1 %v8144_v1  ;;  %v515_v0 = vld [vmem:[%s9423_s17 + $0x980] sm:$0xff]  ;;  %v568_v56 = vld [vmem:[%s9423_s17 + $0xb28] sm:$0xff] }
  0xd1   : > { %v519_v1 = vld [vmem:[%s9423_s17 + $0x9a0] sm:$0xff] }
  0xd2   : > { %v8205_v13 = vcombine.low %v515_v0, %v519_v1 }
  0xd3   : > { %6527 = vmatpush1.bf16.msra.mxu0 %v8141_v6  ;;  %6855 = vmatpush1.bf16.msra.mxu1 %v8143_v7  ;;  %v8206_v6 = vcombine.high %v515_v0, %v519_v1  ;;  %v8208_v7 = vcombine.high %v516_v2, %v520_v3  ;;  %v572_v0 = vld [vmem:[%s9423_s17 + $0xb48] sm:$0xff]  ;;  %v8255_v3 = vcombine.low %v564_v55, %v568_v56 }
  0xd4   : > { %6528 = vmatprep.subr.bf16.mxu0 %v8150_v8  ;;  %6856 = vmatprep.subr.bf16.mxu1 %v8152_v9  ;;  %v523_v8 = vld [vmem:[%s9423_s17 + $0x9c0] sm:$0xff]  ;;  %v576_v1 = vld [vmem:[%s9423_s17 + $0xb68] sm:$0xff] }
  0xd5   : > { %v527_v9 = vld [vmem:[%s9423_s17 + $0x9e0] sm:$0xff] }
  0xd6   : > { %v8213_v23 = vcombine.low %v523_v8, %v527_v9 }
  0xd7   : > { %6529 = vmatpush1.bf16.msra.mxu0 %v8149_v16  ;;  %6857 = vmatpush1.bf16.msra.mxu1 %v8151_v17  ;;  %v8214_v16 = vcombine.high %v523_v8, %v527_v9  ;;  %v8216_v17 = vcombine.high %v524_v10, %v528_v11  ;;  %v580_v8 = vld [vmem:[%s9423_s17 + $0xb88] sm:$0xff]  ;;  %v8263_v11 = vcombine.low %v572_v0, %v576_v1 }
  0xd8   : > { %6539 = vmatprep.subr.bf16.mxu0 %v8158_v18  ;;  %6867 = vmatprep.subr.bf16.mxu1 %v8160_v19  ;;  %v531_v18 = vld [vmem:[%s9423_s17 + $0xa00] sm:$0xff]  ;;  %v584_v9 = vld [vmem:[%s9423_s17 + $0xba8] sm:$0xff] }
  0xd9   : > { %v535_v19 = vld [vmem:[%s9423_s17 + $0xa20] sm:$0xff] }
  0xda   : > { %6531 = vmatmul.mubr.bf16.vlgmr.msra.gmra.mrb[0].mxu0 %v9597_v22  ;;  %6859 = vmatmul.mubr.bf16.vlgmr.msra.gmra.mrb[0].mxu1 %v9597_v22  ;;  %v8221_v32 = vcombine.low %v531_v18, %v535_v19 }
  0xdb   : > { %6540 = vmatpush1.bf16.msra.mxu0 %v8157_v26  ;;  %6868 = vmatpush1.bf16.msra.mxu1 %v8159_v27  ;;  %v8222_v26 = vcombine.high %v531_v18, %v535_v19  ;;  %v8224_v27 = vcombine.high %v532_v53, %v536_v20  ;;  %v588_v18 = vld [vmem:[%s9423_s17 + $0xbc8] sm:$0xff]  ;;  %v8271_v20 = vcombine.low %v580_v8, %v584_v9 }
  0xdc   : > { %6541 = vmatprep.subr.bf16.mxu0 %v8166_v28  ;;  %6869 = vmatprep.subr.bf16.mxu1 %v8168_v29  ;;  %v539_v28 = vld [vmem:[%s9423_s17 + $0xa40] sm:$0xff]  ;;  %v592_v19 = vld [vmem:[%s9423_s17 + $0xbe8] sm:$0xff] }
  0xdd   : > { %6571 = vmatprep.mubr.bf16.mxu0 %v9610_v31  ;;  %6899 = vmatprep.mubr.bf16.mxu1 %v9610_v31  ;;  %v543_v29 = vld [vmem:[%s9423_s17 + $0xa60] sm:$0xff] }
  0xde   : > { %v8229_v40 = vcombine.low %v539_v28, %v543_v29 }
  0xdf   : > { %6542 = vmatpush1.bf16.msra.mxu0 %v8165_v34  ;;  %6870 = vmatpush1.bf16.msra.mxu1 %v8167_v35  ;;  %v8230_v34 = vcombine.high %v539_v28, %v543_v29  ;;  %v8232_v35 = vcombine.high %v540_v15, %v544_v30  ;;  %v596_v28 = vld [vmem:[%s9423_s17 + $0xc08] sm:$0xff]  ;;  %v8279_v30 = vcombine.low %v588_v18, %v592_v19 }
  0xe0   : > { %6543 = vmatprep.subr.bf16.mxu0 %v8174_v36  ;;  %6871 = vmatprep.subr.bf16.mxu1 %v8176_v37  ;;  %v547_v36 = vld [vmem:[%s9423_s17 + $0xa80] sm:$0xff]  ;;  %v600_v29 = vld [vmem:[%s9423_s17 + $0xc28] sm:$0xff] }
  0xe1   : > { %v551_v37 = vld [vmem:[%s9423_s17 + $0xaa0] sm:$0xff] }
  0xe2   : > { %v8237_v48 = vcombine.low %v547_v36, %v551_v37 }
  0xe3   : > { %6544 = vmatpush1.bf16.msra.mxu0 %v8173_v42  ;;  %6872 = vmatpush1.bf16.msra.mxu1 %v8175_v43  ;;  %v8238_v42 = vcombine.high %v547_v36, %v551_v37  ;;  %v8240_v43 = vcombine.high %v548_v38, %v552_v39  ;;  %v9678_v36 = vcombine.low %v9604_v25, %v9604_v25  ;;  %v604_v37 = vld [vmem:[%s9423_s17 + $0xc48] sm:$0xff]  ;;  %v9685_v39 = vld [vmem:[%s10706_s0 + $0x18] sm:$0xff]  ;;  %v611_v25 = vld [vmem:[%s9423_s17 + $0xc80] sm:$0xff] }
  0xe4   : > { %6545 = vmatprep.subr.bf16.mxu0 %v8182_v44  ;;  %6873 = vmatprep.subr.bf16.mxu1 %v8184_v45  ;;  %v555_v44 = vld [vmem:[%s9423_s17 + $0xac0] sm:$0xff]  ;;  %v608_v38 = vld [vmem:[%s9423_s17 + $0xc68] sm:$0xff] }
  0xe5   : > { %v559_v45 = vld [vmem:[%s9423_s17 + $0xae0] sm:$0xff] }
  0xe6   : > { %v8245_v58 = vcombine.low %v555_v44, %v559_v45 }
  0xe7   : > { %6546 = vmatpush1.bf16.msra.mxu0 %v8181_v50  ;;  %6874 = vmatpush1.bf16.msra.mxu1 %v8183_v51  ;;  %v8246_v50 = vcombine.high %v555_v44, %v559_v45  ;;  %v8248_v51 = vcombine.high %v556_v46, %v560_v47  ;;  %v615_v44 = vld [vmem:[%s9423_s17 + $0xca0] sm:$0xff]  ;;  %v9691_v45 = vcombine.high %v9685_v39, %v9685_v39  ;;  %v612_v46 = vld [vmem:[%s9423_s17 + $0xc88] sm:$0xff] }
  0xe8   : > { %6547 = vmatprep.subr.bf16.mxu0 %v8190_v52  ;;  %6875 = vmatprep.subr.bf16.mxu1 %v8192_v54  ;;  %v563_v52 = vld [vmem:[%s9423_s17 + $0xb00] sm:$0xff]  ;;  %v616_v47 = vld [vmem:[%s9423_s17 + $0xca8] sm:$0xff] }
  0xe9   : > { %v567_v54 = vld [vmem:[%s9423_s17 + $0xb20] sm:$0xff] }
  0xea   : > { %v8253_v2 = vcombine.low %v563_v52, %v567_v54 }
  0xeb   : > { %6548 = vmatpush1.bf16.msra.mxu0 %v8189_v60  ;;  %6876 = vmatpush1.bf16.msra.mxu1 %v8191_v61  ;;  %v8254_v60 = vcombine.high %v563_v52, %v567_v54  ;;  %v8256_v61 = vcombine.high %v564_v55, %v568_v56  ;;  %v619_v52 = vld [vmem:[%s9423_s17 + $0xcc0] sm:$0xff]  ;;  %v620_v55 = vld [vmem:[%s9423_s17 + $0xcc8] sm:$0xff] }
  0xec   : > { %6549 = vmatprep.subr.bf16.mxu0 %v8198_v62  ;;  %6877 = vmatprep.subr.bf16.mxu1 %v8200_v63  ;;  %v571_v62 = vld [vmem:[%s9423_s17 + $0xb40] sm:$0xff]  ;;  %v624_v56 = vld [vmem:[%s9423_s17 + $0xce8] sm:$0xff] }
  0xed   : > { %v575_v63 = vld [vmem:[%s9423_s17 + $0xb60] sm:$0xff] }
  0xee   : > { %v8261_v10 = vcombine.low %v571_v62, %v575_v63  ;;  %v623_v54 = vld [vmem:[%s9423_s17 + $0xce0] sm:$0xff] }
  0xef   : > { %6550 = vmatpush1.bf16.msra.mxu0 %v8197_v4  ;;  %6878 = vmatpush1.bf16.msra.mxu1 %v8199_v5  ;;  %v8262_v4 = vcombine.high %v571_v62, %v575_v63  ;;  %v8264_v5 = vcombine.high %v572_v0, %v576_v1  ;;  %v627_v62 = vld [vmem:[%s9423_s17 + $0xd00] sm:$0xff]  ;;  %v628_v0 = vld [vmem:[%s9423_s17 + $0xd08] sm:$0xff] }
  0xf0   : > { %6551 = vmatprep.subr.bf16.mxu0 %v8206_v6  ;;  %6879 = vmatprep.subr.bf16.mxu1 %v8208_v7  ;;  %v579_v6 = vld [vmem:[%s9423_s17 + $0xb80] sm:$0xff]  ;;  %v632_v1 = vld [vmem:[%s9423_s17 + $0xd28] sm:$0xff] }
  0xf1   : > { %v583_v7 = vld [vmem:[%s9423_s17 + $0xba0] sm:$0xff] }
  0xf2   : > { %v8269_v53 = vcombine.low %v579_v6, %v583_v7  ;;  %v631_v63 = vld [vmem:[%s9423_s17 + $0xd20] sm:$0xff] }
  0xf3   : > { %6552 = vmatpush1.bf16.msra.mxu0 %v8205_v13  ;;  %6880 = vmatpush1.bf16.msra.mxu1 %v8207_v14  ;;  %v8270_v13 = vcombine.high %v579_v6, %v583_v7  ;;  %v8272_v14 = vcombine.high %v580_v8, %v584_v9  ;;  %v635_v6 = vld [vmem:[%s9423_s17 + $0xd40] sm:$0xff]  ;;  %v636_v8 = vld [vmem:[%s9423_s17 + $0xd48] sm:$0xff] }
  0xf4   : > { %6553 = vmatprep.subr.bf16.mxu0 %v8214_v16  ;;  %6881 = vmatprep.subr.bf16.mxu1 %v8216_v17  ;;  %v587_v16 = vld [vmem:[%s9423_s17 + $0xbc0] sm:$0xff]  ;;  %v640_v9 = vld [vmem:[%s9423_s17 + $0xd68] sm:$0xff] }
  0xf5   : > { %v591_v17 = vld [vmem:[%s9423_s17 + $0xbe0] sm:$0xff] }
  0xf6   : > { %v8277_v15 = vcombine.low %v587_v16, %v591_v17  ;;  %v639_v7 = vld [vmem:[%s9423_s17 + $0xd60] sm:$0xff] }
  0xf7   : > { %6554 = vmatpush1.bf16.msra.mxu0 %v8213_v23  ;;  %6882 = vmatpush1.bf16.msra.mxu1 %v8215_v24  ;;  %v8278_v23 = vcombine.high %v587_v16, %v591_v17  ;;  %v8280_v24 = vcombine.high %v588_v18, %v592_v19  ;;  %v643_v16 = vld [vmem:[%s9423_s17 + $0xd80] sm:$0xff]  ;;  %v644_v18 = vld [vmem:[%s9423_s17 + $0xd88] sm:$0xff] }
  0xf8   : > { %6555 = vmatprep.subr.bf16.mxu0 %v8222_v26  ;;  %6883 = vmatprep.subr.bf16.mxu1 %v8224_v27  ;;  %v595_v26 = vld [vmem:[%s9423_s17 + $0xc00] sm:$0xff]  ;;  %v648_v19 = vld [vmem:[%s9423_s17 + $0xda8] sm:$0xff] }
  0xf9   : > { %v599_v27 = vld [vmem:[%s9423_s17 + $0xc20] sm:$0xff] }
  0xfa   : > { %v647_v17 = vld [vmem:[%s9423_s17 + $0xda0] sm:$0xff] }
  0xfb   : > { %6556 = vmatpush1.bf16.msra.mxu0 %v8221_v32  ;;  %6884 = vmatpush1.bf16.msra.mxu1 %v8223_v33  ;;  %v8286_v32 = vcombine.high %v595_v26, %v599_v27  ;;  %v8288_v33 = vcombine.high %v596_v28, %v600_v29 }
  0xfc   : > { %6557 = vmatprep.subr.bf16.mxu0 %v8230_v34  ;;  %6885 = vmatprep.subr.bf16.mxu1 %v8232_v35  ;;  %v603_v34 = vld [vmem:[%s9423_s17 + $0xc40] sm:$0xff] }
  0xfd   : > { %v607_v35 = vld [vmem:[%s9423_s17 + $0xc60] sm:$0xff] }
  0xff   : > { %6558 = vmatpush1.bf16.msra.mxu0 %v8229_v40  ;;  %6886 = vmatpush1.bf16.msra.mxu1 %v8231_v41  ;;  %v8285_v40 = vcombine.low %v595_v26, %v599_v27  ;;  %v8287_v41 = vcombine.low %v596_v28, %v600_v29  ;;  %v651_v26 = vld [vmem:[%s9423_s17 + $0xdc0] sm:$0xff]  ;;  %v652_v28 = vld [vmem:[%s9423_s17 + $0xdc8] sm:$0xff] }
 0x100   : > { %6559 = vmatprep.subr.bf16.mxu0 %v8238_v42  ;;  %6887 = vmatprep.subr.bf16.mxu1 %v8240_v43  ;;  %v8294_v42 = vcombine.high %v603_v34, %v607_v35  ;;  %v8296_v43 = vcombine.high %v604_v37, %v608_v38  ;;  %v655_v27 = vld [vmem:[%s9423_s17 + $0xde0] sm:$0xff]  ;;  %v656_v29 = vld [vmem:[%s9423_s17 + $0xde8] sm:$0xff] }
 0x103   : > { %6560 = vmatpush1.bf16.msra.mxu0 %v8237_v48  ;;  %6888 = vmatpush1.bf16.msra.mxu1 %v8239_v49  ;;  %v8293_v48 = vcombine.low %v603_v34, %v607_v35  ;;  %v8295_v49 = vcombine.low %v604_v37, %v608_v38  ;;  %v659_v34 = vld [vmem:[%s9423_s17 + $0xe00] sm:$0xff]  ;;  %v660_v37 = vld [vmem:[%s9423_s17 + $0xe08] sm:$0xff] }
 0x104   : > { %6561 = vmatprep.subr.bf16.mxu0 %v8246_v50  ;;  %6889 = vmatprep.subr.bf16.mxu1 %v8248_v51  ;;  %v8302_v50 = vcombine.high %v611_v25, %v615_v44  ;;  %v8304_v51 = vcombine.high %v612_v46, %v616_v47  ;;  %v663_v35 = vld [vmem:[%s9423_s17 + $0xe20] sm:$0xff]  ;;  %v664_v38 = vld [vmem:[%s9423_s17 + $0xe28] sm:$0xff] }
 0x107   : > { %6562 = vmatpush1.bf16.msra.mxu0 %v8245_v58  ;;  %6890 = vmatpush1.bf16.msra.mxu1 %v8247_v59  ;;  %v8301_v58 = vcombine.low %v611_v25, %v615_v44  ;;  %v8303_v59 = vcombine.low %v612_v46, %v616_v47  ;;  %v667_v25 = vld [vmem:[%s9423_s17 + $0xe40] sm:$0xff]  ;;  %v668_v46 = vld [vmem:[%s9423_s17 + $0xe48] sm:$0xff] }
 0x108   : > { %6563 = vmatprep.subr.bf16.mxu0 %v8254_v60  ;;  %6891 = vmatprep.subr.bf16.mxu1 %v8256_v61  ;;  %v8310_v60 = vcombine.high %v619_v52, %v623_v54  ;;  %v8312_v61 = vcombine.high %v620_v55, %v624_v56  ;;  %v671_v44 = vld [vmem:[%s9423_s17 + $0xe60] sm:$0xff]  ;;  %v672_v47 = vld [vmem:[%s9423_s17 + $0xe68] sm:$0xff] }
 0x10b   : > { %6564 = vmatpush1.bf16.msra.mxu0 %v8253_v2  ;;  %6892 = vmatpush1.bf16.msra.mxu1 %v8255_v3  ;;  %v8309_v2 = vcombine.low %v619_v52, %v623_v54  ;;  %v8311_v3 = vcombine.low %v620_v55, %v624_v56  ;;  %v675_v52 = vld [vmem:[%s9423_s17 + $0xe80] sm:$0xff]  ;;  %v676_v55 = vld [vmem:[%s9423_s17 + $0xe88] sm:$0xff] }
 0x10c   : > { %6565 = vmatprep.subr.bf16.mxu0 %v8262_v4  ;;  %6893 = vmatprep.subr.bf16.mxu1 %v8264_v5  ;;  %v8318_v4 = vcombine.high %v627_v62, %v631_v63  ;;  %v8320_v5 = vcombine.high %v628_v0, %v632_v1  ;;  %v679_v54 = vld [vmem:[%s9423_s17 + $0xea0] sm:$0xff]  ;;  %v680_v56 = vld [vmem:[%s9423_s17 + $0xea8] sm:$0xff] }
 0x10f   : > { %6566 = vmatpush1.bf16.msra.mxu0 %v8261_v10  ;;  %6894 = vmatpush1.bf16.msra.mxu1 %v8263_v11  ;;  %v8317_v10 = vcombine.low %v627_v62, %v631_v63  ;;  %v8319_v11 = vcombine.low %v628_v0, %v632_v1  ;;  %v683_v62 = vld [vmem:[%s9423_s17 + $0xec0] sm:$0xff]  ;;  %v684_v0 = vld [vmem:[%s9423_s17 + $0xec8] sm:$0xff] }
 0x110   : > { %6567 = vmatprep.subr.bf16.mxu0 %v8270_v13  ;;  %6895 = vmatprep.subr.bf16.mxu1 %v8272_v14  ;;  %v8326_v13 = vcombine.high %v635_v6, %v639_v7  ;;  %v8328_v14 = vcombine.high %v636_v8, %v640_v9  ;;  %v687_v63 = vld [vmem:[%s9423_s17 + $0xee0] sm:$0xff]  ;;  %v688_v1 = vld [vmem:[%s9423_s17 + $0xee8] sm:$0xff] }
 0x113   : > { %6568 = vmatpush1.bf16.msra.mxu0 %v8269_v53  ;;  %6896 = vmatpush1.bf16.msra.mxu1 %v8271_v20  ;;  %v8325_v53 = vcombine.low %v635_v6, %v639_v7  ;;  %v8327_v20 = vcombine.low %v636_v8, %v640_v9  ;;  %v691_v6 = vld [vmem:[%s9423_s17 + $0xf00] sm:$0xff]  ;;  %v692_v8 = vld [vmem:[%s9423_s17 + $0xf08] sm:$0xff] }
 0x114   : > { %6569 = vmatprep.subr.bf16.mxu0 %v8278_v23  ;;  %6897 = vmatprep.subr.bf16.mxu1 %v8280_v24  ;;  %v8334_v23 = vcombine.high %v643_v16, %v647_v17  ;;  %v8336_v24 = vcombine.high %v644_v18, %v648_v19  ;;  %v695_v7 = vld [vmem:[%s9423_s17 + $0xf20] sm:$0xff]  ;;  %v696_v9 = vld [vmem:[%s9423_s17 + $0xf28] sm:$0xff] }
 0x117   : > { %6570 = vmatpush1.bf16.msra.mxu0 %v8277_v15  ;;  %6898 = vmatpush1.bf16.msra.mxu1 %v8279_v30  ;;  %v8333_v15 = vcombine.low %v643_v16, %v647_v17  ;;  %v8335_v30 = vcombine.low %v644_v18, %v648_v19  ;;  %v699_v16 = vld [vmem:[%s9423_s17 + $0xf40] sm:$0xff]  ;;  %v700_v18 = vld [vmem:[%s9423_s17 + $0xf48] sm:$0xff] }
 0x118   : > { %6580 = vmatprep.subr.bf16.mxu0 %v8286_v32  ;;  %6908 = vmatprep.subr.bf16.mxu1 %v8288_v33  ;;  %v8342_v32 = vcombine.high %v651_v26, %v655_v27  ;;  %v8344_v33 = vcombine.high %v652_v28, %v656_v29  ;;  %v703_v17 = vld [vmem:[%s9423_s17 + $0xf60] sm:$0xff]  ;;  %v704_v19 = vld [vmem:[%s9423_s17 + $0xf68] sm:$0xff] }
 0x11a   : > { %6572 = vmatmul.mubr.bf16.vlgmr.msra.gmra.mrb[0].mxu0 %v9678_v36  ;;  %6900 = vmatmul.mubr.bf16.vlgmr.msra.gmra.mrb[0].mxu1 %v9678_v36 }
 0x11b   : > { %6581 = vmatpush1.bf16.msra.mxu0 %v8285_v40  ;;  %6909 = vmatpush1.bf16.msra.mxu1 %v8287_v41  ;;  %v8341_v40 = vcombine.low %v651_v26, %v655_v27  ;;  %v8343_v41 = vcombine.low %v652_v28, %v656_v29  ;;  %v707_v26 = vld [vmem:[%s9423_s17 + $0xf80] sm:$0xff]  ;;  %v708_v28 = vld [vmem:[%s9423_s17 + $0xf88] sm:$0xff] }
 0x11c   : > { %6582 = vmatprep.subr.bf16.mxu0 %v8294_v42  ;;  %6910 = vmatprep.subr.bf16.mxu1 %v8296_v43  ;;  %v8350_v42 = vcombine.high %v659_v34, %v663_v35  ;;  %v8352_v43 = vcombine.high %v660_v37, %v664_v38  ;;  %v711_v27 = vld [vmem:[%s9423_s17 + $0xfa0] sm:$0xff]  ;;  %v712_v29 = vld [vmem:[%s9423_s17 + $0xfa8] sm:$0xff] }
 0x11d   : > { %6612 = vmatprep.mubr.bf16.mxu0 %v9691_v45  ;;  %6940 = vmatprep.mubr.bf16.mxu1 %v9691_v45 }
 0x11f   : > { %6583 = vmatpush1.bf16.msra.mxu0 %v8293_v48  ;;  %6911 = vmatpush1.bf16.msra.mxu1 %v8295_v49  ;;  %v8349_v48 = vcombine.low %v659_v34, %v663_v35  ;;  %v8351_v49 = vcombine.low %v660_v37, %v664_v38  ;;  %v715_v34 = vld [vmem:[%s9423_s17 + $0xfc0] sm:$0xff]  ;;  %v716_v37 = vld [vmem:[%s9423_s17 + $0xfc8] sm:$0xff] }
 0x120   : > { %6584 = vmatprep.subr.bf16.mxu0 %v8302_v50  ;;  %6912 = vmatprep.subr.bf16.mxu1 %v8304_v51  ;;  %v8358_v50 = vcombine.high %v667_v25, %v671_v44  ;;  %v8360_v51 = vcombine.high %v668_v46, %v672_v47  ;;  %v719_v35 = vld [vmem:[%s9423_s17 + $0xfe0] sm:$0xff]  ;;  %v720_v38 = vld [vmem:[%s9423_s17 + $0xfe8] sm:$0xff] }
 0x123   : > { %6585 = vmatpush1.bf16.msra.mxu0 %v8301_v58  ;;  %6913 = vmatpush1.bf16.msra.mxu1 %v8303_v59  ;;  %v8357_v58 = vcombine.low %v667_v25, %v671_v44  ;;  %v8359_v59 = vcombine.low %v668_v46, %v672_v47  ;;  %v723_v25 = vld [vmem:[%s9423_s17 + $0x1000] sm:$0xff]  ;;  %v724_v46 = vld [vmem:[%s9423_s17 + $0x1008] sm:$0xff] }
 0x124   : > { %6586 = vmatprep.subr.bf16.mxu0 %v8310_v60  ;;  %6914 = vmatprep.subr.bf16.mxu1 %v8312_v61  ;;  %v8366_v60 = vcombine.high %v675_v52, %v679_v54  ;;  %v8368_v61 = vcombine.high %v676_v55, %v680_v56  ;;  %v727_v44 = vld [vmem:[%s9423_s17 + $0x1020] sm:$0xff]  ;;  %v728_v47 = vld [vmem:[%s9423_s17 + $0x1028] sm:$0xff] }
 0x127   : > { %6587 = vmatpush1.bf16.msra.mxu0 %v8309_v2  ;;  %6915 = vmatpush1.bf16.msra.mxu1 %v8311_v3  ;;  %v8365_v2 = vcombine.low %v675_v52, %v679_v54  ;;  %v8367_v3 = vcombine.low %v676_v55, %v680_v56  ;;  %v731_v52 = vld [vmem:[%s9423_s17 + $0x1040] sm:$0xff]  ;;  %v9759_v55 = vcombine.low %v9685_v39, %v9685_v39  ;;  %v732_v56 = vld [vmem:[%s9423_s17 + $0x1048] sm:$0xff] }
 0x128   : > { %6588 = vmatprep.subr.bf16.mxu0 %v8318_v4  ;;  %6916 = vmatprep.subr.bf16.mxu1 %v8320_v5  ;;  %v8374_v4 = vcombine.high %v683_v62, %v687_v63  ;;  %v8376_v5 = vcombine.high %v684_v0, %v688_v1  ;;  %v735_v54 = vld [vmem:[%s9423_s17 + $0x1060] sm:$0xff] }
 0x129   : > { %v739_v39 = vld [vmem:[%s9423_s17 + $0x1080] sm:$0xff] }
 0x12b   : > { %6589 = vmatpush1.bf16.msra.mxu0 %v8317_v10  ;;  %6917 = vmatpush1.bf16.msra.mxu1 %v8319_v11  ;;  %v8373_v10 = vcombine.low %v683_v62, %v687_v63  ;;  %v8375_v11 = vcombine.low %v684_v0, %v688_v1  ;;  %v8422_v62 = vcombine.high %v731_v52, %v735_v54  ;;  %v743_v0 = vld [vmem:[%s9423_s17 + $0x10a0] sm:$0xff] }
 0x12c   : > { %6590 = vmatprep.subr.bf16.mxu0 %v8326_v13  ;;  %6918 = vmatprep.subr.bf16.mxu1 %v8328_v14  ;;  %v8382_v13 = vcombine.high %v691_v6, %v695_v7  ;;  %v8384_v14 = vcombine.high %v692_v8, %v696_v9 }
 0x12f   : > { %6591 = vmatpush1.bf16.msra.mxu0 %v8325_v53  ;;  %6919 = vmatpush1.bf16.msra.mxu1 %v8327_v20  ;;  %v8381_v53 = vcombine.low %v691_v6, %v695_v7  ;;  %v8383_v20 = vcombine.low %v692_v8, %v696_v9  ;;  %v8430_v6 = vcombine.high %v739_v39, %v743_v0  ;;  %v747_v8 = vld [vmem:[%s9423_s17 + $0x10c0] sm:$0xff] }
 0x130   : > { %6592 = vmatprep.subr.bf16.mxu0 %v8334_v23  ;;  %6920 = vmatprep.subr.bf16.mxu1 %v8336_v24  ;;  %v8390_v23 = vcombine.high %v699_v16, %v703_v17  ;;  %v8392_v24 = vcombine.high %v700_v18, %v704_v19  ;;  %v751_v9 = vld [vmem:[%s9423_s17 + $0x10e0] sm:$0xff] }
 0x133   : > { %6593 = vmatpush1.bf16.msra.mxu0 %v8333_v15  ;;  %6921 = vmatpush1.bf16.msra.mxu1 %v8335_v30  ;;  %v8389_v15 = vcombine.low %v699_v16, %v703_v17  ;;  %v8391_v30 = vcombine.low %v700_v18, %v704_v19  ;;  %v8438_v16 = vcombine.high %v747_v8, %v751_v9  ;;  %v755_v18 = vld [vmem:[%s9423_s17 + $0x1100] sm:$0xff] }
 0x134   : > { %6594 = vmatprep.subr.bf16.mxu0 %v8342_v32  ;;  %6922 = vmatprep.subr.bf16.mxu1 %v8344_v33  ;;  %v8398_v32 = vcombine.high %v707_v26, %v711_v27  ;;  %v8400_v33 = vcombine.high %v708_v28, %v712_v29  ;;  %v759_v19 = vld [vmem:[%s9423_s17 + $0x1120] sm:$0xff] }
 0x137   : > { %6595 = vmatpush1.bf16.msra.mxu0 %v8341_v40  ;;  %6923 = vmatpush1.bf16.msra.mxu1 %v8343_v41  ;;  %v8397_v40 = vcombine.low %v707_v26, %v711_v27  ;;  %v8399_v41 = vcombine.low %v708_v28, %v712_v29  ;;  %v8446_v26 = vcombine.high %v755_v18, %v759_v19  ;;  %v763_v28 = vld [vmem:[%s9423_s17 + $0x1140] sm:$0xff] }
 0x138   : > { %6596 = vmatprep.subr.bf16.mxu0 %v8350_v42  ;;  %6924 = vmatprep.subr.bf16.mxu1 %v8352_v43  ;;  %v8406_v42 = vcombine.high %v715_v34, %v719_v35  ;;  %v8408_v43 = vcombine.high %v716_v37, %v720_v38  ;;  %v767_v29 = vld [vmem:[%s9423_s17 + $0x1160] sm:$0xff] }
 0x13b   : > { %6597 = vmatpush1.bf16.msra.mxu0 %v8349_v48  ;;  %6925 = vmatpush1.bf16.msra.mxu1 %v8351_v49  ;;  %v8405_v48 = vcombine.low %v715_v34, %v719_v35  ;;  %v8407_v49 = vcombine.low %v716_v37, %v720_v38  ;;  %v8454_v34 = vcombine.high %v763_v28, %v767_v29  ;;  %v771_v37 = vld [vmem:[%s9423_s17 + $0x1180] sm:$0xff] }
 0x13c   : > { %6598 = vmatprep.subr.bf16.mxu0 %v8358_v50  ;;  %6926 = vmatprep.subr.bf16.mxu1 %v8360_v51  ;;  %v8414_v50 = vcombine.high %v723_v25, %v727_v44  ;;  %v8416_v51 = vcombine.high %v724_v46, %v728_v47  ;;  %v775_v38 = vld [vmem:[%s9423_s17 + $0x11a0] sm:$0xff] }
 0x13f   : > { %6599 = vmatpush1.bf16.msra.mxu0 %v8357_v58  ;;  %6927 = vmatpush1.bf16.msra.mxu1 %v8359_v59  ;;  %v736_v58 = vld [vmem:[%s9423_s17 + $0x1068] sm:$0xff]  ;;  %v9766_v59 = vld [vmem:[%s10706_s0 + $0x20] sm:$0xff] }
 0x140   : > { %6600 = vmatprep.subr.bf16.mxu0 %v8366_v60  ;;  %6928 = vmatprep.subr.bf16.mxu1 %v8368_v61  ;;  %v8413_v60 = vcombine.low %v723_v25, %v727_v44  ;;  %v8415_v61 = vcombine.low %v724_v46, %v728_v47  ;;  %v8424_v63 = vcombine.high %v732_v56, %v736_v58  ;;  %v779_v46 = vld [vmem:[%s9423_s17 + $0x11c0] sm:$0xff] }
 0x141   : > { %v9772_v1 = vcombine.high %v9766_v59, %v9766_v59  ;;  %v8462_v25 = vcombine.high %v771_v37, %v775_v38  ;;  %v783_v47 = vld [vmem:[%s9423_s17 + $0x11e0] sm:$0xff] }
 0x143   : > { %6601 = vmatpush1.bf16.msra.mxu0 %v8365_v2  ;;  %6929 = vmatpush1.bf16.msra.mxu1 %v8367_v3  ;;  %v740_v2 = vld [vmem:[%s9423_s17 + $0x1088] sm:$0xff] }
 0x144   : > { %6602 = vmatprep.subr.bf16.mxu0 %v8374_v4  ;;  %6930 = vmatprep.subr.bf16.mxu1 %v8376_v5  ;;  %v744_v3 = vld [vmem:[%s9423_s17 + $0x10a8] sm:$0xff]  ;;  %v8421_v4 = vcombine.low %v731_v52, %v735_v54  ;;  %v8423_v5 = vcombine.low %v732_v56, %v736_v58  ;;  %v8470_v52 = vcombine.high %v779_v46, %v783_v47  ;;  %v787_v56 = vld [vmem:[%s9423_s17 + $0x1200] sm:$0xff] }
 0x145   : > { %v8432_v7 = vcombine.high %v740_v2, %v744_v3  ;;  %v791_v58 = vld [vmem:[%s9423_s17 + $0x1220] sm:$0xff] }
 0x147   : > { %6603 = vmatpush1.bf16.msra.mxu0 %v8373_v10  ;;  %6931 = vmatpush1.bf16.msra.mxu1 %v8375_v11  ;;  %v748_v10 = vld [vmem:[%s9423_s17 + $0x10c8] sm:$0xff] }
 0x148   : > { %6604 = vmatprep.subr.bf16.mxu0 %v8382_v13  ;;  %6932 = vmatprep.subr.bf16.mxu1 %v8384_v14  ;;  %v752_v11 = vld [vmem:[%s9423_s17 + $0x10e8] sm:$0xff]  ;;  %v8429_v13 = vcombine.low %v739_v39, %v743_v0  ;;  %v8431_v14 = vcombine.low %v740_v2, %v744_v3  ;;  %v8478_v39 = vcombine.high %v787_v56, %v791_v58  ;;  %v795_v2 = vld [vmem:[%s9423_s17 + $0x1240] sm:$0xff] }
 0x149   : > { %v8440_v17 = vcombine.high %v748_v10, %v752_v11  ;;  %v799_v3 = vld [vmem:[%s9423_s17 + $0x1260] sm:$0xff] }
 0x14b   : > { %6605 = vmatpush1.bf16.msra.mxu0 %v8381_v53  ;;  %6933 = vmatpush1.bf16.msra.mxu1 %v8383_v20  ;;  %v756_v53 = vld [vmem:[%s9423_s17 + $0x1108] sm:$0xff] }
 0x14c   : > { %6606 = vmatprep.subr.bf16.mxu0 %v8390_v23  ;;  %6934 = vmatprep.subr.bf16.mxu1 %v8392_v24  ;;  %v760_v20 = vld [vmem:[%s9423_s17 + $0x1128] sm:$0xff]  ;;  %v8437_v23 = vcombine.low %v747_v8, %v751_v9  ;;  %v8439_v24 = vcombine.low %v748_v10, %v752_v11  ;;  %v8486_v8 = vcombine.high %v795_v2, %v799_v3  ;;  %v803_v10 = vld [vmem:[%s9423_s17 + $0x1280] sm:$0xff] }
 0x14d   : > { %v8448_v27 = vcombine.high %v756_v53, %v760_v20  ;;  %v807_v11 = vld [vmem:[%s9423_s17 + $0x12a0] sm:$0xff] }
 0x14f   : > { %6607 = vmatpush1.bf16.msra.mxu0 %v8389_v15  ;;  %6935 = vmatpush1.bf16.msra.mxu1 %v8391_v30  ;;  %v764_v15 = vld [vmem:[%s9423_s17 + $0x1148] sm:$0xff] }
 0x150   : > { %6608 = vmatprep.subr.bf16.mxu0 %v8398_v32  ;;  %6936 = vmatprep.subr.bf16.mxu1 %v8400_v33  ;;  %v768_v30 = vld [vmem:[%s9423_s17 + $0x1168] sm:$0xff]  ;;  %v8445_v32 = vcombine.low %v755_v18, %v759_v19  ;;  %v8447_v33 = vcombine.low %v756_v53, %v760_v20  ;;  %v8494_v18 = vcombine.high %v803_v10, %v807_v11  ;;  %v811_v53 = vld [vmem:[%s9423_s17 + $0x12c0] sm:$0xff] }
 0x151   : > { %v8456_v35 = vcombine.high %v764_v15, %v768_v30  ;;  %v815_v20 = vld [vmem:[%s9423_s17 + $0x12e0] sm:$0xff] }
 0x153   : > { %6609 = vmatpush1.bf16.msra.mxu0 %v8397_v40  ;;  %6937 = vmatpush1.bf16.msra.mxu1 %v8399_v41  ;;  %v772_v40 = vld [vmem:[%s9423_s17 + $0x1188] sm:$0xff] }
 0x154   : > { %6610 = vmatprep.subr.bf16.mxu0 %v8406_v42  ;;  %6938 = vmatprep.subr.bf16.mxu1 %v8408_v43  ;;  %v776_v41 = vld [vmem:[%s9423_s17 + $0x11a8] sm:$0xff]  ;;  %v8453_v42 = vcombine.low %v763_v28, %v767_v29  ;;  %v8455_v43 = vcombine.low %v764_v15, %v768_v30  ;;  %v8502_v28 = vcombine.high %v811_v53, %v815_v20  ;;  %v819_v15 = vld [vmem:[%s9423_s17 + $0x1300] sm:$0xff] }
 0x155   : > { %v8464_v44 = vcombine.high %v772_v40, %v776_v41  ;;  %v823_v30 = vld [vmem:[%s9423_s17 + $0x1320] sm:$0xff] }
 0x157   : > { %6611 = vmatpush1.bf16.msra.mxu0 %v8405_v48  ;;  %6939 = vmatpush1.bf16.msra.mxu1 %v8407_v49  ;;  %v780_v48 = vld [vmem:[%s9423_s17 + $0x11c8] sm:$0xff] }
 0x158   : > { %6621 = vmatprep.subr.bf16.mxu0 %v8414_v50  ;;  %6949 = vmatprep.subr.bf16.mxu1 %v8416_v51  ;;  %v784_v49 = vld [vmem:[%s9423_s17 + $0x11e8] sm:$0xff]  ;;  %v8461_v50 = vcombine.low %v771_v37, %v775_v38  ;;  %v8463_v51 = vcombine.low %v772_v40, %v776_v41  ;;  %v8510_v37 = vcombine.high %v819_v15, %v823_v30  ;;  %v827_v40 = vld [vmem:[%s9423_s17 + $0x1340] sm:$0xff] }
 0x159   : > { %v8472_v54 = vcombine.high %v780_v48, %v784_v49  ;;  %v831_v41 = vld [vmem:[%s9423_s17 + $0x1360] sm:$0xff] }
 0x15a   : > { %6613 = vmatmul.mubr.bf16.vlgmr.msra.gmra.mrb[0].mxu0 %v9759_v55  ;;  %6941 = vmatmul.mubr.bf16.vlgmr.msra.gmra.mrb[0].mxu1 %v9759_v55 }
 0x15b   : > { %6622 = vmatpush1.bf16.msra.mxu0 %v8413_v60  ;;  %6950 = vmatpush1.bf16.msra.mxu1 %v8415_v61  ;;  %v788_v60 = vld [vmem:[%s9423_s17 + $0x1208] sm:$0xff] }
 0x15c   : > { %6623 = vmatprep.subr.bf16.mxu0 %v8422_v62  ;;  %6951 = vmatprep.subr.bf16.mxu1 %v8424_v63  ;;  %v792_v61 = vld [vmem:[%s9423_s17 + $0x1228] sm:$0xff]  ;;  %v8469_v62 = vcombine.low %v779_v46, %v783_v47  ;;  %v8471_v63 = vcombine.low %v780_v48, %v784_v49  ;;  %v8518_v46 = vcombine.high %v827_v40, %v831_v41  ;;  %v835_v48 = vld [vmem:[%s9423_s17 + $0x1380] sm:$0xff] }
 0x15d   : > { %6653 = vmatprep.mubr.bf16.mxu0 %v9772_v1  ;;  %6981 = vmatprep.mubr.bf16.mxu1 %v9772_v1  ;;  %v8480_v0 = vcombine.high %v788_v60, %v792_v61  ;;  %v839_v49 = vld [vmem:[%s9423_s17 + $0x13a0] sm:$0xff] }
 0x15f   : > { %6624 = vmatpush1.bf16.msra.mxu0 %v8421_v4  ;;  %6952 = vmatpush1.bf16.msra.mxu1 %v8423_v5  ;;  %v796_v4 = vld [vmem:[%s9423_s17 + $0x1248] sm:$0xff] }
 0x160   : > { %6625 = vmatprep.subr.bf16.mxu0 %v8430_v6  ;;  %6953 = vmatprep.subr.bf16.mxu1 %v8432_v7  ;;  %v800_v5 = vld [vmem:[%s9423_s17 + $0x1268] sm:$0xff]  ;;  %v8477_v6 = vcombine.low %v787_v56, %v791_v58  ;;  %v8479_v7 = vcombine.low %v788_v60, %v792_v61  ;;  %v8526_v56 = vcombine.high %v835_v48, %v839_v49  ;;  %v843_v60 = vld [vmem:[%s9423_s17 + $0x13c0] sm:$0xff] }
 0x161   : > { %v8488_v9 = vcombine.high %v796_v4, %v800_v5  ;;  %v847_v61 = vld [vmem:[%s9423_s17 + $0x13e0] sm:$0xff] }
 0x163   : > { %6626 = vmatpush1.bf16.msra.mxu0 %v8429_v13  ;;  %6954 = vmatpush1.bf16.msra.mxu1 %v8431_v14  ;;  %v804_v13 = vld [vmem:[%s9423_s17 + $0x1288] sm:$0xff] }
 0x164   : > { %6627 = vmatprep.subr.bf16.mxu0 %v8438_v16  ;;  %6955 = vmatprep.subr.bf16.mxu1 %v8440_v17  ;;  %v808_v14 = vld [vmem:[%s9423_s17 + $0x12a8] sm:$0xff]  ;;  %v8485_v16 = vcombine.low %v795_v2, %v799_v3  ;;  %v8487_v17 = vcombine.low %v796_v4, %v800_v5  ;;  %v8534_v2 = vcombine.high %v843_v60, %v847_v61  ;;  %v851_v4 = vld [vmem:[%s9423_s17 + $0x1400] sm:$0xff] }
 0x165   : > { %v8496_v19 = vcombine.high %v804_v13, %v808_v14  ;;  %v855_v5 = vld [vmem:[%s9423_s17 + $0x1420] sm:$0xff] }
 0x167   : > { %6628 = vmatpush1.bf16.msra.mxu0 %v8437_v23  ;;  %6956 = vmatpush1.bf16.msra.mxu1 %v8439_v24  ;;  %v812_v23 = vld [vmem:[%s9423_s17 + $0x12c8] sm:$0xff] }
 0x168   : > { %6629 = vmatprep.subr.bf16.mxu0 %v8446_v26  ;;  %6957 = vmatprep.subr.bf16.mxu1 %v8448_v27  ;;  %v816_v24 = vld [vmem:[%s9423_s17 + $0x12e8] sm:$0xff]  ;;  %v8493_v26 = vcombine.low %v803_v10, %v807_v11  ;;  %v8495_v27 = vcombine.low %v804_v13, %v808_v14  ;;  %v8542_v10 = vcombine.high %v851_v4, %v855_v5  ;;  %v859_v13 = vld [vmem:[%s9423_s17 + $0x1440] sm:$0xff] }
 0x169   : > { %v8504_v29 = vcombine.high %v812_v23, %v816_v24  ;;  %v863_v14 = vld [vmem:[%s9423_s17 + $0x1460] sm:$0xff] }
 0x16b   : > { %6630 = vmatpush1.bf16.msra.mxu0 %v8445_v32  ;;  %6958 = vmatpush1.bf16.msra.mxu1 %v8447_v33  ;;  %v820_v32 = vld [vmem:[%s9423_s17 + $0x1308] sm:$0xff] }
 0x16c   : > { %6631 = vmatprep.subr.bf16.mxu0 %v8454_v34  ;;  %6959 = vmatprep.subr.bf16.mxu1 %v8456_v35  ;;  %v824_v33 = vld [vmem:[%s9423_s17 + $0x1328] sm:$0xff]  ;;  %v8501_v34 = vcombine.low %v811_v53, %v815_v20  ;;  %v8503_v35 = vcombine.low %v812_v23, %v816_v24  ;;  %v8541_v53 = vcombine.low %v851_v4, %v855_v5 }
 0x16d   : > { %v8512_v38 = vcombine.high %v820_v32, %v824_v33  ;;  %v8550_v23 = vcombine.high %v859_v13, %v863_v14 }
 0x16f   : > { %6632 = vmatpush1.bf16.msra.mxu0 %v8453_v42  ;;  %6960 = vmatpush1.bf16.msra.mxu1 %v8455_v43  ;;  %v828_v42 = vld [vmem:[%s9423_s17 + $0x1348] sm:$0xff] }
 0x170   : > { %6633 = vmatprep.subr.bf16.mxu0 %v8462_v25  ;;  %6961 = vmatprep.subr.bf16.mxu1 %v8464_v44  ;;  %v832_v43 = vld [vmem:[%s9423_s17 + $0x1368] sm:$0xff]  ;;  %v8509_v25 = vcombine.low %v819_v15, %v823_v30  ;;  %v8511_v44 = vcombine.low %v820_v32, %v824_v33  ;;  %v8549_v15 = vcombine.low %v859_v13, %v863_v14 }
 0x171   : > { %v8520_v47 = vcombine.high %v828_v42, %v832_v43 }
 0x173   : > { %6634 = vmatpush1.bf16.msra.mxu0 %v8461_v50  ;;  %6962 = vmatpush1.bf16.msra.mxu1 %v8463_v51  ;;  %v836_v50 = vld [vmem:[%s9423_s17 + $0x1388] sm:$0xff] }
 0x174   : > { %6635 = vmatprep.subr.bf16.mxu0 %v8470_v52  ;;  %6963 = vmatprep.subr.bf16.mxu1 %v8472_v54  ;;  %v840_v51 = vld [vmem:[%s9423_s17 + $0x13a8] sm:$0xff]  ;;  %v8517_v52 = vcombine.low %v827_v40, %v831_v41  ;;  %v8519_v54 = vcombine.low %v828_v42, %v832_v43 }
 0x175   : > { %v8528_v58 = vcombine.high %v836_v50, %v840_v51 }
 0x177   : > { %6636 = vmatpush1.bf16.msra.mxu0 %v8469_v62  ;;  %6964 = vmatpush1.bf16.msra.mxu1 %v8471_v63  ;;  %v844_v62 = vld [vmem:[%s9423_s17 + $0x13c8] sm:$0xff] }
 0x178   : > { %6637 = vmatprep.subr.bf16.mxu0 %v8478_v39  ;;  %6965 = vmatprep.subr.bf16.mxu1 %v8480_v0  ;;  %v848_v63 = vld [vmem:[%s9423_s17 + $0x13e8] sm:$0xff]  ;;  %v8525_v39 = vcombine.low %v835_v48, %v839_v49  ;;  %v8527_v0 = vcombine.low %v836_v50, %v840_v51 }
 0x179   : > { %v8536_v3 = vcombine.high %v844_v62, %v848_v63 }
 0x17b   : > { %6638 = vmatpush1.bf16.msra.mxu0 %v8477_v6  ;;  %6966 = vmatpush1.bf16.msra.mxu1 %v8479_v7  ;;  %v852_v6 = vld [vmem:[%s9423_s17 + $0x1408] sm:$0xff] }
 0x17c   : > { %6639 = vmatprep.subr.bf16.mxu0 %v8486_v8  ;;  %6967 = vmatprep.subr.bf16.mxu1 %v8488_v9  ;;  %v856_v7 = vld [vmem:[%s9423_s17 + $0x1428] sm:$0xff]  ;;  %v8533_v8 = vcombine.low %v843_v60, %v847_v61  ;;  %v8535_v9 = vcombine.low %v844_v62, %v848_v63 }
 0x17d   : > { %v8544_v11 = vcombine.high %v852_v6, %v856_v7  ;;  %v8543_v20 = vcombine.low %v852_v6, %v856_v7 }
 0x17f   : > { %6640 = vmatpush1.bf16.msra.mxu0 %v8485_v16  ;;  %6968 = vmatpush1.bf16.msra.mxu1 %v8487_v17  ;;  %v9840_v16 = vcombine.low %v9766_v59, %v9766_v59  ;;  %v860_v17 = vld [vmem:[%s9423_s17 + $0x1448] sm:$0xff]  ;;  %v867_v59 = vld [vmem:[%s9423_s17 + $0x1480] sm:$0xff] }
 0x180   : > { %6641 = vmatprep.subr.bf16.mxu0 %v8494_v18  ;;  %6969 = vmatprep.subr.bf16.mxu1 %v8496_v19  ;;  %v864_v18 = vld [vmem:[%s9423_s17 + $0x1468] sm:$0xff] }
 0x181   : > { %v9847_v19 = vld [vmem:[%s10706_s0 + $0x28] sm:$0xff]  ;;  %v8552_v24 = vcombine.high %v860_v17, %v864_v18  ;;  %v8551_v30 = vcombine.low %v860_v17, %v864_v18 }
 0x183   : > { %6642 = vmatpush1.bf16.msra.mxu0 %v8493_v26  ;;  %6970 = vmatpush1.bf16.msra.mxu1 %v8495_v27  ;;  %v871_v26 = vld [vmem:[%s9423_s17 + $0x14a0] sm:$0xff]  ;;  %v9853_v27 = vcombine.high %v9847_v19, %v9847_v19 }
 0x184   : > { %6643 = vmatprep.subr.bf16.mxu0 %v8502_v28  ;;  %6971 = vmatprep.subr.bf16.mxu1 %v8504_v29  ;;  %v868_v28 = vld [vmem:[%s9423_s17 + $0x1488] sm:$0xff]  ;;  %v8558_v32 = vcombine.high %v867_v59, %v871_v26  ;;  %v8557_v40 = vcombine.low %v867_v59, %v871_v26 }
 0x185   : > { %v872_v29 = vld [vmem:[%s9423_s17 + $0x14a8] sm:$0xff] }
 0x186   : > { %v8560_v33 = vcombine.high %v868_v28, %v872_v29  ;;  %v8559_v41 = vcombine.low %v868_v28, %v872_v29 }
 0x187   : > { %6644 = vmatpush1.bf16.msra.mxu0 %v8501_v34  ;;  %6972 = vmatpush1.bf16.msra.mxu1 %v8503_v35  ;;  %v875_v34 = vld [vmem:[%s9423_s17 + $0x14c0] sm:$0xff] }
 0x188   : > { %6645 = vmatprep.subr.bf16.mxu0 %v8510_v37  ;;  %6973 = vmatprep.subr.bf16.mxu1 %v8512_v38  ;;  %v879_v35 = vld [vmem:[%s9423_s17 + $0x14e0] sm:$0xff]  ;;  %v876_v37 = vld [vmem:[%s9423_s17 + $0x14c8] sm:$0xff] }
 0x189   : > { %v880_v38 = vld [vmem:[%s9423_s17 + $0x14e8] sm:$0xff]  ;;  %v8566_v42 = vcombine.high %v875_v34, %v879_v35  ;;  %v8565_v48 = vcombine.low %v875_v34, %v879_v35 }
 0x18a   : > { %v8568_v43 = vcombine.high %v876_v37, %v880_v38  ;;  %v8567_v49 = vcombine.low %v876_v37, %v880_v38 }
 0x18b   : > { %6646 = vmatpush1.bf16.msra.mxu0 %v8509_v25  ;;  %6974 = vmatpush1.bf16.msra.mxu1 %v8511_v44  ;;  %v883_v25 = vld [vmem:[%s9423_s17 + $0x1500] sm:$0xff] }
 0x18c   : > { %6647 = vmatprep.subr.bf16.mxu0 %v8518_v46  ;;  %6975 = vmatprep.subr.bf16.mxu1 %v8520_v47  ;;  %v887_v44 = vld [vmem:[%s9423_s17 + $0x1520] sm:$0xff]  ;;  %v884_v46 = vld [vmem:[%s9423_s17 + $0x1508] sm:$0xff] }
 0x18d   : > { %v888_v47 = vld [vmem:[%s9423_s17 + $0x1528] sm:$0xff]  ;;  %v8574_v50 = vcombine.high %v883_v25, %v887_v44  ;;  %v8573_v60 = vcombine.low %v883_v25, %v887_v44 }
 0x18e   : > { %v8576_v51 = vcombine.high %v884_v46, %v888_v47  ;;  %v8575_v61 = vcombine.low %v884_v46, %v888_v47 }
 0x18f   : > { %6648 = vmatpush1.bf16.msra.mxu0 %v8517_v52  ;;  %6976 = vmatpush1.bf16.msra.mxu1 %v8519_v54  ;;  %v891_v52 = vld [vmem:[%s9423_s17 + $0x1540] sm:$0xff] }
 0x190   : > { %6649 = vmatprep.subr.bf16.mxu0 %v8526_v56  ;;  %6977 = vmatprep.subr.bf16.mxu1 %v8528_v58  ;;  %v895_v54 = vld [vmem:[%s9423_s17 + $0x1560] sm:$0xff]  ;;  %v892_v56 = vld [vmem:[%s9423_s17 + $0x1548] sm:$0xff] }
 0x191   : > { %v896_v58 = vld [vmem:[%s9423_s17 + $0x1568] sm:$0xff]  ;;  %v8582_v62 = vcombine.high %v891_v52, %v895_v54  ;;  %v8581_v4 = vcombine.low %v891_v52, %v895_v54 }
 0x192   : > { %v8584_v63 = vcombine.high %v892_v56, %v896_v58  ;;  %v8583_v5 = vcombine.low %v892_v56, %v896_v58 }
 0x193   : > { %6650 = vmatpush1.bf16.msra.mxu0 %v8525_v39  ;;  %6978 = vmatpush1.bf16.msra.mxu1 %v8527_v0  ;;  %v899_v39 = vld [vmem:[%s9423_s17 + $0x1580] sm:$0xff] }
 0x194   : > { %6651 = vmatprep.subr.bf16.mxu0 %v8534_v2  ;;  %6979 = vmatprep.subr.bf16.mxu1 %v8536_v3  ;;  %v903_v0 = vld [vmem:[%s9423_s17 + $0x15a0] sm:$0xff]  ;;  %v900_v2 = vld [vmem:[%s9423_s17 + $0x1588] sm:$0xff] }
 0x195   : > { %v904_v3 = vld [vmem:[%s9423_s17 + $0x15a8] sm:$0xff]  ;;  %v8590_v6 = vcombine.high %v899_v39, %v903_v0  ;;  %v8589_v13 = vcombine.low %v899_v39, %v903_v0 }
 0x196   : > { %v8592_v7 = vcombine.high %v900_v2, %v904_v3  ;;  %v8591_v14 = vcombine.low %v900_v2, %v904_v3 }
 0x197   : > { %6652 = vmatpush1.bf16.msra.mxu0 %v8533_v8  ;;  %6980 = vmatpush1.bf16.msra.mxu1 %v8535_v9  ;;  %v907_v8 = vld [vmem:[%s9423_s17 + $0x15c0] sm:$0xff] }
 0x198   : > { %6662 = vmatprep.subr.bf16.mxu0 %v8542_v10  ;;  %6990 = vmatprep.subr.bf16.mxu1 %v8544_v11  ;;  %v911_v9 = vld [vmem:[%s9423_s17 + $0x15e0] sm:$0xff]  ;;  %v908_v10 = vld [vmem:[%s9423_s17 + $0x15c8] sm:$0xff] }
 0x199   : > { %v912_v11 = vld [vmem:[%s9423_s17 + $0x15e8] sm:$0xff]  ;;  %v8598_v17 = vcombine.high %v907_v8, %v911_v9  ;;  %v8597_v59 = vcombine.low %v907_v8, %v911_v9 }
 0x19a   : > { %6654 = vmatmul.mubr.bf16.vlgmr.msra.gmra.mrb[0].mxu0 %v9840_v16  ;;  %6982 = vmatmul.mubr.bf16.vlgmr.msra.gmra.mrb[0].mxu1 %v9840_v16  ;;  %v8600_v18 = vcombine.high %v908_v10, %v912_v11  ;;  %v8599_v26 = vcombine.low %v908_v10, %v912_v11 }
 0x19b   : > { %6663 = vmatpush1.bf16.msra.mxu0 %v8541_v53  ;;  %6991 = vmatpush1.bf16.msra.mxu1 %v8543_v20  ;;  %v915_v53 = vld [vmem:[%s9423_s17 + $0x1600] sm:$0xff] }
 0x19c   : > { %6664 = vmatprep.subr.bf16.mxu0 %v8550_v23  ;;  %6992 = vmatprep.subr.bf16.mxu1 %v8552_v24  ;;  %v919_v20 = vld [vmem:[%s9423_s17 + $0x1620] sm:$0xff]  ;;  %v916_v23 = vld [vmem:[%s9423_s17 + $0x1608] sm:$0xff] }
 0x19d   : > { %6694 = vmatprep.mubr.bf16.mxu0 %v9853_v27  ;;  %7022 = vmatprep.mubr.bf16.mxu1 %v9853_v27  ;;  %v920_v24 = vld [vmem:[%s9423_s17 + $0x1628] sm:$0xff]  ;;  %v8606_v28 = vcombine.high %v915_v53, %v919_v20  ;;  %v8605_v34 = vcombine.low %v915_v53, %v919_v20 }
 0x19e   : > { %v8608_v29 = vcombine.high %v916_v23, %v920_v24  ;;  %v8607_v35 = vcombine.low %v916_v23, %v920_v24 }
 0x19f   : > { %6665 = vmatpush1.bf16.msra.mxu0 %v8549_v15  ;;  %6993 = vmatpush1.bf16.msra.mxu1 %v8551_v30  ;;  %v923_v15 = vld [vmem:[%s9423_s17 + $0x1640] sm:$0xff] }
 0x1a0   : > { %6666 = vmatprep.subr.bf16.mxu0 %v8558_v32  ;;  %6994 = vmatprep.subr.bf16.mxu1 %v8560_v33  ;;  %v927_v30 = vld [vmem:[%s9423_s17 + $0x1660] sm:$0xff]  ;;  %v924_v32 = vld [vmem:[%s9423_s17 + $0x1648] sm:$0xff] }
 0x1a1   : > { %v928_v33 = vld [vmem:[%s9423_s17 + $0x1668] sm:$0xff]  ;;  %v8614_v37 = vcombine.high %v923_v15, %v927_v30  ;;  %v8613_v25 = vcombine.low %v923_v15, %v927_v30 }
 0x1a2   : > { %v8616_v38 = vcombine.high %v924_v32, %v928_v33  ;;  %v8615_v44 = vcombine.low %v924_v32, %v928_v33 }
 0x1a3   : > { %6667 = vmatpush1.bf16.msra.mxu0 %v8557_v40  ;;  %6995 = vmatpush1.bf16.msra.mxu1 %v8559_v41  ;;  %v931_v40 = vld [vmem:[%s9423_s17 + $0x1680] sm:$0xff] }
 0x1a4   : > { %6668 = vmatprep.subr.bf16.mxu0 %v8566_v42  ;;  %6996 = vmatprep.subr.bf16.mxu1 %v8568_v43  ;;  %v935_v41 = vld [vmem:[%s9423_s17 + $0x16a0] sm:$0xff]  ;;  %v932_v42 = vld [vmem:[%s9423_s17 + $0x1688] sm:$0xff] }
 0x1a5   : > { %v936_v43 = vld [vmem:[%s9423_s17 + $0x16a8] sm:$0xff]  ;;  %v8622_v46 = vcombine.high %v931_v40, %v935_v41  ;;  %v8621_v52 = vcombine.low %v931_v40, %v935_v41 }
 0x1a6   : > { %v8624_v47 = vcombine.high %v932_v42, %v936_v43  ;;  %v8623_v54 = vcombine.low %v932_v42, %v936_v43 }
 0x1a7   : > { %6669 = vmatpush1.bf16.msra.mxu0 %v8565_v48  ;;  %6997 = vmatpush1.bf16.msra.mxu1 %v8567_v49  ;;  %v939_v48 = vld [vmem:[%s9423_s17 + $0x16c0] sm:$0xff] }
 0x1a8   : > { %6670 = vmatprep.subr.bf16.mxu0 %v8574_v50  ;;  %6998 = vmatprep.subr.bf16.mxu1 %v8576_v51  ;;  %v943_v49 = vld [vmem:[%s9423_s17 + $0x16e0] sm:$0xff]  ;;  %v940_v50 = vld [vmem:[%s9423_s17 + $0x16c8] sm:$0xff] }
 0x1a9   : > { %v944_v51 = vld [vmem:[%s9423_s17 + $0x16e8] sm:$0xff]  ;;  %v8630_v56 = vcombine.high %v939_v48, %v943_v49  ;;  %v8629_v39 = vcombine.low %v939_v48, %v943_v49  ;;  %v9928_v49 = vld [vmem:[%s10706_s0 + $0x30] sm:$0xff] }
 0x1aa   : > { %v8632_v58 = vcombine.high %v940_v50, %v944_v51  ;;  %v8631_v0 = vcombine.low %v940_v50, %v944_v51  ;;  %v992_v48 = vld [vmem:[%s9423_s17 + $0x1868] sm:$0xff] }
 0x1ab   : > { %6671 = vmatpush1.bf16.msra.mxu0 %v8573_v60  ;;  %6999 = vmatpush1.bf16.msra.mxu1 %v8575_v61  ;;  %v947_v60 = vld [vmem:[%s9423_s17 + $0x1700] sm:$0xff] }
 0x1ac   : > { %6672 = vmatprep.subr.bf16.mxu0 %v8582_v62  ;;  %7000 = vmatprep.subr.bf16.mxu1 %v8584_v63  ;;  %v951_v61 = vld [vmem:[%s9423_s17 + $0x1720] sm:$0xff]  ;;  %v948_v62 = vld [vmem:[%s9423_s17 + $0x1708] sm:$0xff] }
 0x1ad   : > { %v952_v63 = vld [vmem:[%s9423_s17 + $0x1728] sm:$0xff]  ;;  %v8638_v2 = vcombine.high %v947_v60, %v951_v61  ;;  %v8637_v8 = vcombine.low %v947_v60, %v951_v61 }
 0x1ae   : > { %v8640_v3 = vcombine.high %v948_v62, %v952_v63  ;;  %v8639_v9 = vcombine.low %v948_v62, %v952_v63  ;;  %v996_v60 = vld [vmem:[%s9423_s17 + $0x1888] sm:$0xff] }
 0x1af   : > { %6673 = vmatpush1.bf16.msra.mxu0 %v8581_v4  ;;  %7001 = vmatpush1.bf16.msra.mxu1 %v8583_v5  ;;  %v955_v4 = vld [vmem:[%s9423_s17 + $0x1740] sm:$0xff]  ;;  %v1000_v61 = vld [vmem:[%s9423_s17 + $0x18a8] sm:$0xff] }
 0x1b0   : > { %6674 = vmatprep.subr.bf16.mxu0 %v8590_v6  ;;  %7002 = vmatprep.subr.bf16.mxu1 %v8592_v7  ;;  %v959_v5 = vld [vmem:[%s9423_s17 + $0x1760] sm:$0xff]  ;;  %v956_v6 = vld [vmem:[%s9423_s17 + $0x1748] sm:$0xff] }
 0x1b1   : > { %v960_v7 = vld [vmem:[%s9423_s17 + $0x1768] sm:$0xff]  ;;  %v8646_v10 = vcombine.high %v955_v4, %v959_v5  ;;  %v8645_v53 = vcombine.low %v955_v4, %v959_v5 }
 0x1b2   : > { %v8648_v11 = vcombine.high %v956_v6, %v960_v7  ;;  %v8647_v20 = vcombine.low %v956_v6, %v960_v7  ;;  %v1004_v4 = vld [vmem:[%s9423_s17 + $0x18c8] sm:$0xff]  ;;  %v8687_v7 = vcombine.low %v996_v60, %v1000_v61 }
 0x1b3   : > { %6675 = vmatpush1.bf16.msra.mxu0 %v8589_v13  ;;  %7003 = vmatpush1.bf16.msra.mxu1 %v8591_v14  ;;  %v963_v13 = vld [vmem:[%s9423_s17 + $0x1780] sm:$0xff]  ;;  %v1008_v5 = vld [vmem:[%s9423_s17 + $0x18e8] sm:$0xff] }
 0x1b4   : > { %6676 = vmatprep.subr.bf16.mxu0 %v8598_v17  ;;  %7004 = vmatprep.subr.bf16.mxu1 %v8600_v18  ;;  %v967_v14 = vld [vmem:[%s9423_s17 + $0x17a0] sm:$0xff]  ;;  %v964_v17 = vld [vmem:[%s9423_s17 + $0x1788] sm:$0xff] }
 0x1b5   : > { %v968_v18 = vld [vmem:[%s9423_s17 + $0x17a8] sm:$0xff]  ;;  %v8654_v23 = vcombine.high %v963_v13, %v967_v14  ;;  %v8653_v15 = vcombine.low %v963_v13, %v967_v14 }
 0x1b6   : > { %v8656_v24 = vcombine.high %v964_v17, %v968_v18  ;;  %v8655_v30 = vcombine.low %v964_v17, %v968_v18  ;;  %v1012_v13 = vld [vmem:[%s9423_s17 + $0x1908] sm:$0xff]  ;;  %v8695_v18 = vcombine.low %v1004_v4, %v1008_v5 }
 0x1b7   : > { %6677 = vmatpush1.bf16.msra.mxu0 %v8597_v59  ;;  %7005 = vmatpush1.bf16.msra.mxu1 %v8599_v26  ;;  %v971_v59 = vld [vmem:[%s9423_s17 + $0x17c0] sm:$0xff]  ;;  %v1016_v14 = vld [vmem:[%s9423_s17 + $0x1928] sm:$0xff] }
 0x1b8   : > { %6678 = vmatprep.subr.bf16.mxu0 %v8606_v28  ;;  %7006 = vmatprep.subr.bf16.mxu1 %v8608_v29  ;;  %v975_v26 = vld [vmem:[%s9423_s17 + $0x17e0] sm:$0xff]  ;;  %v972_v28 = vld [vmem:[%s9423_s17 + $0x17c8] sm:$0xff] }
 0x1b9   : > { %v976_v29 = vld [vmem:[%s9423_s17 + $0x17e8] sm:$0xff]  ;;  %v8662_v32 = vcombine.high %v971_v59, %v975_v26  ;;  %v8661_v40 = vcombine.low %v971_v59, %v975_v26 }
 0x1ba   : > { %v8664_v33 = vcombine.high %v972_v28, %v976_v29  ;;  %v8663_v41 = vcombine.low %v972_v28, %v976_v29  ;;  %v1020_v59 = vld [vmem:[%s9423_s17 + $0x1948] sm:$0xff]  ;;  %v8703_v29 = vcombine.low %v1012_v13, %v1016_v14 }
 0x1bb   : > { %6679 = vmatpush1.bf16.msra.mxu0 %v8605_v34  ;;  %7007 = vmatpush1.bf16.msra.mxu1 %v8607_v35  ;;  %v979_v34 = vld [vmem:[%s9423_s17 + $0x1800] sm:$0xff]  ;;  %v1024_v26 = vld [vmem:[%s9423_s17 + $0x1968] sm:$0xff] }
 0x1bc   : > { %6680 = vmatprep.subr.bf16.mxu0 %v8614_v37  ;;  %7008 = vmatprep.subr.bf16.mxu1 %v8616_v38  ;;  %v983_v35 = vld [vmem:[%s9423_s17 + $0x1820] sm:$0xff]  ;;  %v980_v37 = vld [vmem:[%s9423_s17 + $0x1808] sm:$0xff] }
 0x1bd   : > { %v984_v38 = vld [vmem:[%s9423_s17 + $0x1828] sm:$0xff]  ;;  %v8670_v42 = vcombine.high %v979_v34, %v983_v35  ;;  %v8669_v50 = vcombine.low %v979_v34, %v983_v35 }
 0x1be   : > { %v8672_v43 = vcombine.high %v980_v37, %v984_v38  ;;  %v8671_v51 = vcombine.low %v980_v37, %v984_v38  ;;  %v1028_v34 = vld [vmem:[%s9423_s17 + $0x1988] sm:$0xff]  ;;  %v8711_v38 = vcombine.low %v1020_v59, %v1024_v26 }
 0x1bf   : > { %6681 = vmatpush1.bf16.msra.mxu0 %v8613_v25  ;;  %7009 = vmatpush1.bf16.msra.mxu1 %v8615_v44  ;;  %v987_v25 = vld [vmem:[%s9423_s17 + $0x1840] sm:$0xff]  ;;  %v1032_v35 = vld [vmem:[%s9423_s17 + $0x19a8] sm:$0xff] }
 0x1c0   : > { %6682 = vmatprep.subr.bf16.mxu0 %v8622_v46  ;;  %7010 = vmatprep.subr.bf16.mxu1 %v8624_v47  ;;  %v991_v44 = vld [vmem:[%s9423_s17 + $0x1860] sm:$0xff]  ;;  %v9921_v46 = vcombine.low %v9847_v19, %v9847_v19  ;;  %v988_v47 = vld [vmem:[%s9423_s17 + $0x1848] sm:$0xff] }
 0x1c1   : > { %v995_v19 = vld [vmem:[%s9423_s17 + $0x1880] sm:$0xff]  ;;  %v8677_v62 = vcombine.low %v987_v25, %v991_v44  ;;  %v8679_v63 = vcombine.low %v988_v47, %v992_v48 }
 0x1c3   : > { %6683 = vmatpush1.bf16.msra.mxu0 %v8621_v52  ;;  %7011 = vmatpush1.bf16.msra.mxu1 %v8623_v54  ;;  %v8678_v52 = vcombine.high %v987_v25, %v991_v44  ;;  %v8680_v54 = vcombine.high %v988_v47, %v992_v48  ;;  %v1036_v25 = vld [vmem:[%s9423_s17 + $0x19c8] sm:$0xff]  ;;  %v8719_v48 = vcombine.low %v1028_v34, %v1032_v35 }
 0x1c4   : > { %6684 = vmatprep.subr.bf16.mxu0 %v8630_v56  ;;  %7012 = vmatprep.subr.bf16.mxu1 %v8632_v58  ;;  %v999_v56 = vld [vmem:[%s9423_s17 + $0x18a0] sm:$0xff]  ;;  %v9934_v58 = vcombine.high %v9928_v49, %v9928_v49  ;;  %v1040_v44 = vld [vmem:[%s9423_s17 + $0x19e8] sm:$0xff] }
 0x1c5   : > { %v8685_v6 = vcombine.low %v995_v19, %v999_v56 }
 0x1c7   : > { %6685 = vmatpush1.bf16.msra.mxu0 %v8629_v39  ;;  %7013 = vmatpush1.bf16.msra.mxu1 %v8631_v0  ;;  %v8686_v39 = vcombine.high %v995_v19, %v999_v56  ;;  %v8688_v0 = vcombine.high %v996_v60, %v1000_v61  ;;  %v1044_v19 = vld [vmem:[%s9423_s17 + $0x1a08] sm:$0xff]  ;;  %v8727_v61 = vcombine.low %v1036_v25, %v1040_v44 }
 0x1c8   : > { %6686 = vmatprep.subr.bf16.mxu0 %v8638_v2  ;;  %7014 = vmatprep.subr.bf16.mxu1 %v8640_v3  ;;  %v1003_v2 = vld [vmem:[%s9423_s17 + $0x18c0] sm:$0xff]  ;;  %v1048_v56 = vld [vmem:[%s9423_s17 + $0x1a28] sm:$0xff] }
 0x1c9   : > { %v1007_v3 = vld [vmem:[%s9423_s17 + $0x18e0] sm:$0xff] }
 0x1ca   : > { %v8693_v17 = vcombine.low %v1003_v2, %v1007_v3 }
 0x1cb   : > { %6687 = vmatpush1.bf16.msra.mxu0 %v8637_v8  ;;  %7015 = vmatpush1.bf16.msra.mxu1 %v8639_v9  ;;  %v8694_v8 = vcombine.high %v1003_v2, %v1007_v3  ;;  %v8696_v9 = vcombine.high %v1004_v4, %v1008_v5  ;;  %v1052_v2 = vld [vmem:[%s9423_s17 + $0x1a48] sm:$0xff]  ;;  %v8735_v5 = vcombine.low %v1044_v19, %v1048_v56 }
 0x1cc   : > { %6688 = vmatprep.subr.bf16.mxu0 %v8646_v10  ;;  %7016 = vmatprep.subr.bf16.mxu1 %v8648_v11  ;;  %v1011_v10 = vld [vmem:[%s9423_s17 + $0x1900] sm:$0xff]  ;;  %v1056_v3 = vld [vmem:[%s9423_s17 + $0x1a68] sm:$0xff] }
 0x1cd   : > { %v1015_v11 = vld [vmem:[%s9423_s17 + $0x1920] sm:$0xff] }
 0x1ce   : > { %v8701_v28 = vcombine.low %v1011_v10, %v1015_v11 }
 0x1cf   : > { %6689 = vmatpush1.bf16.msra.mxu0 %v8645_v53  ;;  %7017 = vmatpush1.bf16.msra.mxu1 %v8647_v20  ;;  %v8702_v53 = vcombine.high %v1011_v10, %v1015_v11  ;;  %v8704_v20 = vcombine.high %v1012_v13, %v1016_v14  ;;  %v1060_v10 = vld [vmem:[%s9423_s17 + $0x1a88] sm:$0xff]  ;;  %v8743_v14 = vcombine.low %v1052_v2, %v1056_v3 }
 0x1d0   : > { %6690 = vmatprep.subr.bf16.mxu0 %v8654_v23  ;;  %7018 = vmatprep.subr.bf16.mxu1 %v8656_v24  ;;  %v1019_v23 = vld [vmem:[%s9423_s17 + $0x1940] sm:$0xff]  ;;  %v1064_v11 = vld [vmem:[%s9423_s17 + $0x1aa8] sm:$0xff] }
 0x1d1   : > { %v1023_v24 = vld [vmem:[%s9423_s17 + $0x1960] sm:$0xff] }
 0x1d2   : > { %v8709_v37 = vcombine.low %v1019_v23, %v1023_v24 }
 0x1d3   : > { %6691 = vmatpush1.bf16.msra.mxu0 %v8653_v15  ;;  %7019 = vmatpush1.bf16.msra.mxu1 %v8655_v30  ;;  %v8710_v15 = vcombine.high %v1019_v23, %v1023_v24  ;;  %v8712_v30 = vcombine.high %v1020_v59, %v1024_v26  ;;  %v1068_v23 = vld [vmem:[%s9423_s17 + $0x1ac8] sm:$0xff]  ;;  %v8751_v26 = vcombine.low %v1060_v10, %v1064_v11 }
 0x1d4   : > { %6692 = vmatprep.subr.bf16.mxu0 %v8662_v32  ;;  %7020 = vmatprep.subr.bf16.mxu1 %v8664_v33  ;;  %v1027_v32 = vld [vmem:[%s9423_s17 + $0x1980] sm:$0xff]  ;;  %v1072_v24 = vld [vmem:[%s9423_s17 + $0x1ae8] sm:$0xff] }
 0x1d5   : > { %v1031_v33 = vld [vmem:[%s9423_s17 + $0x19a0] sm:$0xff] }
 0x1d6   : > { %v8717_v47 = vcombine.low %v1027_v32, %v1031_v33 }
 0x1d7   : > { %6693 = vmatpush1.bf16.msra.mxu0 %v8661_v40  ;;  %7021 = vmatpush1.bf16.msra.mxu1 %v8663_v41  ;;  %v8718_v40 = vcombine.high %v1027_v32, %v1031_v33  ;;  %v8720_v41 = vcombine.high %v1028_v34, %v1032_v35  ;;  %v1076_v32 = vld [vmem:[%s9423_s17 + $0x1b08] sm:$0xff]  ;;  %v8759_v35 = vcombine.low %v1068_v23, %v1072_v24 }
 0x1d8   : > { %6703 = vmatprep.subr.bf16.mxu0 %v8670_v42  ;;  %7031 = vmatprep.subr.bf16.mxu1 %v8672_v43  ;;  %v1035_v42 = vld [vmem:[%s9423_s17 + $0x19c0] sm:$0xff]  ;;  %v1080_v33 = vld [vmem:[%s9423_s17 + $0x1b28] sm:$0xff] }
 0x1d9   : > { %v1039_v43 = vld [vmem:[%s9423_s17 + $0x19e0] sm:$0xff] }
 0x1da   : > { %6695 = vmatmul.mubr.bf16.vlgmr.msra.gmra.mrb[0].mxu0 %v9921_v46  ;;  %7023 = vmatmul.mubr.bf16.vlgmr.msra.gmra.mrb[0].mxu1 %v9921_v46  ;;  %v8725_v60 = vcombine.low %v1035_v42, %v1039_v43 }
 0x1db   : > { %6704 = vmatpush1.bf16.msra.mxu0 %v8669_v50  ;;  %7032 = vmatpush1.bf16.msra.mxu1 %v8671_v51  ;;  %v8726_v50 = vcombine.high %v1035_v42, %v1039_v43  ;;  %v8728_v51 = vcombine.high %v1036_v25, %v1040_v44  ;;  %v1084_v42 = vld [vmem:[%s9423_s17 + $0x1b48] sm:$0xff]  ;;  %v8767_v44 = vcombine.low %v1076_v32, %v1080_v33 }
 0x1dc   : > { %6705 = vmatprep.subr.bf16.mxu0 %v8678_v52  ;;  %7033 = vmatprep.subr.bf16.mxu1 %v8680_v54  ;;  %v1043_v52 = vld [vmem:[%s9423_s17 + $0x1a00] sm:$0xff]  ;;  %v1088_v43 = vld [vmem:[%s9423_s17 + $0x1b68] sm:$0xff] }
 0x1dd   : > { %6735 = vmatprep.mubr.bf16.mxu0 %v9934_v58  ;;  %7063 = vmatprep.mubr.bf16.mxu1 %v9934_v58  ;;  %v1047_v54 = vld [vmem:[%s9423_s17 + $0x1a20] sm:$0xff] }
 0x1de   : > { %v8733_v4 = vcombine.low %v1043_v52, %v1047_v54 }
 0x1df   : > { %6706 = vmatpush1.bf16.msra.mxu0 %v8677_v62  ;;  %7034 = vmatpush1.bf16.msra.mxu1 %v8679_v63  ;;  %v8734_v62 = vcombine.high %v1043_v52, %v1047_v54  ;;  %v8736_v63 = vcombine.high %v1044_v19, %v1048_v56  ;;  %v1092_v52 = vld [vmem:[%s9423_s17 + $0x1b88] sm:$0xff]  ;;  %v8775_v56 = vcombine.low %v1084_v42, %v1088_v43 }
 0x1e0   : > { %6707 = vmatprep.subr.bf16.mxu0 %v8686_v39  ;;  %7035 = vmatprep.subr.bf16.mxu1 %v8688_v0  ;;  %v1051_v39 = vld [vmem:[%s9423_s17 + $0x1a40] sm:$0xff]  ;;  %v1096_v54 = vld [vmem:[%s9423_s17 + $0x1ba8] sm:$0xff] }
 0x1e1   : > { %v1055_v0 = vld [vmem:[%s9423_s17 + $0x1a60] sm:$0xff] }
 0x1e2   : > { %v8741_v13 = vcombine.low %v1051_v39, %v1055_v0 }
 0x1e3   : > { %6708 = vmatpush1.bf16.msra.mxu0 %v8685_v6  ;;  %7036 = vmatpush1.bf16.msra.mxu1 %v8687_v7  ;;  %v8742_v6 = vcombine.high %v1051_v39, %v1055_v0  ;;  %v8744_v7 = vcombine.high %v1052_v2, %v1056_v3  ;;  %v1100_v39 = vld [vmem:[%s9423_s17 + $0x1bc8] sm:$0xff]  ;;  %v8783_v3 = vcombine.low %v1092_v52, %v1096_v54 }
 0x1e4   : > { %6709 = vmatprep.subr.bf16.mxu0 %v8694_v8  ;;  %7037 = vmatprep.subr.bf16.mxu1 %v8696_v9  ;;  %v1059_v8 = vld [vmem:[%s9423_s17 + $0x1a80] sm:$0xff]  ;;  %v1104_v0 = vld [vmem:[%s9423_s17 + $0x1be8] sm:$0xff] }
 0x1e5   : > { %v1063_v9 = vld [vmem:[%s9423_s17 + $0x1aa0] sm:$0xff] }
 0x1e6   : > { %v8749_v59 = vcombine.low %v1059_v8, %v1063_v9 }
 0x1e7   : > { %6710 = vmatpush1.bf16.msra.mxu0 %v8693_v17  ;;  %7038 = vmatpush1.bf16.msra.mxu1 %v8695_v18  ;;  %v8750_v17 = vcombine.high %v1059_v8, %v1063_v9  ;;  %v8752_v18 = vcombine.high %v1060_v10, %v1064_v11  ;;  %v1108_v8 = vld [vmem:[%s9423_s17 + $0x1c08] sm:$0xff]  ;;  %v8791_v11 = vcombine.low %v1100_v39, %v1104_v0 }
 0x1e8   : > { %6711 = vmatprep.subr.bf16.mxu0 %v8702_v53  ;;  %7039 = vmatprep.subr.bf16.mxu1 %v8704_v20  ;;  %v1067_v53 = vld [vmem:[%s9423_s17 + $0x1ac0] sm:$0xff]  ;;  %v1112_v9 = vld [vmem:[%s9423_s17 + $0x1c28] sm:$0xff] }
 0x1e9   : > { %v1071_v20 = vld [vmem:[%s9423_s17 + $0x1ae0] sm:$0xff] }
 0x1ea   : > { %v8757_v34 = vcombine.low %v1067_v53, %v1071_v20 }
 0x1eb   : > { %6712 = vmatpush1.bf16.msra.mxu0 %v8701_v28  ;;  %7040 = vmatpush1.bf16.msra.mxu1 %v8703_v29  ;;  %v8758_v28 = vcombine.high %v1067_v53, %v1071_v20  ;;  %v8760_v29 = vcombine.high %v1068_v23, %v1072_v24  ;;  %v10002_v53 = vcombine.low %v9928_v49, %v9928_v49  ;;  %v1116_v20 = vld [vmem:[%s9423_s17 + $0x1c48] sm:$0xff]  ;;  %v10009_v24 = vld [vmem:[%s10706_s0 + $0x38] sm:$0xff]  ;;  %v1123_v49 = vld [vmem:[%s9423_s17 + $0x1c80] sm:$0xff] }
 0x1ec   : > { %6713 = vmatprep.subr.bf16.mxu0 %v8710_v15  ;;  %7041 = vmatprep.subr.bf16.mxu1 %v8712_v30  ;;  %v1075_v15 = vld [vmem:[%s9423_s17 + $0x1b00] sm:$0xff]  ;;  %v1120_v23 = vld [vmem:[%s9423_s17 + $0x1c68] sm:$0xff] }
 0x1ed   : > { %v1079_v30 = vld [vmem:[%s9423_s17 + $0x1b20] sm:$0xff] }
 0x1ee   : > { %v8765_v25 = vcombine.low %v1075_v15, %v1079_v30 }
 0x1ef   : > { %6714 = vmatpush1.bf16.msra.mxu0 %v8709_v37  ;;  %7042 = vmatpush1.bf16.msra.mxu1 %v8711_v38  ;;  %v8766_v37 = vcombine.high %v1075_v15, %v1079_v30  ;;  %v8768_v38 = vcombine.high %v1076_v32, %v1080_v33  ;;  %v1127_v15 = vld [vmem:[%s9423_s17 + $0x1ca0] sm:$0xff]  ;;  %v10015_v30 = vcombine.high %v10009_v24, %v10009_v24  ;;  %v1124_v32 = vld [vmem:[%s9423_s17 + $0x1c88] sm:$0xff] }
 0x1f0   : > { %6715 = vmatprep.subr.bf16.mxu0 %v8718_v40  ;;  %7043 = vmatprep.subr.bf16.mxu1 %v8720_v41  ;;  %v1083_v40 = vld [vmem:[%s9423_s17 + $0x1b40] sm:$0xff]  ;;  %v1128_v33 = vld [vmem:[%s9423_s17 + $0x1ca8] sm:$0xff] }
 0x1f1   : > { %v1087_v41 = vld [vmem:[%s9423_s17 + $0x1b60] sm:$0xff] }
 0x1f2   : > { %v8773_v19 = vcombine.low %v1083_v40, %v1087_v41 }
 0x1f3   : > { %6716 = vmatpush1.bf16.msra.mxu0 %v8717_v47  ;;  %7044 = vmatpush1.bf16.msra.mxu1 %v8719_v48  ;;  %v8774_v47 = vcombine.high %v1083_v40, %v1087_v41  ;;  %v8776_v48 = vcombine.high %v1084_v42, %v1088_v43  ;;  %v1131_v40 = vld [vmem:[%s9423_s17 + $0x1cc0] sm:$0xff]  ;;  %v1132_v42 = vld [vmem:[%s9423_s17 + $0x1cc8] sm:$0xff] }
 0x1f4   : > { %6717 = vmatprep.subr.bf16.mxu0 %v8726_v50  ;;  %7045 = vmatprep.subr.bf16.mxu1 %v8728_v51  ;;  %v1091_v50 = vld [vmem:[%s9423_s17 + $0x1b80] sm:$0xff]  ;;  %v1136_v43 = vld [vmem:[%s9423_s17 + $0x1ce8] sm:$0xff] }
 0x1f5   : > { %v1095_v51 = vld [vmem:[%s9423_s17 + $0x1ba0] sm:$0xff] }
 0x1f6   : > { %v8781_v2 = vcombine.low %v1091_v50, %v1095_v51  ;;  %v1135_v41 = vld [vmem:[%s9423_s17 + $0x1ce0] sm:$0xff] }
 0x1f7   : > { %6718 = vmatpush1.bf16.msra.mxu0 %v8725_v60  ;;  %7046 = vmatpush1.bf16.msra.mxu1 %v8727_v61  ;;  %v8782_v60 = vcombine.high %v1091_v50, %v1095_v51  ;;  %v8784_v61 = vcombine.high %v1092_v52, %v1096_v54  ;;  %v1139_v50 = vld [vmem:[%s9423_s17 + $0x1d00] sm:$0xff]  ;;  %v1140_v52 = vld [vmem:[%s9423_s17 + $0x1d08] sm:$0xff] }
 0x1f8   : > { %6719 = vmatprep.subr.bf16.mxu0 %v8734_v62  ;;  %7047 = vmatprep.subr.bf16.mxu1 %v8736_v63  ;;  %v1099_v62 = vld [vmem:[%s9423_s17 + $0x1bc0] sm:$0xff]  ;;  %v1144_v54 = vld [vmem:[%s9423_s17 + $0x1d28] sm:$0xff] }
 0x1f9   : > { %v1103_v63 = vld [vmem:[%s9423_s17 + $0x1be0] sm:$0xff] }
 0x1fa   : > { %v8789_v10 = vcombine.low %v1099_v62, %v1103_v63  ;;  %v1143_v51 = vld [vmem:[%s9423_s17 + $0x1d20] sm:$0xff] }
 0x1fb   : > { %6720 = vmatpush1.bf16.msra.mxu0 %v8733_v4  ;;  %7048 = vmatpush1.bf16.msra.mxu1 %v8735_v5  ;;  %v8790_v4 = vcombine.high %v1099_v62, %v1103_v63  ;;  %v8792_v5 = vcombine.high %v1100_v39, %v1104_v0  ;;  %v1147_v62 = vld [vmem:[%s9423_s17 + $0x1d40] sm:$0xff]  ;;  %v1148_v39 = vld [vmem:[%s9423_s17 + $0x1d48] sm:$0xff] }
 0x1fc   : > { %6721 = vmatprep.subr.bf16.mxu0 %v8742_v6  ;;  %7049 = vmatprep.subr.bf16.mxu1 %v8744_v7  ;;  %v1107_v6 = vld [vmem:[%s9423_s17 + $0x1c00] sm:$0xff]  ;;  %v1152_v0 = vld [vmem:[%s9423_s17 + $0x1d68] sm:$0xff] }
 0x1fd   : > { %v1111_v7 = vld [vmem:[%s9423_s17 + $0x1c20] sm:$0xff] }
 0x1fe   : > { %v1151_v63 = vld [vmem:[%s9423_s17 + $0x1d60] sm:$0xff] }
 0x1ff   : > { %6722 = vmatpush1.bf16.msra.mxu0 %v8741_v13  ;;  %7050 = vmatpush1.bf16.msra.mxu1 %v8743_v14  ;;  %v8798_v13 = vcombine.high %v1107_v6, %v1111_v7  ;;  %v8800_v14 = vcombine.high %v1108_v8, %v1112_v9 }
 0x200   : > { %6723 = vmatprep.subr.bf16.mxu0 %v8750_v17  ;;  %7051 = vmatprep.subr.bf16.mxu1 %v8752_v18  ;;  %v1115_v17 = vld [vmem:[%s9423_s17 + $0x1c40] sm:$0xff] }
 0x201   : > { %v1119_v18 = vld [vmem:[%s9423_s17 + $0x1c60] sm:$0xff] }
 0x203   : > { %6724 = vmatpush1.bf16.msra.mxu0 %v8749_v59  ;;  %7052 = vmatpush1.bf16.msra.mxu1 %v8751_v26  ;;  %v8797_v59 = vcombine.low %v1107_v6, %v1111_v7  ;;  %v8799_v26 = vcombine.low %v1108_v8, %v1112_v9  ;;  %v1155_v6 = vld [vmem:[%s9423_s17 + $0x1d80] sm:$0xff]  ;;  %v1156_v8 = vld [vmem:[%s9423_s17 + $0x1d88] sm:$0xff] }
 0x204   : > { %6725 = vmatprep.subr.bf16.mxu0 %v8758_v28  ;;  %7053 = vmatprep.subr.bf16.mxu1 %v8760_v29  ;;  %v8806_v28 = vcombine.high %v1115_v17, %v1119_v18  ;;  %v8808_v29 = vcombine.high %v1116_v20, %v1120_v23  ;;  %v1159_v7 = vld [vmem:[%s9423_s17 + $0x1da0] sm:$0xff]  ;;  %v1160_v9 = vld [vmem:[%s9423_s17 + $0x1da8] sm:$0xff] }
 0x207   : > { %6726 = vmatpush1.bf16.msra.mxu0 %v8757_v34  ;;  %7054 = vmatpush1.bf16.msra.mxu1 %v8759_v35  ;;  %v8805_v34 = vcombine.low %v1115_v17, %v1119_v18  ;;  %v8807_v35 = vcombine.low %v1116_v20, %v1120_v23  ;;  %v1163_v17 = vld [vmem:[%s9423_s17 + $0x1dc0] sm:$0xff]  ;;  %v1164_v20 = vld [vmem:[%s9423_s17 + $0x1dc8] sm:$0xff] }
 0x208   : > { %6727 = vmatprep.subr.bf16.mxu0 %v8766_v37  ;;  %7055 = vmatprep.subr.bf16.mxu1 %v8768_v38  ;;  %v8814_v37 = vcombine.high %v1123_v49, %v1127_v15  ;;  %v8816_v38 = vcombine.high %v1124_v32, %v1128_v33  ;;  %v1167_v18 = vld [vmem:[%s9423_s17 + $0x1de0] sm:$0xff]  ;;  %v1168_v23 = vld [vmem:[%s9423_s17 + $0x1de8] sm:$0xff] }
 0x20b   : > { %6728 = vmatpush1.bf16.msra.mxu0 %v8765_v25  ;;  %7056 = vmatpush1.bf16.msra.mxu1 %v8767_v44  ;;  %v8813_v25 = vcombine.low %v1123_v49, %v1127_v15  ;;  %v8815_v44 = vcombine.low %v1124_v32, %v1128_v33  ;;  %v1171_v49 = vld [vmem:[%s9423_s17 + $0x1e00] sm:$0xff]  ;;  %v1172_v32 = vld [vmem:[%s9423_s17 + $0x1e08] sm:$0xff] }
 0x20c   : > { %6729 = vmatprep.subr.bf16.mxu0 %v8774_v47  ;;  %7057 = vmatprep.subr.bf16.mxu1 %v8776_v48  ;;  %v8822_v47 = vcombine.high %v1131_v40, %v1135_v41  ;;  %v8824_v48 = vcombine.high %v1132_v42, %v1136_v43  ;;  %v1175_v15 = vld [vmem:[%s9423_s17 + $0x1e20] sm:$0xff]  ;;  %v1176_v33 = vld [vmem:[%s9423_s17 + $0x1e28] sm:$0xff] }
 0x20f   : > { %6730 = vmatpush1.bf16.msra.mxu0 %v8773_v19  ;;  %7058 = vmatpush1.bf16.msra.mxu1 %v8775_v56  ;;  %v8821_v19 = vcombine.low %v1131_v40, %v1135_v41  ;;  %v8823_v56 = vcombine.low %v1132_v42, %v1136_v43  ;;  %v1179_v40 = vld [vmem:[%s9423_s17 + $0x1e40] sm:$0xff]  ;;  %v1180_v42 = vld [vmem:[%s9423_s17 + $0x1e48] sm:$0xff] }
 0x210   : > { %6731 = vmatprep.subr.bf16.mxu0 %v8782_v60  ;;  %7059 = vmatprep.subr.bf16.mxu1 %v8784_v61  ;;  %v8830_v60 = vcombine.high %v1139_v50, %v1143_v51  ;;  %v8832_v61 = vcombine.high %v1140_v52, %v1144_v54  ;;  %v1183_v41 = vld [vmem:[%s9423_s17 + $0x1e60] sm:$0xff]  ;;  %v1184_v43 = vld [vmem:[%s9423_s17 + $0x1e68] sm:$0xff] }
 0x213   : > { %6732 = vmatpush1.bf16.msra.mxu0 %v8781_v2  ;;  %7060 = vmatpush1.bf16.msra.mxu1 %v8783_v3  ;;  %v8829_v2 = vcombine.low %v1139_v50, %v1143_v51  ;;  %v8831_v3 = vcombine.low %v1140_v52, %v1144_v54  ;;  %v1187_v50 = vld [vmem:[%s9423_s17 + $0x1e80] sm:$0xff]  ;;  %v1188_v52 = vld [vmem:[%s9423_s17 + $0x1e88] sm:$0xff] }
 0x214   : > { %6733 = vmatprep.subr.bf16.mxu0 %v8790_v4  ;;  %7061 = vmatprep.subr.bf16.mxu1 %v8792_v5  ;;  %v8838_v4 = vcombine.high %v1147_v62, %v1151_v63  ;;  %v8840_v5 = vcombine.high %v1148_v39, %v1152_v0  ;;  %v1191_v51 = vld [vmem:[%s9423_s17 + $0x1ea0] sm:$0xff]  ;;  %v1192_v54 = vld [vmem:[%s9423_s17 + $0x1ea8] sm:$0xff] }
 0x217   : > { %6734 = vmatpush1.bf16.msra.mxu0 %v8789_v10  ;;  %7062 = vmatpush1.bf16.msra.mxu1 %v8791_v11  ;;  %v8837_v10 = vcombine.low %v1147_v62, %v1151_v63  ;;  %v8839_v11 = vcombine.low %v1148_v39, %v1152_v0  ;;  %v1195_v62 = vld [vmem:[%s9423_s17 + $0x1ec0] sm:$0xff]  ;;  %v1196_v39 = vld [vmem:[%s9423_s17 + $0x1ec8] sm:$0xff] }
 0x218   : > { %6744 = vmatprep.subr.bf16.mxu0 %v8798_v13  ;;  %7072 = vmatprep.subr.bf16.mxu1 %v8800_v14  ;;  %v8846_v13 = vcombine.high %v1155_v6, %v1159_v7  ;;  %v8848_v14 = vcombine.high %v1156_v8, %v1160_v9  ;;  %v1199_v63 = vld [vmem:[%s9423_s17 + $0x1ee0] sm:$0xff]  ;;  %v1200_v0 = vld [vmem:[%s9423_s17 + $0x1ee8] sm:$0xff] }
 0x21a   : > { %6736 = vmatmul.mubr.bf16.vlgmr.msra.gmra.mrb[0].mxu0 %v10002_v53  ;;  %7064 = vmatmul.mubr.bf16.vlgmr.msra.gmra.mrb[0].mxu1 %v10002_v53 }
 0x21b   : > { %6745 = vmatpush1.bf16.msra.mxu0 %v8797_v59  ;;  %7073 = vmatpush1.bf16.msra.mxu1 %v8799_v26  ;;  %v8845_v59 = vcombine.low %v1155_v6, %v1159_v7  ;;  %v8847_v26 = vcombine.low %v1156_v8, %v1160_v9  ;;  %v1203_v6 = vld [vmem:[%s9423_s17 + $0x1f00] sm:$0xff]  ;;  %v1204_v8 = vld [vmem:[%s9423_s17 + $0x1f08] sm:$0xff] }
 0x21c   : > { %6746 = vmatprep.subr.bf16.mxu0 %v8806_v28  ;;  %7074 = vmatprep.subr.bf16.mxu1 %v8808_v29  ;;  %v8854_v28 = vcombine.high %v1163_v17, %v1167_v18  ;;  %v8856_v29 = vcombine.high %v1164_v20, %v1168_v23  ;;  %v1207_v7 = vld [vmem:[%s9423_s17 + $0x1f20] sm:$0xff]  ;;  %v1208_v9 = vld [vmem:[%s9423_s17 + $0x1f28] sm:$0xff] }
 0x21d   : > { %6776 = vmatprep.mubr.bf16.mxu0 %v10015_v30  ;;  %7104 = vmatprep.mubr.bf16.mxu1 %v10015_v30 }
 0x21f   : > { %6747 = vmatpush1.bf16.msra.mxu0 %v8805_v34  ;;  %7075 = vmatpush1.bf16.msra.mxu1 %v8807_v35  ;;  %v8853_v34 = vcombine.low %v1163_v17, %v1167_v18  ;;  %v8855_v35 = vcombine.low %v1164_v20, %v1168_v23  ;;  %v1211_v17 = vld [vmem:[%s9423_s17 + $0x1f40] sm:$0xff]  ;;  %v1212_v20 = vld [vmem:[%s9423_s17 + $0x1f48] sm:$0xff] }
 0x220   : > { %6748 = vmatprep.subr.bf16.mxu0 %v8814_v37  ;;  %7076 = vmatprep.subr.bf16.mxu1 %v8816_v38  ;;  %v8862_v37 = vcombine.high %v1171_v49, %v1175_v15  ;;  %v8864_v38 = vcombine.high %v1172_v32, %v1176_v33  ;;  %v1215_v18 = vld [vmem:[%s9423_s17 + $0x1f60] sm:$0xff]  ;;  %v1216_v23 = vld [vmem:[%s9423_s17 + $0x1f68] sm:$0xff] }
 0x223   : > { %6749 = vmatpush1.bf16.msra.mxu0 %v8813_v25  ;;  %7077 = vmatpush1.bf16.msra.mxu1 %v8815_v44  ;;  %v8861_v25 = vcombine.low %v1171_v49, %v1175_v15  ;;  %v8863_v44 = vcombine.low %v1172_v32, %v1176_v33  ;;  %v1219_v49 = vld [vmem:[%s9423_s17 + $0x1f80] sm:$0xff]  ;;  %v1220_v32 = vld [vmem:[%s9423_s17 + $0x1f88] sm:$0xff] }
 0x224   : > { %6750 = vmatprep.subr.bf16.mxu0 %v8822_v47  ;;  %7078 = vmatprep.subr.bf16.mxu1 %v8824_v48  ;;  %v8870_v47 = vcombine.high %v1179_v40, %v1183_v41  ;;  %v8872_v48 = vcombine.high %v1180_v42, %v1184_v43  ;;  %v1223_v15 = vld [vmem:[%s9423_s17 + $0x1fa0] sm:$0xff]  ;;  %v1224_v33 = vld [vmem:[%s9423_s17 + $0x1fa8] sm:$0xff] }
 0x227   : > { %6751 = vmatpush1.bf16.msra.mxu0 %v8821_v19  ;;  %7079 = vmatpush1.bf16.msra.mxu1 %v8823_v56  ;;  %v8869_v19 = vcombine.low %v1179_v40, %v1183_v41  ;;  %v8871_v56 = vcombine.low %v1180_v42, %v1184_v43  ;;  %v1227_v40 = vld [vmem:[%s9423_s17 + $0x1fc0] sm:$0xff]  ;;  %v1228_v42 = vld [vmem:[%s9423_s17 + $0x1fc8] sm:$0xff] }
 0x228   : > { %6752 = vmatprep.subr.bf16.mxu0 %v8830_v60  ;;  %7080 = vmatprep.subr.bf16.mxu1 %v8832_v61  ;;  %v8878_v60 = vcombine.high %v1187_v50, %v1191_v51  ;;  %v8880_v61 = vcombine.high %v1188_v52, %v1192_v54  ;;  %v1231_v41 = vld [vmem:[%s9423_s17 + $0x1fe0] sm:$0xff]  ;;  %v1232_v43 = vld [vmem:[%s9423_s17 + $0x1fe8] sm:$0xff] }
 0x22b   : > { %6753 = vmatpush1.bf16.msra.mxu0 %v8829_v2  ;;  %7081 = vmatpush1.bf16.msra.mxu1 %v8831_v3  ;;  %v8877_v2 = vcombine.low %v1187_v50, %v1191_v51  ;;  %v8879_v3 = vcombine.low %v1188_v52, %v1192_v54  ;;  %v213_v50 = vld [vmem:[%s9423_s17 + $0x10] sm:$0xff]  ;;  %v214_v52 = vld [vmem:[%s9423_s17 + $0x18] sm:$0xff] }
 0x22c   : > { %6754 = vmatprep.subr.bf16.mxu0 %v8838_v4  ;;  %7082 = vmatprep.subr.bf16.mxu1 %v8840_v5  ;;  %v8886_v4 = vcombine.high %v1195_v62, %v1199_v63  ;;  %v8888_v5 = vcombine.high %v1196_v39, %v1200_v0  ;;  %v217_v51 = vld [vmem:[%s9423_s17 + $0x30] sm:$0xff]  ;;  %v218_v54 = vld [vmem:[%s9423_s17 + $0x38] sm:$0xff] }
 0x22f   : > { %6755 = vmatpush1.bf16.msra.mxu0 %v8837_v10  ;;  %7083 = vmatpush1.bf16.msra.mxu1 %v8839_v11  ;;  %v8885_v10 = vcombine.low %v1195_v62, %v1199_v63  ;;  %v8887_v11 = vcombine.low %v1196_v39, %v1200_v0  ;;  %v221_v62 = vld [vmem:[%s9423_s17 + $0x50] sm:$0xff]  ;;  %v10083_v39 = vcombine.low %v10009_v24, %v10009_v24  ;;  %v222_v0 = vld [vmem:[%s9423_s17 + $0x58] sm:$0xff] }
 0x230   : > { %6756 = vmatprep.subr.bf16.mxu0 %v8846_v13  ;;  %7084 = vmatprep.subr.bf16.mxu1 %v8848_v14  ;;  %v8894_v13 = vcombine.high %v1203_v6, %v1207_v7  ;;  %v8896_v14 = vcombine.high %v1204_v8, %v1208_v9  ;;  %v225_v63 = vld [vmem:[%s9423_s17 + $0x70] sm:$0xff]  ;;  %v230_v24 = vld [vmem:[%s9423_s17 + $0x98] sm:$0xff] }
 0x233   : > { %6757 = vmatpush1.bf16.msra.mxu0 %v8845_v59  ;;  %7085 = vmatpush1.bf16.msra.mxu1 %v8847_v26  ;;  %v8893_v59 = vcombine.low %v1203_v6, %v1207_v7  ;;  %v8895_v26 = vcombine.low %v1204_v8, %v1208_v9  ;;  %v229_v7 = vld [vmem:[%s9423_s17 + $0x90] sm:$0xff]  ;;  %v234_v9 = vld [vmem:[%s9423_s17 + $0xb8] sm:$0xff] }
 0x234   : > { %6758 = vmatprep.subr.bf16.mxu0 %v8854_v28  ;;  %7086 = vmatprep.subr.bf16.mxu1 %v8856_v29  ;;  %v8902_v28 = vcombine.high %v1211_v17, %v1215_v18  ;;  %v8904_v29 = vcombine.high %v1212_v20, %v1216_v23  ;;  %v233_v8 = vld [vmem:[%s9423_s17 + $0xb0] sm:$0xff] }
 0x237   : > { %6759 = vmatpush1.bf16.msra.mxu0 %v8853_v34  ;;  %7087 = vmatpush1.bf16.msra.mxu1 %v8855_v35  ;;  %v8901_v34 = vcombine.low %v1211_v17, %v1215_v18  ;;  %v8903_v35 = vcombine.low %v1212_v20, %v1216_v23  ;;  %v237_v17 = vld [vmem:[%s9423_s17 + $0xd0] sm:$0xff]  ;;  %v238_v20 = vld [vmem:[%s9423_s17 + $0xd8] sm:$0xff] }
 0x238   : > { %6760 = vmatprep.subr.bf16.mxu0 %v8862_v37  ;;  %7088 = vmatprep.subr.bf16.mxu1 %v8864_v38  ;;  %v8910_v37 = vcombine.high %v1219_v49, %v1223_v15  ;;  %v8912_v38 = vcombine.high %v1220_v32, %v1224_v33  ;;  %v241_v18 = vld [vmem:[%s9423_s17 + $0xf0] sm:$0xff]  ;;  %v242_v23 = vld [vmem:[%s9423_s17 + $0xf8] sm:$0xff] }
 0x23b   : > { %6761 = vmatpush1.bf16.msra.mxu0 %v8861_v25  ;;  %7089 = vmatpush1.bf16.msra.mxu1 %v8863_v44  ;;  %v8909_v25 = vcombine.low %v1219_v49, %v1223_v15  ;;  %v8911_v44 = vcombine.low %v1220_v32, %v1224_v33  ;;  %v245_v49 = vld [vmem:[%s9423_s17 + $0x110] sm:$0xff]  ;;  %v246_v32 = vld [vmem:[%s9423_s17 + $0x118] sm:$0xff] }
 0x23c   : > { %6762 = vmatprep.subr.bf16.mxu0 %v8870_v47  ;;  %7090 = vmatprep.subr.bf16.mxu1 %v8872_v48  ;;  %v8918_v47 = vcombine.high %v1227_v40, %v1231_v41  ;;  %v8920_v48 = vcombine.high %v1228_v42, %v1232_v43  ;;  %v249_v15 = vld [vmem:[%s9423_s17 + $0x130] sm:$0xff]  ;;  %v250_v33 = vld [vmem:[%s9423_s17 + $0x138] sm:$0xff] }
 0x23f   : > { %6763 = vmatpush1.bf16.msra.mxu0 %v8869_v19  ;;  %7091 = vmatpush1.bf16.msra.mxu1 %v8871_v56  ;;  %v8917_v19 = vcombine.low %v1227_v40, %v1231_v41  ;;  %v8919_v56 = vcombine.low %v1228_v42, %v1232_v43  ;;  %v257_v40 = vld [vmem:[%s9423_s17 + $0x170] sm:$0xff]  ;;  %v254_v41 = vld [vmem:[%s9423_s17 + $0x158] sm:$0xff]  ;;  %v7937_v43 = vcombine.low %v245_v49, %v249_v15 }
 0x240   : > { %6764 = vmatprep.subr.bf16.mxu0 %v8878_v60  ;;  %7092 = vmatprep.subr.bf16.mxu1 %v8880_v61  ;;  %v7906_v60 = vcombine.high %v213_v50, %v217_v51  ;;  %v7908_v61 = vcombine.high %v214_v52, %v218_v54  ;;  %v258_v42 = vld [vmem:[%s9423_s17 + $0x178] sm:$0xff] }
 0x243   : > { %6765 = vmatpush1.bf16.msra.mxu0 %v8877_v2  ;;  %7093 = vmatpush1.bf16.msra.mxu1 %v8879_v3  ;;  %v226_v2 = vld [vmem:[%s9423_s17 + $0x78] sm:$0xff]  ;;  %v7905_v3 = vcombine.low %v213_v50, %v217_v51  ;;  %v265_v50 = vld [vmem:[%s9423_s17 + $0x1b0] sm:$0xff] }
 0x244   : > { %6766 = vmatprep.subr.bf16.mxu0 %v8886_v4  ;;  %7094 = vmatprep.subr.bf16.mxu1 %v8888_v5  ;;  %v7907_v4 = vcombine.low %v214_v52, %v218_v54  ;;  %v7914_v5 = vcombine.high %v221_v62, %v225_v63  ;;  %v7916_v6 = vcombine.high %v222_v0, %v226_v2  ;;  %v262_v51 = vld [vmem:[%s9423_s17 + $0x198] sm:$0xff] }
 0x245   : > { %v266_v52 = vld [vmem:[%s9423_s17 + $0x1b8] sm:$0xff] }
 0x247   : > { %6767 = vmatpush1.bf16.msra.mxu0 %v8885_v10  ;;  %7095 = vmatpush1.bf16.msra.mxu1 %v8887_v11  ;;  %v7913_v10 = vcombine.low %v221_v62, %v225_v63  ;;  %v7915_v11 = vcombine.low %v222_v0, %v226_v2  ;;  %v273_v62 = vld [vmem:[%s9423_s17 + $0x1f0] sm:$0xff]  ;;  %v270_v63 = vld [vmem:[%s9423_s17 + $0x1d8] sm:$0xff] }
 0x248   : > { %6768 = vmatprep.subr.bf16.mxu0 %v8894_v13  ;;  %7096 = vmatprep.subr.bf16.mxu1 %v8896_v14  ;;  %v7922_v13 = vcombine.high %v229_v7, %v233_v8  ;;  %v7924_v14 = vcombine.high %v230_v24, %v234_v9  ;;  %v274_v0 = vld [vmem:[%s9423_s17 + $0x1f8] sm:$0xff] }
 0x24b   : > { %6769 = vmatpush1.bf16.msra.mxu0 %v8893_v59  ;;  %7097 = vmatpush1.bf16.msra.mxu1 %v8895_v26  ;;  %v7921_v59 = vcombine.low %v229_v7, %v233_v8  ;;  %v7923_v26 = vcombine.low %v230_v24, %v234_v9  ;;  %v281_v7 = vld [vmem:[%s9423_s17 + $0x230] sm:$0xff]  ;;  %v278_v8 = vld [vmem:[%s9423_s17 + $0x218] sm:$0xff] }
 0x24c   : > { %6770 = vmatprep.subr.bf16.mxu0 %v8902_v28  ;;  %7098 = vmatprep.subr.bf16.mxu1 %v8904_v29  ;;  %v7930_v28 = vcombine.high %v237_v17, %v241_v18  ;;  %v7932_v29 = vcombine.high %v238_v20, %v242_v23  ;;  %v282_v24 = vld [vmem:[%s9423_s17 + $0x238] sm:$0xff] }
 0x24f   : > { %6771 = vmatpush1.bf16.msra.mxu0 %v8901_v34  ;;  %7099 = vmatpush1.bf16.msra.mxu1 %v8903_v35  ;;  %v7929_v34 = vcombine.low %v237_v17, %v241_v18  ;;  %v7938_v35 = vcombine.high %v245_v49, %v249_v15  ;;  %v289_v17 = vld [vmem:[%s9423_s17 + $0x270] sm:$0xff]  ;;  %v286_v18 = vld [vmem:[%s9423_s17 + $0x258] sm:$0xff] }
 0x250   : > { %6772 = vmatprep.subr.bf16.mxu0 %v8910_v37  ;;  %7100 = vmatprep.subr.bf16.mxu1 %v8912_v38  ;;  %v7940_v37 = vcombine.high %v246_v32, %v250_v33  ;;  %v253_v38 = vld [vmem:[%s9423_s17 + $0x150] sm:$0xff]  ;;  %v294_v15 = vld [vmem:[%s9423_s17 + $0x298] sm:$0xff] }
 0x251   : > { %v7945_v54 = vcombine.low %v253_v38, %v257_v40  ;;  %v297_v49 = vld [vmem:[%s9423_s17 + $0x2b0] sm:$0xff] }
 0x253   : > { %6773 = vmatpush1.bf16.msra.mxu0 %v8909_v25  ;;  %7101 = vmatpush1.bf16.msra.mxu1 %v8911_v44  ;;  %v7939_v25 = vcombine.low %v246_v32, %v250_v33  ;;  %v7946_v44 = vcombine.high %v253_v38, %v257_v40  ;;  %v298_v32 = vld [vmem:[%s9423_s17 + $0x2b8] sm:$0xff]  ;;  %v305_v38 = vld [vmem:[%s9423_s17 + $0x2f0] sm:$0xff] }
 0x254   : > { %6774 = vmatprep.subr.bf16.mxu0 %v8918_v47  ;;  %7102 = vmatprep.subr.bf16.mxu1 %v8920_v48  ;;  %v7948_v47 = vcombine.high %v254_v41, %v258_v42  ;;  %v261_v48 = vld [vmem:[%s9423_s17 + $0x190] sm:$0xff]  ;;  %v302_v40 = vld [vmem:[%s9423_s17 + $0x2d8] sm:$0xff] }
 0x255   : > { %v7953_v2 = vcombine.low %v261_v48, %v265_v50 }
 0x257   : > { %6775 = vmatpush1.bf16.msra.mxu0 %v8917_v19  ;;  %7103 = vmatpush1.bf16.msra.mxu1 %v8919_v56  ;;  %v7947_v19 = vcombine.low %v254_v41, %v258_v42  ;;  %v7954_v56 = vcombine.high %v261_v48, %v265_v50  ;;  %v306_v41 = vld [vmem:[%s9423_s17 + $0x2f8] sm:$0xff]  ;;  %v313_v48 = vld [vmem:[%s9423_s17 + $0x330] sm:$0xff] }
 0x258   : > { %7113 = vmatprep.subr.bf16.mxu0 %v7906_v60  ;;  %7441 = vmatprep.subr.bf16.mxu1 %v7908_v61  ;;  %v7956_v60 = vcombine.high %v262_v51, %v266_v52  ;;  %v269_v61 = vld [vmem:[%s9423_s17 + $0x1d0] sm:$0xff]  ;;  %v310_v50 = vld [vmem:[%s9423_s17 + $0x318] sm:$0xff] }
 0x259   : > { %v7961_v9 = vcombine.low %v269_v61, %v273_v62 }
 0x25a   : > { %6777 = vmatmul.mubr.bf16.vlgmr.msra.gmra.mrb[0].mxu0 %v10083_v39  ;;  %7105 = vmatmul.mubr.bf16.vlgmr.msra.gmra.mrb[0].mxu1 %v10083_v39 }
 0x25b   : > { %7114 = vmatpush1.bf16.msra.mxu0 %v7905_v3  ;;  %7442 = vmatpush1.bf16.msra.mxu1 %v7907_v4  ;;  %v7955_v3 = vcombine.low %v262_v51, %v266_v52  ;;  %v7962_v4 = vcombine.high %v269_v61, %v273_v62  ;;  %v314_v51 = vld [vmem:[%s9423_s17 + $0x338] sm:$0xff]  ;;  %v321_v61 = vld [vmem:[%s9423_s17 + $0x370] sm:$0xff] }
 0x25c   : > { %7115 = vmatprep.subr.bf16.mxu0 %v7914_v5  ;;  %7443 = vmatprep.subr.bf16.mxu1 %v7916_v6  ;;  %v7964_v5 = vcombine.high %v270_v63, %v274_v0  ;;  %v277_v6 = vld [vmem:[%s9423_s17 + $0x210] sm:$0xff]  ;;  %v318_v62 = vld [vmem:[%s9423_s17 + $0x358] sm:$0xff] }
 0x25d   : > { %7145 = vmatprep.mubr.bf16.mxu0 %v9470_v57  ;;  %7473 = vmatprep.mubr.bf16.mxu1 %v9470_v57  ;;  %v7931_v57 = vcombine.low %v238_v20, %v242_v23  ;;  %v290_v20 = vld [vmem:[%s9423_s17 + $0x278] sm:$0xff]  ;;  %v7969_v23 = vcombine.low %v277_v6, %v281_v7 }
 0x25f   : > { %7116 = vmatpush1.bf16.msra.mxu0 %v7913_v10  ;;  %7444 = vmatpush1.bf16.msra.mxu1 %v7915_v11  ;;  %v7963_v10 = vcombine.low %v270_v63, %v274_v0  ;;  %v7970_v11 = vcombine.high %v277_v6, %v281_v7  ;;  %v322_v63 = vld [vmem:[%s9423_s17 + $0x378] sm:$0xff]  ;;  %v329_v6 = vld [vmem:[%s9423_s17 + $0x3b0] sm:$0xff] }
 0x260   : > { %7117 = vmatprep.subr.bf16.mxu0 %v7922_v13  ;;  %7445 = vmatprep.subr.bf16.mxu1 %v7924_v14  ;;  %v7972_v13 = vcombine.high %v278_v8, %v282_v24  ;;  %v285_v14 = vld [vmem:[%s9423_s17 + $0x250] sm:$0xff]  ;;  %v326_v7 = vld [vmem:[%s9423_s17 + $0x398] sm:$0xff] }
 0x261   : > { %v7977_v33 = vcombine.low %v285_v14, %v289_v17 }
 0x263   : > { %7118 = vmatpush1.bf16.msra.mxu0 %v7921_v59  ;;  %7446 = vmatpush1.bf16.msra.mxu1 %v7923_v26  ;;  %v7971_v59 = vcombine.low %v278_v8, %v282_v24  ;;  %v7978_v26 = vcombine.high %v285_v14, %v289_v17  ;;  %v330_v8 = vld [vmem:[%s9423_s17 + $0x3b8] sm:$0xff]  ;;  %v337_v14 = vld [vmem:[%s9423_s17 + $0x3f0] sm:$0xff] }
 0x264   : > { %7119 = vmatprep.subr.bf16.mxu0 %v7930_v28  ;;  %7447 = vmatprep.subr.bf16.mxu1 %v7932_v29  ;;  %v7980_v28 = vcombine.high %v286_v18, %v290_v20  ;;  %v293_v29 = vld [vmem:[%s9423_s17 + $0x290] sm:$0xff]  ;;  %v334_v17 = vld [vmem:[%s9423_s17 + $0x3d8] sm:$0xff] }
 0x265   : > { %v7985_v42 = vcombine.low %v293_v29, %v297_v49 }
 0x267   : > { %7120 = vmatpush1.bf16.msra.mxu0 %v7929_v34  ;;  %7448 = vmatpush1.bf16.msra.mxu1 %v7931_v57  ;;  %v7979_v34 = vcombine.low %v286_v18, %v290_v20  ;;  %v7986_v57 = vcombine.high %v293_v29, %v297_v49  ;;  %v338_v18 = vld [vmem:[%s9423_s17 + $0x3f8] sm:$0xff]  ;;  %v345_v29 = vld [vmem:[%s9423_s17 + $0x430] sm:$0xff] }
 0x268   : > { %7121 = vmatprep.subr.bf16.mxu0 %v7938_v35  ;;  %7449 = vmatprep.subr.bf16.mxu1 %v7940_v37  ;;  %v7988_v35 = vcombine.high %v294_v15, %v298_v32  ;;  %v301_v37 = vld [vmem:[%s9423_s17 + $0x2d0] sm:$0xff]  ;;  %v342_v49 = vld [vmem:[%s9423_s17 + $0x418] sm:$0xff] }
 0x269   : > { %v7993_v52 = vcombine.low %v301_v37, %v305_v38 }
 0x26b   : > { %7122 = vmatpush1.bf16.msra.mxu0 %v7937_v43  ;;  %7450 = vmatpush1.bf16.msra.mxu1 %v7939_v25  ;;  %v7987_v43 = vcombine.low %v294_v15, %v298_v32  ;;  %v7994_v25 = vcombine.high %v301_v37, %v305_v38  ;;  %v346_v15 = vld [vmem:[%s9423_s17 + $0x438] sm:$0xff]  ;;  %v353_v37 = vld [vmem:[%s9423_s17 + $0x470] sm:$0xff] }
 0x26c   : > { %7123 = vmatprep.subr.bf16.mxu0 %v7946_v44  ;;  %7451 = vmatprep.subr.bf16.mxu1 %v7948_v47  ;;  %v7996_v44 = vcombine.high %v302_v40, %v306_v41  ;;  %v309_v47 = vld [vmem:[%s9423_s17 + $0x310] sm:$0xff]  ;;  %v350_v38 = vld [vmem:[%s9423_s17 + $0x458] sm:$0xff] }
 0x26d   : > { %v8001_v0 = vcombine.low %v309_v47, %v313_v48 }
 0x26f   : > { %7124 = vmatpush1.bf16.msra.mxu0 %v7945_v54  ;;  %7452 = vmatpush1.bf16.msra.mxu1 %v7947_v19  ;;  %v7995_v54 = vcombine.low %v302_v40, %v306_v41  ;;  %v8002_v19 = vcombine.high %v309_v47, %v313_v48  ;;  %v354_v40 = vld [vmem:[%s9423_s17 + $0x478] sm:$0xff]  ;;  %v361_v47 = vld [vmem:[%s9423_s17 + $0x4b0] sm:$0xff] }
 0x270   : > { %7125 = vmatprep.subr.bf16.mxu0 %v7954_v56  ;;  %7453 = vmatprep.subr.bf16.mxu1 %v7956_v60  ;;  %v8004_v56 = vcombine.high %v310_v50, %v314_v51  ;;  %v317_v60 = vld [vmem:[%s9423_s17 + $0x350] sm:$0xff]  ;;  %v358_v48 = vld [vmem:[%s9423_s17 + $0x498] sm:$0xff] }
 0x271   : > { %v8009_v24 = vcombine.low %v317_v60, %v321_v61 }
 0x273   : > { %7126 = vmatpush1.bf16.msra.mxu0 %v7953_v2  ;;  %7454 = vmatpush1.bf16.msra.mxu1 %v7955_v3  ;;  %v8003_v2 = vcombine.low %v310_v50, %v314_v51  ;;  %v8010_v3 = vcombine.high %v317_v60, %v321_v61  ;;  %v362_v50 = vld [vmem:[%s9423_s17 + $0x4b8] sm:$0xff]  ;;  %v369_v60 = vld [vmem:[%s9423_s17 + $0x4f0] sm:$0xff] }
 0x274   : > { %7127 = vmatprep.subr.bf16.mxu0 %v7962_v4  ;;  %7455 = vmatprep.subr.bf16.mxu1 %v7964_v5  ;;  %v8012_v4 = vcombine.high %v318_v62, %v322_v63  ;;  %v325_v5 = vld [vmem:[%s9423_s17 + $0x390] sm:$0xff]  ;;  %v366_v61 = vld [vmem:[%s9423_s17 + $0x4d8] sm:$0xff] }
 0x275   : > { %v8017_v20 = vcombine.low %v325_v5, %v329_v6 }
 0x277   : > { %7128 = vmatpush1.bf16.msra.mxu0 %v7961_v9  ;;  %7456 = vmatpush1.bf16.msra.mxu1 %v7963_v10  ;;  %v8011_v9 = vcombine.low %v318_v62, %v322_v63  ;;  %v8018_v10 = vcombine.high %v325_v5, %v329_v6  ;;  %v370_v62 = vld [vmem:[%s9423_s17 + $0x4f8] sm:$0xff]  ;;  %v8051_v63 = vcombine.low %v358_v48, %v362_v50 }
 0x278   : > { %7129 = vmatprep.subr.bf16.mxu0 %v7970_v11  ;;  %7457 = vmatprep.subr.bf16.mxu1 %v7972_v13  ;;  %v8020_v11 = vcombine.high %v326_v7, %v330_v8  ;;  %v333_v13 = vld [vmem:[%s9423_s17 + $0x3d0] sm:$0xff]  ;;  %v374_v5 = vld [vmem:[%s9423_s17 + $0x518] sm:$0xff] }
 0x279   : > { %v8025_v32 = vcombine.low %v333_v13, %v337_v14  ;;  %v378_v6 = vld [vmem:[%s9423_s17 + $0x538] sm:$0xff] }
 0x27b   : > { %7130 = vmatpush1.bf16.msra.mxu0 %v7969_v23  ;;  %7458 = vmatpush1.bf16.msra.mxu1 %v7971_v59  ;;  %v8019_v23 = vcombine.low %v326_v7, %v330_v8  ;;  %v8026_v59 = vcombine.high %v333_v13, %v337_v14  ;;  %v386_v13 = vld [vmem:[%s9423_s17 + $0x578] sm:$0xff] }
 0x27c   : > { %7131 = vmatprep.subr.bf16.mxu0 %v7978_v26  ;;  %7459 = vmatprep.subr.bf16.mxu1 %v7980_v28  ;;  %v8028_v26 = vcombine.high %v334_v17, %v338_v18  ;;  %v341_v28 = vld [vmem:[%s9423_s17 + $0x410] sm:$0xff] }
 0x27d   : > { %v8033_v41 = vcombine.low %v341_v28, %v345_v29 }
 0x27f   : > { %7132 = vmatpush1.bf16.msra.mxu0 %v7977_v33  ;;  %7460 = vmatpush1.bf16.msra.mxu1 %v7979_v34  ;;  %v8027_v33 = vcombine.low %v334_v17, %v338_v18  ;;  %v8034_v34 = vcombine.high %v341_v28, %v345_v29  ;;  %v8067_v17 = vcombine.low %v374_v5, %v378_v6  ;;  %v394_v28 = vld [vmem:[%s9423_s17 + $0x5b8] sm:$0xff] }
 0x280   : > { %7133 = vmatprep.subr.bf16.mxu0 %v7986_v57  ;;  %7461 = vmatprep.subr.bf16.mxu1 %v7988_v35  ;;  %v8036_v57 = vcombine.high %v342_v49, %v346_v15  ;;  %v349_v35 = vld [vmem:[%s9423_s17 + $0x450] sm:$0xff] }
 0x281   : > { %v8041_v51 = vcombine.low %v349_v35, %v353_v37 }
 0x283   : > { %7134 = vmatpush1.bf16.msra.mxu0 %v7985_v42  ;;  %7462 = vmatpush1.bf16.msra.mxu1 %v7987_v43  ;;  %v8035_v42 = vcombine.low %v342_v49, %v346_v15  ;;  %v8042_v43 = vcombine.high %v349_v35, %v353_v37  ;;  %v402_v35 = vld [vmem:[%s9423_s17 + $0x5f8] sm:$0xff] }
 0x284   : > { %7135 = vmatprep.subr.bf16.mxu0 %v7994_v25  ;;  %7463 = vmatprep.subr.bf16.mxu1 %v7996_v44  ;;  %v8044_v25 = vcombine.high %v350_v38, %v354_v40  ;;  %v357_v44 = vld [vmem:[%s9423_s17 + $0x490] sm:$0xff] }
 0x287   : > { %7136 = vmatpush1.bf16.msra.mxu0 %v7993_v52  ;;  %7464 = vmatpush1.bf16.msra.mxu1 %v7995_v54  ;;  %v8043_v52 = vcombine.low %v350_v38, %v354_v40  ;;  %v8050_v54 = vcombine.high %v357_v44, %v361_v47 }
 0x288   : > { %7137 = vmatprep.subr.bf16.mxu0 %v8002_v19  ;;  %7465 = vmatprep.subr.bf16.mxu1 %v8004_v56  ;;  %v8052_v19 = vcombine.high %v358_v48, %v362_v50  ;;  %v365_v56 = vld [vmem:[%s9423_s17 + $0x4d0] sm:$0xff] }
 0x289   : > { %v8057_v7 = vcombine.low %v365_v56, %v369_v60 }
 0x28b   : > { %7138 = vmatpush1.bf16.msra.mxu0 %v8001_v0  ;;  %7466 = vmatpush1.bf16.msra.mxu1 %v8003_v2  ;;  %v8058_v0 = vcombine.high %v365_v56, %v369_v60  ;;  %v8060_v2 = vcombine.high %v366_v61, %v370_v62  ;;  %v418_v56 = vld [vmem:[%s9423_s17 + $0x678] sm:$0xff] }
 0x28c   : > { %7139 = vmatprep.subr.bf16.mxu0 %v8010_v3  ;;  %7467 = vmatprep.subr.bf16.mxu1 %v8012_v4  ;;  %v373_v3 = vld [vmem:[%s9423_s17 + $0x510] sm:$0xff] }
 0x28d   : > { %v377_v4 = vld [vmem:[%s9423_s17 + $0x530] sm:$0xff] }
 0x28e   : > { %v8066_v8 = vcombine.high %v373_v3, %v377_v4  ;;  %v8065_v14 = vcombine.low %v373_v3, %v377_v4  ;;  %v426_v3 = vld [vmem:[%s9423_s17 + $0x6b8] sm:$0xff] }
 0x28f   : > { %7140 = vmatpush1.bf16.msra.mxu0 %v8009_v24  ;;  %7468 = vmatpush1.bf16.msra.mxu1 %v8011_v9  ;;  %v8068_v24 = vcombine.high %v374_v5, %v378_v6  ;;  %v381_v9 = vld [vmem:[%s9423_s17 + $0x550] sm:$0xff] }
 0x290   : > { %7141 = vmatprep.subr.bf16.mxu0 %v8018_v10  ;;  %7469 = vmatprep.subr.bf16.mxu1 %v8020_v11  ;;  %v385_v10 = vld [vmem:[%s9423_s17 + $0x570] sm:$0xff]  ;;  %v382_v11 = vld [vmem:[%s9423_s17 + $0x558] sm:$0xff] }
 0x291   : > { %v8074_v18 = vcombine.high %v381_v9, %v385_v10  ;;  %v8073_v29 = vcombine.low %v381_v9, %v385_v10  ;;  %v8075_v49 = vcombine.low %v382_v11, %v386_v13  ;;  %v434_v9 = vld [vmem:[%s9423_s17 + $0x6f8] sm:$0xff] }
 0x293   : > { %7142 = vmatpush1.bf16.msra.mxu0 %v8017_v20  ;;  %7470 = vmatpush1.bf16.msra.mxu1 %v8019_v23  ;;  %v8076_v20 = vcombine.high %v382_v11, %v386_v13  ;;  %v389_v23 = vld [vmem:[%s9423_s17 + $0x590] sm:$0xff] }
 0x294   : > { %7143 = vmatprep.subr.bf16.mxu0 %v8026_v59  ;;  %7471 = vmatprep.subr.bf16.mxu1 %v8028_v26  ;;  %v393_v59 = vld [vmem:[%s9423_s17 + $0x5b0] sm:$0xff]  ;;  %v390_v26 = vld [vmem:[%s9423_s17 + $0x598] sm:$0xff] }
 0x295   : > { %v8082_v15 = vcombine.high %v389_v23, %v393_v59  ;;  %v8081_v37 = vcombine.low %v389_v23, %v393_v59  ;;  %v8083_v38 = vcombine.low %v390_v26, %v394_v28  ;;  %v442_v23 = vld [vmem:[%s9423_s17 + $0x738] sm:$0xff] }
 0x297   : > { %7144 = vmatpush1.bf16.msra.mxu0 %v8025_v32  ;;  %7472 = vmatpush1.bf16.msra.mxu1 %v8027_v33  ;;  %v8084_v32 = vcombine.high %v390_v26, %v394_v28  ;;  %v397_v33 = vld [vmem:[%s9423_s17 + $0x5d0] sm:$0xff] }
 0x298   : > { %7154 = vmatprep.subr.bf16.mxu0 %v8034_v34  ;;  %7482 = vmatprep.subr.bf16.mxu1 %v8036_v57  ;;  %v401_v34 = vld [vmem:[%s9423_s17 + $0x5f0] sm:$0xff]  ;;  %v398_v57 = vld [vmem:[%s9423_s17 + $0x5d8] sm:$0xff] }
 0x299   : > { %v8090_v40 = vcombine.high %v397_v33, %v401_v34  ;;  %v8091_v48 = vcombine.low %v398_v57, %v402_v35 }
 0x29a   : > { %7146 = vmatmul.mubr.bf16.vlgmr.msra.gmra.mrb[4].mxu0 %v9516_v12  ;;  %7474 = vmatmul.mubr.bf16.vlgmr.msra.gmra.mrb[4].mxu1 %v9516_v12  ;;  %v8049_v12 = vcombine.low %v357_v44, %v361_v47  ;;  %v410_v44 = vld [vmem:[%s9423_s17 + $0x638] sm:$0xff]  ;;  %v8089_v47 = vcombine.low %v397_v33, %v401_v34 }
 0x29b   : > { %7155 = vmatpush1.bf16.msra.mxu0 %v8033_v41  ;;  %7483 = vmatpush1.bf16.msra.mxu1 %v8035_v42  ;;  %v8092_v41 = vcombine.high %v398_v57, %v402_v35  ;;  %v405_v42 = vld [vmem:[%s9423_s17 + $0x610] sm:$0xff]  ;;  %v450_v33 = vld [vmem:[%s9423_s17 + $0x778] sm:$0xff] }
 0x29c   : > { %7156 = vmatprep.subr.bf16.mxu0 %v8042_v43  ;;  %7484 = vmatprep.subr.bf16.mxu1 %v8044_v25  ;;  %v409_v43 = vld [vmem:[%s9423_s17 + $0x630] sm:$0xff]  ;;  %v406_v25 = vld [vmem:[%s9423_s17 + $0x618] sm:$0xff] }
 0x29d   : > { %7186 = vmatprep.mubr.bf16.mxu0 %v9529_v21  ;;  %7514 = vmatprep.mubr.bf16.mxu1 %v9529_v21  ;;  %v8059_v21 = vcombine.low %v366_v61, %v370_v62  ;;  %v8098_v50 = vcombine.high %v405_v42, %v409_v43  ;;  %v8097_v60 = vcombine.low %v405_v42, %v409_v43  ;;  %v458_v42 = vld [vmem:[%s9423_s17 + $0x7b8] sm:$0xff] }
 0x29e   : > { %v8099_v61 = vcombine.low %v406_v25, %v410_v44 }
 0x29f   : > { %7157 = vmatpush1.bf16.msra.mxu0 %v8041_v51  ;;  %7485 = vmatpush1.bf16.msra.mxu1 %v8043_v52  ;;  %v8100_v51 = vcombine.high %v406_v25, %v410_v44  ;;  %v413_v52 = vld [vmem:[%s9423_s17 + $0x650] sm:$0xff] }
 0x2a0   : > { %7158 = vmatprep.subr.bf16.mxu0 %v8050_v54  ;;  %7486 = vmatprep.subr.bf16.mxu1 %v8052_v19  ;;  %v417_v54 = vld [vmem:[%s9423_s17 + $0x670] sm:$0xff]  ;;  %v414_v19 = vld [vmem:[%s9423_s17 + $0x658] sm:$0xff] }
 0x2a1   : > { %v8106_v62 = vcombine.high %v413_v52, %v417_v54  ;;  %v8105_v4 = vcombine.low %v413_v52, %v417_v54  ;;  %v8107_v5 = vcombine.low %v414_v19, %v418_v56  ;;  %v466_v52 = vld [vmem:[%s9423_s17 + $0x7f8] sm:$0xff] }
 0x2a3   : > { %7159 = vmatpush1.bf16.msra.mxu0 %v8049_v12  ;;  %7487 = vmatpush1.bf16.msra.mxu1 %v8051_v63  ;;  %v8108_v12 = vcombine.high %v414_v19, %v418_v56  ;;  %v421_v63 = vld [vmem:[%s9423_s17 + $0x690] sm:$0xff] }
 0x2a4   : > { %7160 = vmatprep.subr.bf16.mxu0 %v8058_v0  ;;  %7488 = vmatprep.subr.bf16.mxu1 %v8060_v2  ;;  %v425_v0 = vld [vmem:[%s9423_s17 + $0x6b0] sm:$0xff]  ;;  %v422_v2 = vld [vmem:[%s9423_s17 + $0x698] sm:$0xff] }
 0x2a5   : > { %v8114_v6 = vcombine.high %v421_v63, %v425_v0  ;;  %v8113_v10 = vcombine.low %v421_v63, %v425_v0  ;;  %v8115_v11 = vcombine.low %v422_v2, %v426_v3  ;;  %v474_v63 = vld [vmem:[%s9423_s17 + $0x838] sm:$0xff] }
 0x2a7   : > { %7161 = vmatpush1.bf16.msra.mxu0 %v8057_v7  ;;  %7489 = vmatpush1.bf16.msra.mxu1 %v8059_v21  ;;  %v8116_v7 = vcombine.high %v422_v2, %v426_v3  ;;  %v429_v21 = vld [vmem:[%s9423_s17 + $0x6d0] sm:$0xff] }
 0x2a8   : > { %7162 = vmatprep.subr.bf16.mxu0 %v8066_v8  ;;  %7490 = vmatprep.subr.bf16.mxu1 %v8068_v24  ;;  %v433_v8 = vld [vmem:[%s9423_s17 + $0x6f0] sm:$0xff]  ;;  %v430_v24 = vld [vmem:[%s9423_s17 + $0x6d8] sm:$0xff] }
 0x2a9   : > { %v8122_v13 = vcombine.high %v429_v21, %v433_v8  ;;  %v8121_v59 = vcombine.low %v429_v21, %v433_v8  ;;  %v8123_v26 = vcombine.low %v430_v24, %v434_v9  ;;  %v482_v21 = vld [vmem:[%s9423_s17 + $0x878] sm:$0xff] }
 0x2ab   : > { %7163 = vmatpush1.bf16.msra.mxu0 %v8065_v14  ;;  %7491 = vmatpush1.bf16.msra.mxu1 %v8067_v17  ;;  %v8124_v14 = vcombine.high %v430_v24, %v434_v9  ;;  %v437_v17 = vld [vmem:[%s9423_s17 + $0x710] sm:$0xff] }
 0x2ac   : > { %7164 = vmatprep.subr.bf16.mxu0 %v8074_v18  ;;  %7492 = vmatprep.subr.bf16.mxu1 %v8076_v20  ;;  %v441_v18 = vld [vmem:[%s9423_s17 + $0x730] sm:$0xff]  ;;  %v438_v20 = vld [vmem:[%s9423_s17 + $0x718] sm:$0xff] }
 0x2ad   : > { %v8130_v28 = vcombine.high %v437_v17, %v441_v18  ;;  %v8129_v34 = vcombine.low %v437_v17, %v441_v18  ;;  %v8131_v57 = vcombine.low %v438_v20, %v442_v23  ;;  %v490_v17 = vld [vmem:[%s9423_s17 + $0x8b8] sm:$0xff] }
 0x2af   : > { %7165 = vmatpush1.bf16.msra.mxu0 %v8073_v29  ;;  %7493 = vmatpush1.bf16.msra.mxu1 %v8075_v49  ;;  %v8132_v29 = vcombine.high %v438_v20, %v442_v23  ;;  %v445_v49 = vld [vmem:[%s9423_s17 + $0x750] sm:$0xff] }
 0x2b0   : > { %7166 = vmatprep.subr.bf16.mxu0 %v8082_v15  ;;  %7494 = vmatprep.subr.bf16.mxu1 %v8084_v32  ;;  %v449_v15 = vld [vmem:[%s9423_s17 + $0x770] sm:$0xff]  ;;  %v446_v32 = vld [vmem:[%s9423_s17 + $0x758] sm:$0xff] }
 0x2b1   : > { %v8138_v35 = vcombine.high %v445_v49, %v449_v15  ;;  %v8137_v43 = vcombine.low %v445_v49, %v449_v15  ;;  %v8139_v25 = vcombine.low %v446_v32, %v450_v33  ;;  %v498_v49 = vld [vmem:[%s9423_s17 + $0x8f8] sm:$0xff] }
 0x2b3   : > { %7167 = vmatpush1.bf16.msra.mxu0 %v8081_v37  ;;  %7495 = vmatpush1.bf16.msra.mxu1 %v8083_v38  ;;  %v8140_v37 = vcombine.high %v446_v32, %v450_v33  ;;  %v453_v38 = vld [vmem:[%s9423_s17 + $0x790] sm:$0xff] }
 0x2b4   : > { %7168 = vmatprep.subr.bf16.mxu0 %v8090_v40  ;;  %7496 = vmatprep.subr.bf16.mxu1 %v8092_v41  ;;  %v457_v40 = vld [vmem:[%s9423_s17 + $0x7b0] sm:$0xff]  ;;  %v454_v41 = vld [vmem:[%s9423_s17 + $0x798] sm:$0xff] }
 0x2b5   : > { %v8146_v44 = vcombine.high %v453_v38, %v457_v40  ;;  %v8145_v54 = vcombine.low %v453_v38, %v457_v40  ;;  %v8147_v19 = vcombine.low %v454_v41, %v458_v42 }
 0x2b7   : > { %7169 = vmatpush1.bf16.msra.mxu0 %v8089_v47  ;;  %7497 = vmatpush1.bf16.msra.mxu1 %v8091_v48  ;;  %v8148_v47 = vcombine.high %v454_v41, %v458_v42  ;;  %v461_v48 = vld [vmem:[%s9423_s17 + $0x7d0] sm:$0xff] }
 0x2b8   : > { %7170 = vmatprep.subr.bf16.mxu0 %v8098_v50  ;;  %7498 = vmatprep.subr.bf16.mxu1 %v8100_v51  ;;  %v465_v50 = vld [vmem:[%s9423_s17 + $0x7f0] sm:$0xff]  ;;  %v462_v51 = vld [vmem:[%s9423_s17 + $0x7d8] sm:$0xff] }
 0x2b9   : > { %v8154_v56 = vcombine.high %v461_v48, %v465_v50  ;;  %v8153_v0 = vcombine.low %v461_v48, %v465_v50  ;;  %v8155_v2 = vcombine.low %v462_v51, %v466_v52  ;;  %v509_v42 = vld [vmem:[%s9423_s17 + $0x950] sm:$0xff] }
 0x2bb   : > { %7171 = vmatpush1.bf16.msra.mxu0 %v8097_v60  ;;  %7499 = vmatpush1.bf16.msra.mxu1 %v8099_v61  ;;  %v8156_v60 = vcombine.high %v462_v51, %v466_v52  ;;  %v469_v61 = vld [vmem:[%s9423_s17 + $0x810] sm:$0xff] }
 0x2bc   : > { %7172 = vmatprep.subr.bf16.mxu0 %v8106_v62  ;;  %7500 = vmatprep.subr.bf16.mxu1 %v8108_v12  ;;  %v473_v62 = vld [vmem:[%s9423_s17 + $0x830] sm:$0xff]  ;;  %v470_v12 = vld [vmem:[%s9423_s17 + $0x818] sm:$0xff] }
 0x2bd   : > { %v8162_v3 = vcombine.high %v469_v61, %v473_v62  ;;  %v8161_v8 = vcombine.low %v469_v61, %v473_v62  ;;  %v8163_v24 = vcombine.low %v470_v12, %v474_v63  ;;  %v517_v52 = vld [vmem:[%s9423_s17 + $0x990] sm:$0xff] }
 0x2bf   : > { %7173 = vmatpush1.bf16.msra.mxu0 %v8105_v4  ;;  %7501 = vmatpush1.bf16.msra.mxu1 %v8107_v5  ;;  %v8164_v4 = vcombine.high %v470_v12, %v474_v63  ;;  %v477_v5 = vld [vmem:[%s9423_s17 + $0x850] sm:$0xff] }
 0x2c0   : > { %7174 = vmatprep.subr.bf16.mxu0 %v8114_v6  ;;  %7502 = vmatprep.subr.bf16.mxu1 %v8116_v7  ;;  %v481_v6 = vld [vmem:[%s9423_s17 + $0x870] sm:$0xff]  ;;  %v478_v7 = vld [vmem:[%s9423_s17 + $0x858] sm:$0xff] }
 0x2c1   : > { %v8170_v9 = vcombine.high %v477_v5, %v481_v6  ;;  %v8169_v18 = vcombine.low %v477_v5, %v481_v6  ;;  %v8171_v20 = vcombine.low %v478_v7, %v482_v21  ;;  %v525_v63 = vld [vmem:[%s9423_s17 + $0x9d0] sm:$0xff] }
 0x2c3   : > { %7175 = vmatpush1.bf16.msra.mxu0 %v8113_v10  ;;  %7503 = vmatpush1.bf16.msra.mxu1 %v8115_v11  ;;  %v8172_v10 = vcombine.high %v478_v7, %v482_v21  ;;  %v485_v11 = vld [vmem:[%s9423_s17 + $0x890] sm:$0xff] }
 0x2c4   : > { %7176 = vmatprep.subr.bf16.mxu0 %v8122_v13  ;;  %7504 = vmatprep.subr.bf16.mxu1 %v8124_v14  ;;  %v489_v13 = vld [vmem:[%s9423_s17 + $0x8b0] sm:$0xff]  ;;  %v486_v14 = vld [vmem:[%s9423_s17 + $0x898] sm:$0xff] }
 0x2c5   : > { %v8178_v23 = vcombine.high %v485_v11, %v489_v13  ;;  %v8179_v15 = vcombine.low %v486_v14, %v490_v17  ;;  %v533_v21 = vld [vmem:[%s9423_s17 + $0xa10] sm:$0xff] }
 0x2c7   : > { %7177 = vmatpush1.bf16.msra.mxu0 %v8121_v59  ;;  %7505 = vmatpush1.bf16.msra.mxu1 %v8123_v26  ;;  %v8180_v59 = vcombine.high %v486_v14, %v490_v17  ;;  %v493_v26 = vld [vmem:[%s9423_s17 + $0x8d0] sm:$0xff] }
 0x2c8   : > { %7178 = vmatprep.subr.bf16.mxu0 %v8130_v28  ;;  %7506 = vmatprep.subr.bf16.mxu1 %v8132_v29  ;;  %v497_v28 = vld [vmem:[%s9423_s17 + $0x8f0] sm:$0xff]  ;;  %v494_v29 = vld [vmem:[%s9423_s17 + $0x8d8] sm:$0xff] }
 0x2c9   : > { %v8186_v32 = vcombine.high %v493_v26, %v497_v28  ;;  %v8188_v33 = vcombine.high %v494_v29, %v498_v49  ;;  %v8185_v38 = vcombine.low %v493_v26, %v497_v28  ;;  %v541_v17 = vld [vmem:[%s9423_s17 + $0xa50] sm:$0xff] }
 0x2cb   : > { %7179 = vmatpush1.bf16.msra.mxu0 %v8129_v34  ;;  %7507 = vmatpush1.bf16.msra.mxu1 %v8131_v57  ;;  %v501_v34 = vld [vmem:[%s9423_s17 + $0x910] sm:$0xff] }
 0x2cc   : > { %7180 = vmatprep.subr.bf16.mxu0 %v8138_v35  ;;  %7508 = vmatprep.subr.bf16.mxu1 %v8140_v37  ;;  %v505_v57 = vld [vmem:[%s9423_s17 + $0x930] sm:$0xff]  ;;  %v502_v35 = vld [vmem:[%s9423_s17 + $0x918] sm:$0xff] }
 0x2cd   : > { %v506_v37 = vld [vmem:[%s9423_s17 + $0x938] sm:$0xff]  ;;  %v8194_v40 = vcombine.high %v501_v34, %v505_v57 }
 0x2ce   : > { %v8196_v41 = vcombine.high %v502_v35, %v506_v37  ;;  %v8195_v48 = vcombine.low %v502_v35, %v506_v37  ;;  %v557_v37 = vld [vmem:[%s9423_s17 + $0xad0] sm:$0xff] }
 0x2cf   : > { %7181 = vmatpush1.bf16.msra.mxu0 %v8137_v43  ;;  %7509 = vmatpush1.bf16.msra.mxu1 %v8139_v25  ;;  %v513_v43 = vld [vmem:[%s9423_s17 + $0x970] sm:$0xff]  ;;  %v510_v25 = vld [vmem:[%s9423_s17 + $0x958] sm:$0xff] }
 0x2d0   : > { %7182 = vmatprep.subr.bf16.mxu0 %v8146_v44  ;;  %7510 = vmatprep.subr.bf16.mxu1 %v8148_v47  ;;  %v514_v44 = vld [vmem:[%s9423_s17 + $0x978] sm:$0xff]  ;;  %v8193_v47 = vcombine.low %v501_v34, %v505_v57  ;;  %v8202_v50 = vcombine.high %v509_v42, %v513_v43 }
 0x2d1   : > { %v8204_v51 = vcombine.high %v510_v25, %v514_v44  ;;  %v8203_v61 = vcombine.low %v510_v25, %v514_v44  ;;  %v565_v44 = vld [vmem:[%s9423_s17 + $0xb10] sm:$0xff] }
 0x2d3   : > { %7183 = vmatpush1.bf16.msra.mxu0 %v8145_v54  ;;  %7511 = vmatpush1.bf16.msra.mxu1 %v8147_v19  ;;  %v521_v54 = vld [vmem:[%s9423_s17 + $0x9b0] sm:$0xff]  ;;  %v518_v19 = vld [vmem:[%s9423_s17 + $0x998] sm:$0xff] }
 0x2d4   : > { %7184 = vmatprep.subr.bf16.mxu0 %v8154_v56  ;;  %7512 = vmatprep.subr.bf16.mxu1 %v8156_v60  ;;  %v522_v56 = vld [vmem:[%s9423_s17 + $0x9b8] sm:$0xff]  ;;  %v8201_v60 = vcombine.low %v509_v42, %v513_v43  ;;  %v8210_v62 = vcombine.high %v517_v52, %v521_v54 }
 0x2d5   : > { %v8212_v12 = vcombine.high %v518_v19, %v522_v56  ;;  %v8211_v5 = vcombine.low %v518_v19, %v522_v56  ;;  %v573_v56 = vld [vmem:[%s9423_s17 + $0xb50] sm:$0xff] }
 0x2d7   : > { %7185 = vmatpush1.bf16.msra.mxu0 %v8153_v0  ;;  %7513 = vmatpush1.bf16.msra.mxu1 %v8155_v2  ;;  %v529_v0 = vld [vmem:[%s9423_s17 + $0x9f0] sm:$0xff]  ;;  %v526_v2 = vld [vmem:[%s9423_s17 + $0x9d8] sm:$0xff] }
 0x2d8   : > { %7195 = vmatprep.subr.bf16.mxu0 %v8162_v3  ;;  %7523 = vmatprep.subr.bf16.mxu1 %v8164_v4  ;;  %v530_v3 = vld [vmem:[%s9423_s17 + $0x9f8] sm:$0xff]  ;;  %v8209_v4 = vcombine.low %v517_v52, %v521_v54  ;;  %v8218_v6 = vcombine.high %v525_v63, %v529_v0 }
 0x2d9   : > { %v8220_v7 = vcombine.high %v526_v2, %v530_v3 }
 0x2da   : > { %7187 = vmatmul.mubr.bf16.vlgmr.msra.gmra.mrb[4].mxu0 %v9597_v22  ;;  %7515 = vmatmul.mubr.bf16.vlgmr.msra.gmra.mrb[4].mxu1 %v9597_v22  ;;  %v8177_v22 = vcombine.low %v485_v11, %v489_v13  ;;  %v8219_v11 = vcombine.low %v526_v2, %v530_v3  ;;  %v581_v3 = vld [vmem:[%s9423_s17 + $0xb90] sm:$0xff] }
 0x2db   : > { %7196 = vmatpush1.bf16.msra.mxu0 %v8161_v8  ;;  %7524 = vmatpush1.bf16.msra.mxu1 %v8163_v24  ;;  %v537_v8 = vld [vmem:[%s9423_s17 + $0xa30] sm:$0xff]  ;;  %v534_v24 = vld [vmem:[%s9423_s17 + $0xa18] sm:$0xff] }
 0x2dc   : > { %7197 = vmatprep.subr.bf16.mxu0 %v8170_v9  ;;  %7525 = vmatprep.subr.bf16.mxu1 %v8172_v10  ;;  %v538_v9 = vld [vmem:[%s9423_s17 + $0xa38] sm:$0xff]  ;;  %v8217_v10 = vcombine.low %v525_v63, %v529_v0  ;;  %v8226_v13 = vcombine.high %v533_v21, %v537_v8 }
 0x2dd   : > { %7227 = vmatprep.mubr.bf16.mxu0 %v9610_v31  ;;  %7555 = vmatprep.mubr.bf16.mxu1 %v9610_v31  ;;  %v8187_v31 = vcombine.low %v494_v29, %v498_v49  ;;  %v8228_v14 = vcombine.high %v534_v24, %v538_v9  ;;  %v8227_v26 = vcombine.low %v534_v24, %v538_v9  ;;  %v549_v49 = vld [vmem:[%s9423_s17 + $0xa90] sm:$0xff] }
 0x2de   : > { %v589_v9 = vld [vmem:[%s9423_s17 + $0xbd0] sm:$0xff] }
 0x2df   : > { %7198 = vmatpush1.bf16.msra.mxu0 %v8169_v18  ;;  %7526 = vmatpush1.bf16.msra.mxu1 %v8171_v20  ;;  %v545_v18 = vld [vmem:[%s9423_s17 + $0xa70] sm:$0xff]  ;;  %v542_v20 = vld [vmem:[%s9423_s17 + $0xa58] sm:$0xff] }
 0x2e0   : > { %7199 = vmatprep.subr.bf16.mxu0 %v8178_v23  ;;  %7527 = vmatprep.subr.bf16.mxu1 %v8180_v59  ;;  %v546_v23 = vld [vmem:[%s9423_s17 + $0xa78] sm:$0xff]  ;;  %v8225_v59 = vcombine.low %v533_v21, %v537_v8  ;;  %v8234_v28 = vcombine.high %v541_v17, %v545_v18 }
 0x2e1   : > { %v8236_v29 = vcombine.high %v542_v20, %v546_v23  ;;  %v8235_v34 = vcombine.low %v542_v20, %v546_v23  ;;  %v597_v23 = vld [vmem:[%s9423_s17 + $0xc10] sm:$0xff] }
 0x2e3   : > { %7200 = vmatpush1.bf16.msra.mxu0 %v8177_v22  ;;  %7528 = vmatpush1.bf16.msra.mxu1 %v8179_v15  ;;  %v553_v22 = vld [vmem:[%s9423_s17 + $0xab0] sm:$0xff]  ;;  %v550_v15 = vld [vmem:[%s9423_s17 + $0xa98] sm:$0xff] }
 0x2e4   : > { %7201 = vmatprep.subr.bf16.mxu0 %v8186_v32  ;;  %7529 = vmatprep.subr.bf16.mxu1 %v8188_v33  ;;  %v554_v32 = vld [vmem:[%s9423_s17 + $0xab8] sm:$0xff]  ;;  %v8233_v33 = vcombine.low %v541_v17, %v545_v18  ;;  %v8242_v57 = vcombine.high %v549_v49, %v553_v22 }
 0x2e5   : > { %v8244_v35 = vcombine.high %v550_v15, %v554_v32  ;;  %v8243_v42 = vcombine.low %v550_v15, %v554_v32  ;;  %v605_v32 = vld [vmem:[%s9423_s17 + $0xc50] sm:$0xff] }
 0x2e7   : > { %7202 = vmatpush1.bf16.msra.mxu0 %v8185_v38  ;;  %7530 = vmatpush1.bf16.msra.mxu1 %v8187_v31  ;;  %v561_v38 = vld [vmem:[%s9423_s17 + $0xaf0] sm:$0xff]  ;;  %v558_v31 = vld [vmem:[%s9423_s17 + $0xad8] sm:$0xff] }
 0x2e8   : > { %7203 = vmatprep.subr.bf16.mxu0 %v8194_v40  ;;  %7531 = vmatprep.subr.bf16.mxu1 %v8196_v41  ;;  %v562_v40 = vld [vmem:[%s9423_s17 + $0xaf8] sm:$0xff]  ;;  %v8241_v41 = vcombine.low %v549_v49, %v553_v22  ;;  %v8250_v43 = vcombine.high %v557_v37, %v561_v38 }
 0x2e9   : > { %v8252_v25 = vcombine.high %v558_v31, %v562_v40  ;;  %v8251_v52 = vcombine.low %v558_v31, %v562_v40  ;;  %v613_v40 = vld [vmem:[%s9423_s17 + $0xc90] sm:$0xff] }
 0x2eb   : > { %7204 = vmatpush1.bf16.msra.mxu0 %v8193_v47  ;;  %7532 = vmatpush1.bf16.msra.mxu1 %v8195_v48  ;;  %v569_v47 = vld [vmem:[%s9423_s17 + $0xb30] sm:$0xff]  ;;  %v566_v48 = vld [vmem:[%s9423_s17 + $0xb18] sm:$0xff] }
 0x2ec   : > { %7205 = vmatprep.subr.bf16.mxu0 %v8202_v50  ;;  %7533 = vmatprep.subr.bf16.mxu1 %v8204_v51  ;;  %v570_v50 = vld [vmem:[%s9423_s17 + $0xb38] sm:$0xff]  ;;  %v8249_v51 = vcombine.low %v557_v37, %v561_v38  ;;  %v8258_v54 = vcombine.high %v565_v44, %v569_v47 }
 0x2ed   : > { %v8260_v19 = vcombine.high %v566_v48, %v570_v50  ;;  %v8259_v63 = vcombine.low %v566_v48, %v570_v50  ;;  %v621_v50 = vld [vmem:[%s9423_s17 + $0xcd0] sm:$0xff] }
 0x2ef   : > { %7206 = vmatpush1.bf16.msra.mxu0 %v8201_v60  ;;  %7534 = vmatpush1.bf16.msra.mxu1 %v8203_v61  ;;  %v577_v60 = vld [vmem:[%s9423_s17 + $0xb70] sm:$0xff]  ;;  %v574_v61 = vld [vmem:[%s9423_s17 + $0xb58] sm:$0xff] }
 0x2f0   : > { %7207 = vmatprep.subr.bf16.mxu0 %v8210_v62  ;;  %7535 = vmatprep.subr.bf16.mxu1 %v8212_v12  ;;  %v578_v62 = vld [vmem:[%s9423_s17 + $0xb78] sm:$0xff]  ;;  %v8257_v12 = vcombine.low %v565_v44, %v569_v47  ;;  %v8266_v0 = vcombine.high %v573_v56, %v577_v60 }
 0x2f1   : > { %v8268_v2 = vcombine.high %v574_v61, %v578_v62  ;;  %v8267_v21 = vcombine.low %v574_v61, %v578_v62  ;;  %v629_v62 = vld [vmem:[%s9423_s17 + $0xd10] sm:$0xff] }
 0x2f3   : > { %7208 = vmatpush1.bf16.msra.mxu0 %v8209_v4  ;;  %7536 = vmatpush1.bf16.msra.mxu1 %v8211_v5  ;;  %v585_v4 = vld [vmem:[%s9423_s17 + $0xbb0] sm:$0xff]  ;;  %v582_v5 = vld [vmem:[%s9423_s17 + $0xb98] sm:$0xff] }
 0x2f4   : > { %7209 = vmatprep.subr.bf16.mxu0 %v8218_v6  ;;  %7537 = vmatprep.subr.bf16.mxu1 %v8220_v7  ;;  %v586_v6 = vld [vmem:[%s9423_s17 + $0xbb8] sm:$0xff]  ;;  %v8265_v7 = vcombine.low %v573_v56, %v577_v60  ;;  %v8274_v8 = vcombine.high %v581_v3, %v585_v4 }
 0x2f5   : > { %v8276_v24 = vcombine.high %v582_v5, %v586_v6  ;;  %v8275_v17 = vcombine.low %v582_v5, %v586_v6  ;;  %v637_v6 = vld [vmem:[%s9423_s17 + $0xd50] sm:$0xff] }
 0x2f7   : > { %7210 = vmatpush1.bf16.msra.mxu0 %v8217_v10  ;;  %7538 = vmatpush1.bf16.msra.mxu1 %v8219_v11  ;;  %v593_v10 = vld [vmem:[%s9423_s17 + $0xbf0] sm:$0xff]  ;;  %v590_v11 = vld [vmem:[%s9423_s17 + $0xbd8] sm:$0xff] }
 0x2f8   : > { %7211 = vmatprep.subr.bf16.mxu0 %v8226_v13  ;;  %7539 = vmatprep.subr.bf16.mxu1 %v8228_v14  ;;  %v594_v13 = vld [vmem:[%s9423_s17 + $0xbf8] sm:$0xff]  ;;  %v8273_v14 = vcombine.low %v581_v3, %v585_v4  ;;  %v8282_v18 = vcombine.high %v589_v9, %v593_v10 }
 0x2f9   : > { %v8284_v20 = vcombine.high %v590_v11, %v594_v13  ;;  %v8283_v49 = vcombine.low %v590_v11, %v594_v13 }
 0x2fb   : > { %7212 = vmatpush1.bf16.msra.mxu0 %v8225_v59  ;;  %7540 = vmatpush1.bf16.msra.mxu1 %v8227_v26  ;;  %v601_v59 = vld [vmem:[%s9423_s17 + $0xc30] sm:$0xff]  ;;  %v598_v26 = vld [vmem:[%s9423_s17 + $0xc18] sm:$0xff] }
 0x2fc   : > { %7213 = vmatprep.subr.bf16.mxu0 %v8234_v28  ;;  %7541 = vmatprep.subr.bf16.mxu1 %v8236_v29  ;;  %v602_v28 = vld [vmem:[%s9423_s17 + $0xc38] sm:$0xff]  ;;  %v8281_v29 = vcombine.low %v589_v9, %v593_v10  ;;  %v8290_v22 = vcombine.high %v597_v23, %v601_v59  ;;  %v1239_v10 = vld [vmem:[%s1238_s4] sm:$0xff] }
 0x2fd   : > { %v8292_v15 = vcombine.high %v598_v26, %v602_v28  ;;  %v8291_v37 = vcombine.low %v598_v26, %v602_v28  ;;  %v646_v28 = vld [vmem:[%s9423_s17 + $0xd98] sm:$0xff] }
 0x2ff   : > { %7214 = vmatpush1.bf16.msra.mxu0 %v8233_v33  ;;  %7542 = vmatpush1.bf16.msra.mxu1 %v8235_v34  ;;  %v609_v33 = vld [vmem:[%s9423_s17 + $0xc70] sm:$0xff]  ;;  %v606_v34 = vld [vmem:[%s9423_s17 + $0xc58] sm:$0xff] }
 0x300   : > { %7215 = vmatprep.subr.bf16.mxu0 %v8242_v57  ;;  %7543 = vmatprep.subr.bf16.mxu1 %v8244_v35  ;;  %v610_v57 = vld [vmem:[%s9423_s17 + $0xc78] sm:$0xff]  ;;  %v8289_v35 = vcombine.low %v597_v23, %v601_v59  ;;  %v8298_v38 = vcombine.high %v605_v32, %v609_v33  ;;  %v645_v23 = vld [vmem:[%s9423_s17 + $0xd90] sm:$0xff] }
 0x301   : > { %v8300_v31 = vcombine.high %v606_v34, %v610_v57  ;;  %v8299_v44 = vcombine.low %v606_v34, %v610_v57  ;;  %v649_v59 = vld [vmem:[%s9423_s17 + $0xdb0] sm:$0xff] }
 0x302   : > { %v8338_v34 = vcombine.high %v645_v23, %v649_v59 }
 0x303   : > { %7216 = vmatpush1.bf16.msra.mxu0 %v8241_v41  ;;  %7544 = vmatpush1.bf16.msra.mxu1 %v8243_v42  ;;  %v617_v41 = vld [vmem:[%s9423_s17 + $0xcb0] sm:$0xff]  ;;  %v614_v42 = vld [vmem:[%s9423_s17 + $0xc98] sm:$0xff] }
 0x304   : > { %7217 = vmatprep.subr.bf16.mxu0 %v8250_v43  ;;  %7545 = vmatprep.subr.bf16.mxu1 %v8252_v25  ;;  %v618_v43 = vld [vmem:[%s9423_s17 + $0xcb8] sm:$0xff]  ;;  %v8297_v25 = vcombine.low %v605_v32, %v609_v33  ;;  %v8306_v47 = vcombine.high %v613_v40, %v617_v41 }
 0x305   : > { %v8308_v48 = vcombine.high %v614_v42, %v618_v43  ;;  %v8307_v56 = vcombine.low %v614_v42, %v618_v43  ;;  %v654_v42 = vld [vmem:[%s9423_s17 + $0xdd8] sm:$0xff] }
 0x306   : > { %v658_v43 = vld [vmem:[%s9423_s17 + $0xdf8] sm:$0xff] }
 0x307   : > { %7218 = vmatpush1.bf16.msra.mxu0 %v8249_v51  ;;  %7546 = vmatpush1.bf16.msra.mxu1 %v8251_v52  ;;  %v625_v51 = vld [vmem:[%s9423_s17 + $0xcf0] sm:$0xff]  ;;  %v622_v52 = vld [vmem:[%s9423_s17 + $0xcd8] sm:$0xff] }
 0x308   : > { %7219 = vmatprep.subr.bf16.mxu0 %v8258_v54  ;;  %7547 = vmatprep.subr.bf16.mxu1 %v8260_v19  ;;  %v626_v54 = vld [vmem:[%s9423_s17 + $0xcf8] sm:$0xff]  ;;  %v8305_v19 = vcombine.low %v613_v40, %v617_v41  ;;  %v8314_v60 = vcombine.high %v621_v50, %v625_v51 }
 0x309   : > { %v8316_v61 = vcombine.high %v622_v52, %v626_v54  ;;  %v8315_v3 = vcombine.low %v622_v52, %v626_v54 }
 0x30b   : > { %7220 = vmatpush1.bf16.msra.mxu0 %v8257_v12  ;;  %7548 = vmatpush1.bf16.msra.mxu1 %v8259_v63  ;;  %v633_v12 = vld [vmem:[%s9423_s17 + $0xd30] sm:$0xff]  ;;  %v630_v63 = vld [vmem:[%s9423_s17 + $0xd18] sm:$0xff] }
 0x30c   : > { %7221 = vmatprep.subr.bf16.mxu0 %v8266_v0  ;;  %7549 = vmatprep.subr.bf16.mxu1 %v8268_v2  ;;  %v634_v0 = vld [vmem:[%s9423_s17 + $0xd38] sm:$0xff]  ;;  %v8313_v2 = vcombine.low %v621_v50, %v625_v51  ;;  %v8322_v4 = vcombine.high %v629_v62, %v633_v12  ;;  %v8321_v9 = vcombine.low %v629_v62, %v633_v12  ;;  %v665_v62 = vld [vmem:[%s9423_s17 + $0xe30] sm:$0xff] }
 0x30d   : > { %v8324_v5 = vcombine.high %v630_v63, %v634_v0  ;;  %v8337_v50 = vcombine.low %v645_v23, %v649_v59  ;;  %v662_v12 = vld [vmem:[%s9423_s17 + $0xe18] sm:$0xff] }
 0x30f   : > { %7222 = vmatpush1.bf16.msra.mxu0 %v8265_v7  ;;  %7550 = vmatpush1.bf16.msra.mxu1 %v8267_v21  ;;  %v641_v7 = vld [vmem:[%s9423_s17 + $0xd70] sm:$0xff] }
 0x310   : > { %7223 = vmatprep.subr.bf16.mxu0 %v8274_v8  ;;  %7551 = vmatprep.subr.bf16.mxu1 %v8276_v24  ;;  %v638_v8 = vld [vmem:[%s9423_s17 + $0xd58] sm:$0xff] }
 0x311   : > { %v642_v24 = vld [vmem:[%s9423_s17 + $0xd78] sm:$0xff] }
 0x312   : > { %v8331_v33 = vcombine.low %v638_v8, %v642_v24 }
 0x313   : > { %7224 = vmatpush1.bf16.msra.mxu0 %v8273_v14  ;;  %7552 = vmatpush1.bf16.msra.mxu1 %v8275_v17  ;;  %v8323_v14 = vcombine.low %v630_v63, %v634_v0  ;;  %v666_v63 = vld [vmem:[%s9423_s17 + $0xe38] sm:$0xff] }
 0x314   : > { %7225 = vmatprep.subr.bf16.mxu0 %v8282_v18  ;;  %7553 = vmatprep.subr.bf16.mxu1 %v8284_v20  ;;  %v8330_v18 = vcombine.high %v637_v6, %v641_v7  ;;  %v8332_v20 = vcombine.high %v638_v8, %v642_v24  ;;  %v8355_v24 = vcombine.low %v662_v12, %v666_v63 }
 0x317   : > { %7226 = vmatpush1.bf16.msra.mxu0 %v8281_v29  ;;  %7554 = vmatpush1.bf16.msra.mxu1 %v8283_v49  ;;  %v650_v29 = vld [vmem:[%s9423_s17 + $0xdb8] sm:$0xff] }
 0x318   : > { %7236 = vmatprep.subr.bf16.mxu0 %v8290_v22  ;;  %7564 = vmatprep.subr.bf16.mxu1 %v8292_v15  ;;  %v8329_v15 = vcombine.low %v637_v6, %v641_v7  ;;  %v673_v6 = vld [vmem:[%s9423_s17 + $0xe70] sm:$0xff]  ;;  %v670_v7 = vld [vmem:[%s9423_s17 + $0xe58] sm:$0xff] }
 0x31a   : > { %7228 = vmatmul.mubr.bf16.vlgmr.msra.gmra.mrb[4].mxu0 %v9678_v36  ;;  %7556 = vmatmul.mubr.bf16.vlgmr.msra.gmra.mrb[4].mxu1 %v9678_v36  ;;  %v1241_v36 = vlaneseq }
 0x31b   : > { %7237 = vmatpush1.bf16.msra.mxu0 %v8289_v35  ;;  %7565 = vmatpush1.bf16.msra.mxu1 %v8291_v37  ;;  %v8340_v35 = vcombine.high %v646_v28, %v650_v29  ;;  %v653_v37 = vld [vmem:[%s9423_s17 + $0xdd0] sm:$0xff] }
 0x31c   : > { %7238 = vmatprep.subr.bf16.mxu0 %v8298_v38  ;;  %7566 = vmatprep.subr.bf16.mxu1 %v8300_v31  ;;  %v657_v38 = vld [vmem:[%s9423_s17 + $0xdf0] sm:$0xff] }
 0x31d   : > { %7268 = vmatprep.mubr.bf16.mxu0 %v9691_v45  ;;  %7596 = vmatprep.mubr.bf16.mxu1 %v9691_v45  ;;  %v10312_v45 = vshrl.u32 %v1241_v36, 7  ;;  %v8339_v36 = vcombine.low %v646_v28, %v650_v29  ;;  %v8345_v0 = vcombine.low %v653_v37, %v657_v38  ;;  %v689_v28 = vld [vmem:[%s9423_s17 + $0xef0] sm:$0xff]  ;;  %v686_v29 = vld [vmem:[%s9423_s17 + $0xed8] sm:$0xff] }
 0x31f   : > { %7239 = vmatpush1.bf16.msra.mxu0 %v8297_v25  ;;  %7567 = vmatpush1.bf16.msra.mxu1 %v8299_v44  ;;  %v1243_v21 = vsub.s32 0, %v10312_v45  ;;  %v1251_v11 = vsub.s32 2, %v10312_v45  ;;  %v1247_v13 = vsub.s32 1, %v10312_v45  ;;  %v1255_v17 = vsub.s32 3, %v10312_v45 }
 0x320   : > { %7240 = vmatprep.subr.bf16.mxu0 %v8306_v47  ;;  %7568 = vmatprep.subr.bf16.mxu1 %v8308_v48 }
 0x321   : > { %v1244_v26 = vrot.slane %v1239_v10, %v1243_v21  ;;  %v1252_v49 = vrot.slane %v1239_v10, %v1251_v11  ;;  %v1248_v22 = vrot.slane %v1239_v10, %v1247_v13  ;;  %v1256_v32 = vrot.slane %v1239_v10, %v1255_v17  ;;  %v674_v21 = vld [vmem:[%s9423_s17 + $0xe78] sm:$0xff]  ;;  %v677_v11 = vld [vmem:[%s9423_s17 + $0xe90] sm:$0xff] }
 0x322   : > { %v8364_v10 = vcombine.high %v670_v7, %v674_v21  ;;  %v681_v13 = vld [vmem:[%s9423_s17 + $0xeb0] sm:$0xff]  ;;  %v682_v17 = vld [vmem:[%s9423_s17 + $0xeb8] sm:$0xff] }
 0x323   : > { %7241 = vmatpush1.bf16.msra.mxu0 %v8305_v19  ;;  %7569 = vmatpush1.bf16.msra.mxu1 %v8307_v56  ;;  %v8346_v19 = vcombine.high %v653_v37, %v657_v38  ;;  %v8370_v23 = vcombine.high %v677_v11, %v681_v13  ;;  %v698_v37 = vld [vmem:[%s9423_s17 + $0xf38] sm:$0xff] }
 0x324   : > { %7242 = vmatprep.subr.bf16.mxu0 %v8314_v60  ;;  %7570 = vmatprep.subr.bf16.mxu1 %v8316_v61  ;;  %v8348_v60 = vcombine.high %v654_v42, %v658_v43  ;;  %v661_v61 = vld [vmem:[%s9423_s17 + $0xe10] sm:$0xff] }
 0x325   : > { %v8353_v8 = vcombine.low %v661_v61, %v665_v62 }
 0x327   : > { %7243 = vmatpush1.bf16.msra.mxu0 %v8313_v2  ;;  %7571 = vmatpush1.bf16.msra.mxu1 %v8315_v3  ;;  %v8347_v2 = vcombine.low %v654_v42, %v658_v43  ;;  %v8354_v3 = vcombine.high %v661_v61, %v665_v62  ;;  %v701_v42 = vld [vmem:[%s9423_s17 + $0xf50] sm:$0xff] }
 0x328   : > { %7244 = vmatprep.subr.bf16.mxu0 %v8322_v4  ;;  %7572 = vmatprep.subr.bf16.mxu1 %v8324_v5  ;;  %v8356_v4 = vcombine.high %v662_v12, %v666_v63  ;;  %v669_v5 = vld [vmem:[%s9423_s17 + $0xe50] sm:$0xff] }
 0x329   : > { %v705_v43 = vld [vmem:[%s9423_s17 + $0xf70] sm:$0xff] }
 0x32a   : > { %v717_v12 = vld [vmem:[%s9423_s17 + $0xfd0] sm:$0xff] }
 0x32b   : > { %7245 = vmatpush1.bf16.msra.mxu0 %v8321_v9  ;;  %7573 = vmatpush1.bf16.msra.mxu1 %v8323_v14  ;;  %v8362_v9 = vcombine.high %v669_v5, %v673_v6  ;;  %v678_v14 = vld [vmem:[%s9423_s17 + $0xe98] sm:$0xff]  ;;  %v721_v63 = vld [vmem:[%s9423_s17 + $0xff0] sm:$0xff] }
 0x32c   : > { %7246 = vmatprep.subr.bf16.mxu0 %v8330_v18  ;;  %7574 = vmatprep.subr.bf16.mxu1 %v8332_v20  ;;  %v8361_v18 = vcombine.low %v669_v5, %v673_v6  ;;  %v8363_v20 = vcombine.low %v670_v7, %v674_v21  ;;  %v8372_v59 = vcombine.high %v678_v14, %v682_v17  ;;  %v725_v7 = vld [vmem:[%s9423_s17 + $0x1010] sm:$0xff] }
 0x32d   : > { %v6778_v57 = vpop.f32.mrb[0].mxu0  ;;  %v7106_v40 = vpop.f32.mrb[0].mxu1  ;;  %v8410_v5 = vcombine.high %v717_v12, %v721_v63  ;;  %v729_v21 = vld [vmem:[%s9423_s17 + $0x1030] sm:$0xff] }
 0x32e   : > { %v8932_v31 = vadd.f32 %v6778_v57, %v1244_v26  ;;  %v6780_v41 = vpop.f32.mrb[1].mxu0  ;;  %v8934_v25 = vadd.f32 %v7106_v40, %v1252_v49  ;;  %v7108_v47 = vpop.f32.mrb[1].mxu1  ;;  %v685_v26 = vld [vmem:[%s9423_s17 + $0xed0] sm:$0xff]  ;;  %v690_v49 = vld [vmem:[%s9423_s17 + $0xef8] sm:$0xff] }
 0x32f   : > { %v8933_v44 = vadd.f32 %v6780_v41, %v1248_v22  ;;  %v6782_v48 = vpop.f32.mrb[2].mxu0  ;;  %7247 = vmatpush1.bf16.msra.mxu0 %v8329_v15  ;;  %v8935_v51 = vadd.f32 %v7108_v47, %v1256_v32  ;;  %v7110_v52 = vpop.f32.mrb[2].mxu1  ;;  %7575 = vmatpush1.bf16.msra.mxu1 %v8331_v33  ;;  %v8369_v22 = vcombine.low %v677_v11, %v681_v13  ;;  %v697_v57 = vld [vmem:[%s9423_s17 + $0xf30] sm:$0xff] }
 0x330   : > { %7769 = vst [vmem:[%s10334_s10] sm:$0xff] %v8932_v31  ;;  %v6783_v54 = vpop.f32.mrb[3].mxu0  ;;  %7248 = vmatprep.subr.bf16.mxu0 %v8338_v34  ;;  %7771 = vst [vmem:[%s10334_s10 + $0x10] sm:$0xff] %v8934_v25  ;;  %v7111_v56 = vpop.f32.mrb[3].mxu1  ;;  %7576 = vmatprep.subr.bf16.mxu1 %v8340_v35  ;;  %v8371_v15 = vcombine.low %v678_v14, %v682_v17  ;;  %v8378_v32 = vcombine.high %v685_v26, %v689_v28  ;;  %v693_v34 = vld [vmem:[%s9423_s17 + $0xf10] sm:$0xff]  ;;  %v694_v35 = vld [vmem:[%s9423_s17 + $0xf18] sm:$0xff] }
 0x331   : > { %7770 = vst [vmem:[%s10334_s10 + $0x8] sm:$0xff] %v8933_v44  ;;  %7772 = vst [vmem:[%s10334_s10 + $0x18] sm:$0xff] %v8935_v51  ;;  %v8380_v33 = vcombine.high %v686_v29, %v690_v49  ;;  %v8377_v38 = vcombine.low %v685_v26, %v689_v28  ;;  %v8379_v31 = vcombine.low %v686_v29, %v690_v49  ;;  %v702_v25 = vld [vmem:[%s9423_s17 + $0xf58] sm:$0xff]  ;;  %v709_v52 = vld [vmem:[%s9423_s17 + $0xf90] sm:$0xff] }
 0x332   : > { %v8386_v40 = vcombine.high %v693_v34, %v697_v57  ;;  %v8388_v41 = vcombine.high %v694_v35, %v698_v37  ;;  %v706_v44 = vld [vmem:[%s9423_s17 + $0xf78] sm:$0xff]  ;;  %v8385_v47 = vcombine.low %v693_v34, %v697_v57  ;;  %v8387_v48 = vcombine.low %v694_v35, %v698_v37  ;;  %v713_v54 = vld [vmem:[%s9423_s17 + $0xfb0] sm:$0xff] }
 0x333   : > { %7249 = vmatpush1.bf16.msra.mxu0 %v8337_v50  ;;  %7577 = vmatpush1.bf16.msra.mxu1 %v8339_v36  ;;  %v8394_v50 = vcombine.high %v701_v42, %v705_v43  ;;  %v8396_v51 = vcombine.high %v702_v25, %v706_v44  ;;  %v710_v36 = vld [vmem:[%s9423_s17 + $0xf98] sm:$0xff]  ;;  %v8393_v56 = vcombine.low %v701_v42, %v705_v43  ;;  %v733_v14 = vld [vmem:[%s9423_s17 + $0x1050] sm:$0xff] }
 0x334   : > { %7250 = vmatprep.subr.bf16.mxu0 %v8346_v19  ;;  %7578 = vmatprep.subr.bf16.mxu1 %v8348_v60  ;;  %v714_v19 = vld [vmem:[%s9423_s17 + $0xfb8] sm:$0xff]  ;;  %v8395_v60 = vcombine.low %v702_v25, %v706_v44  ;;  %v8402_v61 = vcombine.high %v709_v52, %v713_v54  ;;  %v8418_v11 = vcombine.high %v725_v7, %v729_v21  ;;  %v737_v17 = vld [vmem:[%s9423_s17 + $0x1070] sm:$0xff] }
 0x335   : > { %v8404_v62 = vcombine.high %v710_v36, %v714_v19  ;;  %v8426_v26 = vcombine.high %v733_v14, %v737_v17  ;;  %v741_v29 = vld [vmem:[%s9423_s17 + $0x1090] sm:$0xff]  ;;  %v758_v44 = vld [vmem:[%s9423_s17 + $0x1118] sm:$0xff] }
 0x336   : > { %v745_v49 = vld [vmem:[%s9423_s17 + $0x10b0] sm:$0xff] }
 0x337   : > { %7251 = vmatpush1.bf16.msra.mxu0 %v8345_v0  ;;  %7579 = vmatpush1.bf16.msra.mxu1 %v8347_v2  ;;  %v718_v0 = vld [vmem:[%s9423_s17 + $0xfd8] sm:$0xff]  ;;  %v8434_v34 = vcombine.high %v741_v29, %v745_v49  ;;  %v749_v35 = vld [vmem:[%s9423_s17 + $0x10d0] sm:$0xff] }
 0x338   : > { %7252 = vmatprep.subr.bf16.mxu0 %v8354_v3  ;;  %7580 = vmatprep.subr.bf16.mxu1 %v8356_v4  ;;  %v722_v2 = vld [vmem:[%s9423_s17 + $0xff8] sm:$0xff]  ;;  %v8401_v3 = vcombine.low %v709_v52, %v713_v54  ;;  %v8403_v4 = vcombine.low %v710_v36, %v714_v19  ;;  %v753_v37 = vld [vmem:[%s9423_s17 + $0x10f0] sm:$0xff] }
 0x339   : > { %v8412_v6 = vcombine.high %v718_v0, %v722_v2  ;;  %v757_v43 = vld [vmem:[%s9423_s17 + $0x1110] sm:$0xff]  ;;  %v766_v36 = vld [vmem:[%s9423_s17 + $0x1158] sm:$0xff] }
 0x33a   : > { %v761_v25 = vld [vmem:[%s9423_s17 + $0x1130] sm:$0xff]  ;;  %v770_v19 = vld [vmem:[%s9423_s17 + $0x1178] sm:$0xff] }
 0x33b   : > { %7253 = vmatpush1.bf16.msra.mxu0 %v8353_v8  ;;  %7581 = vmatpush1.bf16.msra.mxu1 %v8355_v24  ;;  %v726_v8 = vld [vmem:[%s9423_s17 + $0x1018] sm:$0xff]  ;;  %v765_v52 = vld [vmem:[%s9423_s17 + $0x1150] sm:$0xff] }
 0x33c   : > { %7254 = vmatprep.subr.bf16.mxu0 %v8362_v9  ;;  %7582 = vmatprep.subr.bf16.mxu1 %v8364_v10  ;;  %v730_v24 = vld [vmem:[%s9423_s17 + $0x1038] sm:$0xff]  ;;  %v8409_v9 = vcombine.low %v717_v12, %v721_v63  ;;  %v8411_v10 = vcombine.low %v718_v0, %v722_v2  ;;  %v769_v54 = vld [vmem:[%s9423_s17 + $0x1170] sm:$0xff] }
 0x33d   : > { %v8420_v13 = vcombine.high %v726_v8, %v730_v24  ;;  %v773_v12 = vld [vmem:[%s9423_s17 + $0x1190] sm:$0xff]  ;;  %v774_v0 = vld [vmem:[%s9423_s17 + $0x1198] sm:$0xff] }
 0x33e   : > { %v777_v63 = vld [vmem:[%s9423_s17 + $0x11b0] sm:$0xff]  ;;  %v778_v2 = vld [vmem:[%s9423_s17 + $0x11b8] sm:$0xff] }
 0x33f   : > { %7255 = vmatpush1.bf16.msra.mxu0 %v8361_v18  ;;  %7583 = vmatpush1.bf16.msra.mxu1 %v8363_v20  ;;  %v734_v18 = vld [vmem:[%s9423_s17 + $0x1058] sm:$0xff] }
 0x340   : > { %7256 = vmatprep.subr.bf16.mxu0 %v8370_v23  ;;  %7584 = vmatprep.subr.bf16.mxu1 %v8372_v59  ;;  %v738_v20 = vld [vmem:[%s9423_s17 + $0x1078] sm:$0xff]  ;;  %v8417_v23 = vcombine.low %v725_v7, %v729_v21  ;;  %v8419_v59 = vcombine.low %v726_v8, %v730_v24  ;;  %v781_v7 = vld [vmem:[%s9423_s17 + $0x11d0] sm:$0xff] }
 0x341   : > { %v8428_v28 = vcombine.high %v734_v18, %v738_v20  ;;  %v785_v21 = vld [vmem:[%s9423_s17 + $0x11f0] sm:$0xff]  ;;  %v782_v8 = vld [vmem:[%s9423_s17 + $0x11d8] sm:$0xff] }
 0x342   : > { %v786_v24 = vld [vmem:[%s9423_s17 + $0x11f8] sm:$0xff] }
 0x343   : > { %7257 = vmatpush1.bf16.msra.mxu0 %v8369_v22  ;;  %7585 = vmatpush1.bf16.msra.mxu1 %v8371_v15  ;;  %v742_v22 = vld [vmem:[%s9423_s17 + $0x1098] sm:$0xff] }
 0x344   : > { %7258 = vmatprep.subr.bf16.mxu0 %v8378_v32  ;;  %7586 = vmatprep.subr.bf16.mxu1 %v8380_v33  ;;  %v746_v15 = vld [vmem:[%s9423_s17 + $0x10b8] sm:$0xff]  ;;  %v8425_v32 = vcombine.low %v733_v14, %v737_v17  ;;  %v8427_v33 = vcombine.low %v734_v18, %v738_v20  ;;  %v789_v14 = vld [vmem:[%s9423_s17 + $0x1210] sm:$0xff] }
 0x345   : > { %v8436_v57 = vcombine.high %v742_v22, %v746_v15  ;;  %v793_v17 = vld [vmem:[%s9423_s17 + $0x1230] sm:$0xff]  ;;  %v790_v18 = vld [vmem:[%s9423_s17 + $0x1218] sm:$0xff] }
 0x346   : > { %v794_v20 = vld [vmem:[%s9423_s17 + $0x1238] sm:$0xff] }
 0x347   : > { %7259 = vmatpush1.bf16.msra.mxu0 %v8377_v38  ;;  %7587 = vmatpush1.bf16.msra.mxu1 %v8379_v31  ;;  %v750_v38 = vld [vmem:[%s9423_s17 + $0x10d8] sm:$0xff] }
 0x348   : > { %7260 = vmatprep.subr.bf16.mxu0 %v8386_v40  ;;  %7588 = vmatprep.subr.bf16.mxu1 %v8388_v41  ;;  %v754_v31 = vld [vmem:[%s9423_s17 + $0x10f8] sm:$0xff]  ;;  %v8435_v40 = vcombine.low %v742_v22, %v746_v15  ;;  %v8442_v41 = vcombine.high %v749_v35, %v753_v37 }
 0x349   : > { %v8444_v42 = vcombine.high %v750_v38, %v754_v31  ;;  %v798_v22 = vld [vmem:[%s9423_s17 + $0x1258] sm:$0xff] }
 0x34a   : > { %v802_v15 = vld [vmem:[%s9423_s17 + $0x1278] sm:$0xff] }
 0x34b   : > { %7261 = vmatpush1.bf16.msra.mxu0 %v8385_v47  ;;  %7589 = vmatpush1.bf16.msra.mxu1 %v8387_v48  ;;  %v762_v47 = vld [vmem:[%s9423_s17 + $0x1138] sm:$0xff]  ;;  %v8441_v48 = vcombine.low %v749_v35, %v753_v37  ;;  %v805_v35 = vld [vmem:[%s9423_s17 + $0x1290] sm:$0xff] }
 0x34c   : > { %7262 = vmatprep.subr.bf16.mxu0 %v8394_v50  ;;  %7590 = vmatprep.subr.bf16.mxu1 %v8396_v51  ;;  %v8450_v50 = vcombine.high %v757_v43, %v761_v25  ;;  %v8452_v51 = vcombine.high %v758_v44, %v762_v47  ;;  %v809_v37 = vld [vmem:[%s9423_s17 + $0x12b0] sm:$0xff] }
 0x34f   : > { %7263 = vmatpush1.bf16.msra.mxu0 %v8393_v56  ;;  %7591 = vmatpush1.bf16.msra.mxu1 %v8395_v60  ;;  %v8449_v56 = vcombine.low %v757_v43, %v761_v25  ;;  %v8451_v60 = vcombine.low %v758_v44, %v762_v47  ;;  %v813_v43 = vld [vmem:[%s9423_s17 + $0x12d0] sm:$0xff]  ;;  %v814_v44 = vld [vmem:[%s9423_s17 + $0x12d8] sm:$0xff] }
 0x350   : > { %7264 = vmatprep.subr.bf16.mxu0 %v8402_v61  ;;  %7592 = vmatprep.subr.bf16.mxu1 %v8404_v62  ;;  %v8458_v61 = vcombine.high %v765_v52, %v769_v54  ;;  %v8460_v62 = vcombine.high %v766_v36, %v770_v19  ;;  %v817_v25 = vld [vmem:[%s9423_s17 + $0x12f0] sm:$0xff]  ;;  %v818_v47 = vld [vmem:[%s9423_s17 + $0x12f8] sm:$0xff] }
 0x353   : > { %7265 = vmatpush1.bf16.msra.mxu0 %v8401_v3  ;;  %7593 = vmatpush1.bf16.msra.mxu1 %v8403_v4  ;;  %v8457_v3 = vcombine.low %v765_v52, %v769_v54  ;;  %v8459_v4 = vcombine.low %v766_v36, %v770_v19  ;;  %v821_v52 = vld [vmem:[%s9423_s17 + $0x1310] sm:$0xff]  ;;  %v822_v36 = vld [vmem:[%s9423_s17 + $0x1318] sm:$0xff] }
 0x354   : > { %7266 = vmatprep.subr.bf16.mxu0 %v8410_v5  ;;  %7594 = vmatprep.subr.bf16.mxu1 %v8412_v6  ;;  %v8466_v5 = vcombine.high %v773_v12, %v777_v63  ;;  %v8468_v6 = vcombine.high %v774_v0, %v778_v2  ;;  %v825_v54 = vld [vmem:[%s9423_s17 + $0x1330] sm:$0xff]  ;;  %v826_v19 = vld [vmem:[%s9423_s17 + $0x1338] sm:$0xff] }
 0x357   : > { %7267 = vmatpush1.bf16.msra.mxu0 %v8409_v9  ;;  %7595 = vmatpush1.bf16.msra.mxu1 %v8411_v10  ;;  %v8465_v9 = vcombine.low %v773_v12, %v777_v63  ;;  %v8467_v10 = vcombine.low %v774_v0, %v778_v2  ;;  %v829_v12 = vld [vmem:[%s9423_s17 + $0x1350] sm:$0xff]  ;;  %v830_v0 = vld [vmem:[%s9423_s17 + $0x1358] sm:$0xff] }
 0x358   : > { %7277 = vmatprep.subr.bf16.mxu0 %v8418_v11  ;;  %7605 = vmatprep.subr.bf16.mxu1 %v8420_v13  ;;  %v8474_v11 = vcombine.high %v781_v7, %v785_v21  ;;  %v8476_v13 = vcombine.high %v782_v8, %v786_v24  ;;  %v833_v63 = vld [vmem:[%s9423_s17 + $0x1370] sm:$0xff]  ;;  %v834_v2 = vld [vmem:[%s9423_s17 + $0x1378] sm:$0xff] }
 0x35a   : > { %7269 = vmatmul.mubr.bf16.vlgmr.msra.gmra.mrb[4].mxu0 %v9759_v55  ;;  %7597 = vmatmul.mubr.bf16.vlgmr.msra.gmra.mrb[4].mxu1 %v9759_v55  ;;  %v8433_v55 = vcombine.low %v741_v29, %v745_v49  ;;  %v797_v29 = vld [vmem:[%s9423_s17 + $0x1250] sm:$0xff] }
 0x35b   : > { %7278 = vmatpush1.bf16.msra.mxu0 %v8417_v23  ;;  %7606 = vmatpush1.bf16.msra.mxu1 %v8419_v59  ;;  %v8473_v23 = vcombine.low %v781_v7, %v785_v21  ;;  %v8475_v59 = vcombine.low %v782_v8, %v786_v24  ;;  %v801_v49 = vld [vmem:[%s9423_s17 + $0x1270] sm:$0xff]  ;;  %v838_v8 = vld [vmem:[%s9423_s17 + $0x1398] sm:$0xff] }
 0x35c   : > { %7279 = vmatprep.subr.bf16.mxu0 %v8426_v26  ;;  %7607 = vmatprep.subr.bf16.mxu1 %v8428_v28  ;;  %v8482_v26 = vcombine.high %v789_v14, %v793_v17  ;;  %v8484_v28 = vcombine.high %v790_v18, %v794_v20  ;;  %v837_v7 = vld [vmem:[%s9423_s17 + $0x1390] sm:$0xff]  ;;  %v842_v24 = vld [vmem:[%s9423_s17 + $0x13b8] sm:$0xff] }
 0x35d   : > { %7309 = vmatprep.mubr.bf16.mxu0 %v9772_v1  ;;  %7637 = vmatprep.mubr.bf16.mxu1 %v9772_v1  ;;  %v8443_v1 = vcombine.low %v750_v38, %v754_v31  ;;  %v806_v38 = vld [vmem:[%s9423_s17 + $0x1298] sm:$0xff]  ;;  %v841_v21 = vld [vmem:[%s9423_s17 + $0x13b0] sm:$0xff] }
 0x35e   : > { %v810_v31 = vld [vmem:[%s9423_s17 + $0x12b8] sm:$0xff] }
 0x35f   : > { %7280 = vmatpush1.bf16.msra.mxu0 %v8425_v32  ;;  %7608 = vmatpush1.bf16.msra.mxu1 %v8427_v33  ;;  %v8481_v32 = vcombine.low %v789_v14, %v793_v17  ;;  %v8483_v33 = vcombine.low %v790_v18, %v794_v20  ;;  %v845_v14 = vld [vmem:[%s9423_s17 + $0x13d0] sm:$0xff]  ;;  %v846_v18 = vld [vmem:[%s9423_s17 + $0x13d8] sm:$0xff] }
 0x360   : > { %7281 = vmatprep.subr.bf16.mxu0 %v8434_v34  ;;  %7609 = vmatprep.subr.bf16.mxu1 %v8436_v57  ;;  %v8490_v34 = vcombine.high %v797_v29, %v801_v49  ;;  %v8492_v57 = vcombine.high %v798_v22, %v802_v15  ;;  %v849_v17 = vld [vmem:[%s9423_s17 + $0x13f0] sm:$0xff]  ;;  %v850_v20 = vld [vmem:[%s9423_s17 + $0x13f8] sm:$0xff] }
 0x363   : > { %7282 = vmatpush1.bf16.msra.mxu0 %v8433_v55  ;;  %7610 = vmatpush1.bf16.msra.mxu1 %v8435_v40  ;;  %v8489_v55 = vcombine.low %v797_v29, %v801_v49  ;;  %v8491_v40 = vcombine.low %v798_v22, %v802_v15  ;;  %v853_v29 = vld [vmem:[%s9423_s17 + $0x1410] sm:$0xff]  ;;  %v854_v22 = vld [vmem:[%s9423_s17 + $0x1418] sm:$0xff] }
 0x364   : > { %7283 = vmatprep.subr.bf16.mxu0 %v8442_v41  ;;  %7611 = vmatprep.subr.bf16.mxu1 %v8444_v42  ;;  %v8498_v41 = vcombine.high %v805_v35, %v809_v37  ;;  %v8500_v42 = vcombine.high %v806_v38, %v810_v31  ;;  %v857_v49 = vld [vmem:[%s9423_s17 + $0x1430] sm:$0xff]  ;;  %v858_v15 = vld [vmem:[%s9423_s17 + $0x1438] sm:$0xff] }
 0x367   : > { %7284 = vmatpush1.bf16.msra.mxu0 %v8441_v48  ;;  %7612 = vmatpush1.bf16.msra.mxu1 %v8443_v1  ;;  %v8497_v48 = vcombine.low %v805_v35, %v809_v37  ;;  %v8499_v1 = vcombine.low %v806_v38, %v810_v31  ;;  %v861_v35 = vld [vmem:[%s9423_s17 + $0x1450] sm:$0xff]  ;;  %v862_v38 = vld [vmem:[%s9423_s17 + $0x1458] sm:$0xff] }
 0x368   : > { %7285 = vmatprep.subr.bf16.mxu0 %v8450_v50  ;;  %7613 = vmatprep.subr.bf16.mxu1 %v8452_v51  ;;  %v8506_v50 = vcombine.high %v813_v43, %v817_v25  ;;  %v8508_v51 = vcombine.high %v814_v44, %v818_v47  ;;  %v865_v37 = vld [vmem:[%s9423_s17 + $0x1470] sm:$0xff]  ;;  %v866_v31 = vld [vmem:[%s9423_s17 + $0x1478] sm:$0xff] }
 0x36b   : > { %7286 = vmatpush1.bf16.msra.mxu0 %v8449_v56  ;;  %7614 = vmatpush1.bf16.msra.mxu1 %v8451_v60  ;;  %v8505_v56 = vcombine.low %v813_v43, %v817_v25  ;;  %v8507_v60 = vcombine.low %v814_v44, %v818_v47  ;;  %v869_v43 = vld [vmem:[%s9423_s17 + $0x1490] sm:$0xff]  ;;  %v870_v44 = vld [vmem:[%s9423_s17 + $0x1498] sm:$0xff] }
 0x36c   : > { %7287 = vmatprep.subr.bf16.mxu0 %v8458_v61  ;;  %7615 = vmatprep.subr.bf16.mxu1 %v8460_v62  ;;  %v8514_v61 = vcombine.high %v821_v52, %v825_v54  ;;  %v8516_v62 = vcombine.high %v822_v36, %v826_v19  ;;  %v873_v25 = vld [vmem:[%s9423_s17 + $0x14b0] sm:$0xff]  ;;  %v874_v47 = vld [vmem:[%s9423_s17 + $0x14b8] sm:$0xff] }
 0x36f   : > { %7288 = vmatpush1.bf16.msra.mxu0 %v8457_v3  ;;  %7616 = vmatpush1.bf16.msra.mxu1 %v8459_v4  ;;  %v8513_v3 = vcombine.low %v821_v52, %v825_v54  ;;  %v8515_v4 = vcombine.low %v822_v36, %v826_v19  ;;  %v877_v52 = vld [vmem:[%s9423_s17 + $0x14d0] sm:$0xff]  ;;  %v878_v36 = vld [vmem:[%s9423_s17 + $0x14d8] sm:$0xff] }
 0x370   : > { %7289 = vmatprep.subr.bf16.mxu0 %v8466_v5  ;;  %7617 = vmatprep.subr.bf16.mxu1 %v8468_v6  ;;  %v8522_v5 = vcombine.high %v829_v12, %v833_v63  ;;  %v8524_v6 = vcombine.high %v830_v0, %v834_v2  ;;  %v881_v54 = vld [vmem:[%s9423_s17 + $0x14f0] sm:$0xff]  ;;  %v882_v19 = vld [vmem:[%s9423_s17 + $0x14f8] sm:$0xff] }
 0x373   : > { %7290 = vmatpush1.bf16.msra.mxu0 %v8465_v9  ;;  %7618 = vmatpush1.bf16.msra.mxu1 %v8467_v10  ;;  %v8521_v9 = vcombine.low %v829_v12, %v833_v63  ;;  %v8523_v10 = vcombine.low %v830_v0, %v834_v2  ;;  %v889_v12 = vld [vmem:[%s9423_s17 + $0x1530] sm:$0xff]  ;;  %v886_v63 = vld [vmem:[%s9423_s17 + $0x1518] sm:$0xff]  ;;  %v8569_v2 = vcombine.low %v877_v52, %v881_v54 }
 0x374   : > { %7291 = vmatprep.subr.bf16.mxu0 %v8474_v11  ;;  %7619 = vmatprep.subr.bf16.mxu1 %v8476_v13  ;;  %v8530_v11 = vcombine.high %v837_v7, %v841_v21  ;;  %v8532_v13 = vcombine.high %v838_v8, %v842_v24  ;;  %v890_v0 = vld [vmem:[%s9423_s17 + $0x1538] sm:$0xff] }
 0x377   : > { %7292 = vmatpush1.bf16.msra.mxu0 %v8473_v23  ;;  %7620 = vmatpush1.bf16.msra.mxu1 %v8475_v59  ;;  %v8529_v23 = vcombine.low %v837_v7, %v841_v21  ;;  %v8531_v59 = vcombine.low %v838_v8, %v842_v24  ;;  %v894_v7 = vld [vmem:[%s9423_s17 + $0x1558] sm:$0xff]  ;;  %v8579_v24 = vcombine.low %v886_v63, %v890_v0 }
 0x378   : > { %7293 = vmatprep.subr.bf16.mxu0 %v8482_v26  ;;  %7621 = vmatprep.subr.bf16.mxu1 %v8484_v28  ;;  %v8538_v26 = vcombine.high %v845_v14, %v849_v17  ;;  %v8540_v28 = vcombine.high %v846_v18, %v850_v20  ;;  %v898_v21 = vld [vmem:[%s9423_s17 + $0x1578] sm:$0xff] }
 0x37b   : > { %7294 = vmatpush1.bf16.msra.mxu0 %v8481_v32  ;;  %7622 = vmatpush1.bf16.msra.mxu1 %v8483_v33  ;;  %v8537_v32 = vcombine.low %v845_v14, %v849_v17  ;;  %v8539_v33 = vcombine.low %v846_v18, %v850_v20  ;;  %v902_v14 = vld [vmem:[%s9423_s17 + $0x1598] sm:$0xff]  ;;  %v8587_v20 = vcombine.low %v894_v7, %v898_v21 }
 0x37c   : > { %7295 = vmatprep.subr.bf16.mxu0 %v8490_v34  ;;  %7623 = vmatprep.subr.bf16.mxu1 %v8492_v57  ;;  %v8546_v34 = vcombine.high %v853_v29, %v857_v49  ;;  %v8548_v57 = vcombine.high %v854_v22, %v858_v15  ;;  %v906_v17 = vld [vmem:[%s9423_s17 + $0x15b8] sm:$0xff] }
 0x37f   : > { %7296 = vmatpush1.bf16.msra.mxu0 %v8489_v55  ;;  %7624 = vmatpush1.bf16.msra.mxu1 %v8491_v40  ;;  %v8545_v55 = vcombine.low %v853_v29, %v857_v49  ;;  %v8547_v40 = vcombine.low %v854_v22, %v858_v15  ;;  %v910_v29 = vld [vmem:[%s9423_s17 + $0x15d8] sm:$0xff]  ;;  %v8595_v15 = vcombine.low %v902_v14, %v906_v17 }
 0x380   : > { %7297 = vmatprep.subr.bf16.mxu0 %v8498_v41  ;;  %7625 = vmatprep.subr.bf16.mxu1 %v8500_v42  ;;  %v8554_v41 = vcombine.high %v861_v35, %v865_v37  ;;  %v8556_v42 = vcombine.high %v862_v38, %v866_v31  ;;  %v914_v49 = vld [vmem:[%s9423_s17 + $0x15f8] sm:$0xff] }
 0x383   : > { %7298 = vmatpush1.bf16.msra.mxu0 %v8497_v48  ;;  %7626 = vmatpush1.bf16.msra.mxu1 %v8499_v1  ;;  %v8553_v48 = vcombine.low %v861_v35, %v865_v37  ;;  %v8555_v1 = vcombine.low %v862_v38, %v866_v31  ;;  %v918_v35 = vld [vmem:[%s9423_s17 + $0x1618] sm:$0xff]  ;;  %v8603_v31 = vcombine.low %v910_v29, %v914_v49 }
 0x384   : > { %7299 = vmatprep.subr.bf16.mxu0 %v8506_v50  ;;  %7627 = vmatprep.subr.bf16.mxu1 %v8508_v51  ;;  %v8562_v50 = vcombine.high %v869_v43, %v873_v25  ;;  %v8564_v51 = vcombine.high %v870_v44, %v874_v47  ;;  %v922_v37 = vld [vmem:[%s9423_s17 + $0x1638] sm:$0xff] }
 0x387   : > { %7300 = vmatpush1.bf16.msra.mxu0 %v8505_v56  ;;  %7628 = vmatpush1.bf16.msra.mxu1 %v8507_v60  ;;  %v8563_v56 = vcombine.low %v870_v44, %v874_v47  ;;  %v8570_v60 = vcombine.high %v877_v52, %v881_v54  ;;  %v8611_v47 = vcombine.low %v918_v35, %v922_v37  ;;  %v934_v52 = vld [vmem:[%s9423_s17 + $0x1698] sm:$0xff] }
 0x388   : > { %7301 = vmatprep.subr.bf16.mxu0 %v8514_v61  ;;  %7629 = vmatprep.subr.bf16.mxu1 %v8516_v62  ;;  %v8572_v61 = vcombine.high %v878_v36, %v882_v19  ;;  %v885_v62 = vld [vmem:[%s9423_s17 + $0x1510] sm:$0xff]  ;;  %v938_v54 = vld [vmem:[%s9423_s17 + $0x16b8] sm:$0xff] }
 0x389   : > { %v8577_v8 = vcombine.low %v885_v62, %v889_v12 }
 0x38b   : > { %7302 = vmatpush1.bf16.msra.mxu0 %v8513_v3  ;;  %7630 = vmatpush1.bf16.msra.mxu1 %v8515_v4  ;;  %v8578_v3 = vcombine.high %v885_v62, %v889_v12  ;;  %v8580_v4 = vcombine.high %v886_v63, %v890_v0  ;;  %v942_v62 = vld [vmem:[%s9423_s17 + $0x16d8] sm:$0xff]  ;;  %v8627_v0 = vcombine.low %v934_v52, %v938_v54 }
 0x38c   : > { %7303 = vmatprep.subr.bf16.mxu0 %v8522_v5  ;;  %7631 = vmatprep.subr.bf16.mxu1 %v8524_v6  ;;  %v893_v5 = vld [vmem:[%s9423_s17 + $0x1550] sm:$0xff]  ;;  %v946_v12 = vld [vmem:[%s9423_s17 + $0x16f8] sm:$0xff] }
 0x38d   : > { %v897_v6 = vld [vmem:[%s9423_s17 + $0x1570] sm:$0xff] }
 0x38e   : > { %v8585_v18 = vcombine.low %v893_v5, %v897_v6 }
 0x38f   : > { %7304 = vmatpush1.bf16.msra.mxu0 %v8521_v9  ;;  %7632 = vmatpush1.bf16.msra.mxu1 %v8523_v10  ;;  %v8586_v9 = vcombine.high %v893_v5, %v897_v6  ;;  %v8588_v10 = vcombine.high %v894_v7, %v898_v21  ;;  %v950_v5 = vld [vmem:[%s9423_s17 + $0x1718] sm:$0xff]  ;;  %v8635_v21 = vcombine.low %v942_v62, %v946_v12 }
 0x390   : > { %7305 = vmatprep.subr.bf16.mxu0 %v8530_v11  ;;  %7633 = vmatprep.subr.bf16.mxu1 %v8532_v13  ;;  %v901_v11 = vld [vmem:[%s9423_s17 + $0x1590] sm:$0xff]  ;;  %v954_v6 = vld [vmem:[%s9423_s17 + $0x1738] sm:$0xff] }
 0x391   : > { %v905_v13 = vld [vmem:[%s9423_s17 + $0x15b0] sm:$0xff] }
 0x392   : > { %v8593_v22 = vcombine.low %v901_v11, %v905_v13 }
 0x393   : > { %7306 = vmatpush1.bf16.msra.mxu0 %v8529_v23  ;;  %7634 = vmatpush1.bf16.msra.mxu1 %v8531_v59  ;;  %v8594_v23 = vcombine.high %v901_v11, %v905_v13  ;;  %v8596_v59 = vcombine.high %v902_v14, %v906_v17  ;;  %v958_v11 = vld [vmem:[%s9423_s17 + $0x1758] sm:$0xff]  ;;  %v8643_v17 = vcombine.low %v950_v5, %v954_v6 }
 0x394   : > { %7307 = vmatprep.subr.bf16.mxu0 %v8538_v26  ;;  %7635 = vmatprep.subr.bf16.mxu1 %v8540_v28  ;;  %v909_v26 = vld [vmem:[%s9423_s17 + $0x15d0] sm:$0xff]  ;;  %v962_v13 = vld [vmem:[%s9423_s17 + $0x1778] sm:$0xff] }
 0x395   : > { %v913_v28 = vld [vmem:[%s9423_s17 + $0x15f0] sm:$0xff] }
 0x396   : > { %v8601_v38 = vcombine.low %v909_v26, %v913_v28 }
 0x397   : > { %7308 = vmatpush1.bf16.msra.mxu0 %v8537_v32  ;;  %7636 = vmatpush1.bf16.msra.mxu1 %v8539_v33  ;;  %v8602_v32 = vcombine.high %v909_v26, %v913_v28  ;;  %v8604_v33 = vcombine.high %v910_v29, %v914_v49  ;;  %v966_v26 = vld [vmem:[%s9423_s17 + $0x1798] sm:$0xff]  ;;  %v8651_v49 = vcombine.low %v958_v11, %v962_v13 }
 0x398   : > { %7318 = vmatprep.subr.bf16.mxu0 %v8546_v34  ;;  %7646 = vmatprep.subr.bf16.mxu1 %v8548_v57  ;;  %v917_v34 = vld [vmem:[%s9423_s17 + $0x1610] sm:$0xff]  ;;  %v970_v28 = vld [vmem:[%s9423_s17 + $0x17b8] sm:$0xff] }
 0x399   : > { %v921_v57 = vld [vmem:[%s9423_s17 + $0x1630] sm:$0xff] }
 0x39a   : > { %7310 = vmatmul.mubr.bf16.vlgmr.msra.gmra.mrb[4].mxu0 %v9840_v16  ;;  %7638 = vmatmul.mubr.bf16.vlgmr.msra.gmra.mrb[4].mxu1 %v9840_v16  ;;  %v8561_v16 = vcombine.low %v869_v43, %v873_v25  ;;  %v926_v43 = vld [vmem:[%s9423_s17 + $0x1658] sm:$0xff]  ;;  %v8609_v44 = vcombine.low %v917_v34, %v921_v57 }
 0x39b   : > { %7319 = vmatpush1.bf16.msra.mxu0 %v8545_v55  ;;  %7647 = vmatpush1.bf16.msra.mxu1 %v8547_v40  ;;  %v8610_v55 = vcombine.high %v917_v34, %v921_v57  ;;  %v8612_v40 = vcombine.high %v918_v35, %v922_v37  ;;  %v930_v25 = vld [vmem:[%s9423_s17 + $0x1678] sm:$0xff]  ;;  %v8659_v37 = vcombine.low %v966_v26, %v970_v28 }
 0x39c   : > { %7320 = vmatprep.subr.bf16.mxu0 %v8554_v41  ;;  %7648 = vmatprep.subr.bf16.mxu1 %v8556_v42  ;;  %v925_v41 = vld [vmem:[%s9423_s17 + $0x1650] sm:$0xff]  ;;  %v974_v34 = vld [vmem:[%s9423_s17 + $0x17d8] sm:$0xff] }
 0x39d   : > { %7350 = vmatprep.mubr.bf16.mxu0 %v9853_v27  ;;  %7678 = vmatprep.mubr.bf16.mxu1 %v9853_v27  ;;  %v8571_v27 = vcombine.low %v878_v36, %v882_v19  ;;  %v929_v42 = vld [vmem:[%s9423_s17 + $0x1670] sm:$0xff]  ;;  %v8619_v19 = vcombine.low %v926_v43, %v930_v25  ;;  %v978_v57 = vld [vmem:[%s9423_s17 + $0x17f8] sm:$0xff] }
 0x39e   : > { %v8617_v36 = vcombine.low %v925_v41, %v929_v42 }
 0x39f   : > { %7321 = vmatpush1.bf16.msra.mxu0 %v8553_v48  ;;  %7649 = vmatpush1.bf16.msra.mxu1 %v8555_v1  ;;  %v8618_v48 = vcombine.high %v925_v41, %v929_v42  ;;  %v8620_v1 = vcombine.high %v926_v43, %v930_v25  ;;  %v982_v41 = vld [vmem:[%s9423_s17 + $0x1818] sm:$0xff]  ;;  %v8667_v25 = vcombine.low %v974_v34, %v978_v57 }
 0x3a0   : > { %7322 = vmatprep.subr.bf16.mxu0 %v8562_v50  ;;  %7650 = vmatprep.subr.bf16.mxu1 %v8564_v51  ;;  %v933_v50 = vld [vmem:[%s9423_s17 + $0x1690] sm:$0xff]  ;;  %v986_v42 = vld [vmem:[%s9423_s17 + $0x1838] sm:$0xff] }
 0x3a1   : > { %v937_v51 = vld [vmem:[%s9423_s17 + $0x16b0] sm:$0xff] }
 0x3a2   : > { %v8625_v63 = vcombine.low %v933_v50, %v937_v51 }
 0x3a3   : > { %7323 = vmatpush1.bf16.msra.mxu0 %v8561_v16  ;;  %7651 = vmatpush1.bf16.msra.mxu1 %v8563_v56  ;;  %v8626_v16 = vcombine.high %v933_v50, %v937_v51  ;;  %v8628_v56 = vcombine.high %v934_v52, %v938_v54  ;;  %v990_v50 = vld [vmem:[%s9423_s17 + $0x1858] sm:$0xff]  ;;  %v8675_v54 = vcombine.low %v982_v41, %v986_v42 }
 0x3a4   : > { %7324 = vmatprep.subr.bf16.mxu0 %v8570_v60  ;;  %7652 = vmatprep.subr.bf16.mxu1 %v8572_v61  ;;  %v941_v60 = vld [vmem:[%s9423_s17 + $0x16d0] sm:$0xff]  ;;  %v994_v51 = vld [vmem:[%s9423_s17 + $0x1878] sm:$0xff] }
 0x3a5   : > { %v945_v61 = vld [vmem:[%s9423_s17 + $0x16f0] sm:$0xff] }
 0x3a6   : > { %v8633_v7 = vcombine.low %v941_v60, %v945_v61 }
 0x3a7   : > { %7325 = vmatpush1.bf16.msra.mxu0 %v8569_v2  ;;  %7653 = vmatpush1.bf16.msra.mxu1 %v8571_v27  ;;  %v8634_v2 = vcombine.high %v941_v60, %v945_v61  ;;  %v8636_v27 = vcombine.high %v942_v62, %v946_v12  ;;  %v998_v60 = vld [vmem:[%s9423_s17 + $0x1898] sm:$0xff]  ;;  %v8683_v12 = vcombine.low %v990_v50, %v994_v51 }
 0x3a8   : > { %7326 = vmatprep.subr.bf16.mxu0 %v8578_v3  ;;  %7654 = vmatprep.subr.bf16.mxu1 %v8580_v4  ;;  %v949_v3 = vld [vmem:[%s9423_s17 + $0x1710] sm:$0xff]  ;;  %v1002_v61 = vld [vmem:[%s9423_s17 + $0x18b8] sm:$0xff] }
 0x3a9   : > { %v953_v4 = vld [vmem:[%s9423_s17 + $0x1730] sm:$0xff] }
 0x3aa   : > { %v8641_v14 = vcombine.low %v949_v3, %v953_v4 }
 0x3ab   : > { %7327 = vmatpush1.bf16.msra.mxu0 %v8577_v8  ;;  %7655 = vmatpush1.bf16.msra.mxu1 %v8579_v24  ;;  %v8642_v8 = vcombine.high %v949_v3, %v953_v4  ;;  %v8644_v24 = vcombine.high %v950_v5, %v954_v6  ;;  %v1006_v3 = vld [vmem:[%s9423_s17 + $0x18d8] sm:$0xff]  ;;  %v8691_v5 = vcombine.low %v998_v60, %v1002_v61 }
 0x3ac   : > { %7328 = vmatprep.subr.bf16.mxu0 %v8586_v9  ;;  %7656 = vmatprep.subr.bf16.mxu1 %v8588_v10  ;;  %v957_v9 = vld [vmem:[%s9423_s17 + $0x1750] sm:$0xff]  ;;  %v1010_v4 = vld [vmem:[%s9423_s17 + $0x18f8] sm:$0xff] }
 0x3ad   : > { %v961_v10 = vld [vmem:[%s9423_s17 + $0x1770] sm:$0xff] }
 0x3ae   : > { %v8649_v29 = vcombine.low %v957_v9, %v961_v10 }
 0x3af   : > { %7329 = vmatpush1.bf16.msra.mxu0 %v8585_v18  ;;  %7657 = vmatpush1.bf16.msra.mxu1 %v8587_v20  ;;  %v8650_v18 = vcombine.high %v957_v9, %v961_v10  ;;  %v8652_v20 = vcombine.high %v958_v11, %v962_v13  ;;  %v1018_v9 = vld [vmem:[%s9423_s17 + $0x1938] sm:$0xff] }
 0x3b0   : > { %7330 = vmatprep.subr.bf16.mxu0 %v8594_v23  ;;  %7658 = vmatprep.subr.bf16.mxu1 %v8596_v59  ;;  %v965_v23 = vld [vmem:[%s9423_s17 + $0x1790] sm:$0xff] }
 0x3b1   : > { %v969_v59 = vld [vmem:[%s9423_s17 + $0x17b0] sm:$0xff] }
 0x3b2   : > { %v8657_v35 = vcombine.low %v965_v23, %v969_v59 }
 0x3b3   : > { %7331 = vmatpush1.bf16.msra.mxu0 %v8593_v22  ;;  %7659 = vmatpush1.bf16.msra.mxu1 %v8595_v15  ;;  %v8658_v22 = vcombine.high %v965_v23, %v969_v59  ;;  %v8660_v15 = vcombine.high %v966_v26, %v970_v28 }
 0x3b4   : > { %7332 = vmatprep.subr.bf16.mxu0 %v8602_v32  ;;  %7660 = vmatprep.subr.bf16.mxu1 %v8604_v33  ;;  %v973_v32 = vld [vmem:[%s9423_s17 + $0x17d0] sm:$0xff] }
 0x3b5   : > { %v977_v33 = vld [vmem:[%s9423_s17 + $0x17f0] sm:$0xff] }
 0x3b6   : > { %v8665_v43 = vcombine.low %v973_v32, %v977_v33 }
 0x3b7   : > { %7333 = vmatpush1.bf16.msra.mxu0 %v8601_v38  ;;  %7661 = vmatpush1.bf16.msra.mxu1 %v8603_v31  ;;  %v8666_v38 = vcombine.high %v973_v32, %v977_v33  ;;  %v8668_v31 = vcombine.high %v974_v34, %v978_v57 }
 0x3b8   : > { %7334 = vmatprep.subr.bf16.mxu0 %v8610_v55  ;;  %7662 = vmatprep.subr.bf16.mxu1 %v8612_v40  ;;  %v981_v55 = vld [vmem:[%s9423_s17 + $0x1810] sm:$0xff] }
 0x3b9   : > { %v985_v40 = vld [vmem:[%s9423_s17 + $0x1830] sm:$0xff] }
 0x3ba   : > { %v8673_v52 = vcombine.low %v981_v55, %v985_v40 }
 0x3bb   : > { %7335 = vmatpush1.bf16.msra.mxu0 %v8609_v44  ;;  %7663 = vmatpush1.bf16.msra.mxu1 %v8611_v47  ;;  %v8674_v44 = vcombine.high %v981_v55, %v985_v40  ;;  %v8676_v47 = vcombine.high %v982_v41, %v986_v42 }
 0x3bc   : > { %7336 = vmatprep.subr.bf16.mxu0 %v8618_v48  ;;  %7664 = vmatprep.subr.bf16.mxu1 %v8620_v1  ;;  %v989_v48 = vld [vmem:[%s9423_s17 + $0x1850] sm:$0xff] }
 0x3bd   : > { %v993_v1 = vld [vmem:[%s9423_s17 + $0x1870] sm:$0xff] }
 0x3be   : > { %v8681_v62 = vcombine.low %v989_v48, %v993_v1 }
 0x3bf   : > { %7337 = vmatpush1.bf16.msra.mxu0 %v8617_v36  ;;  %7665 = vmatpush1.bf16.msra.mxu1 %v8619_v19  ;;  %v8682_v36 = vcombine.high %v989_v48, %v993_v1  ;;  %v8684_v19 = vcombine.high %v990_v50, %v994_v51 }
 0x3c0   : > { %7338 = vmatprep.subr.bf16.mxu0 %v8626_v16  ;;  %7666 = vmatprep.subr.bf16.mxu1 %v8628_v56  ;;  %v997_v16 = vld [vmem:[%s9423_s17 + $0x1890] sm:$0xff] }
 0x3c1   : > { %v1001_v56 = vld [vmem:[%s9423_s17 + $0x18b0] sm:$0xff] }
 0x3c3   : > { %7339 = vmatpush1.bf16.msra.mxu0 %v8625_v63  ;;  %7667 = vmatpush1.bf16.msra.mxu1 %v8627_v0  ;;  %v8690_v63 = vcombine.high %v997_v16, %v1001_v56  ;;  %v8692_v0 = vcombine.high %v998_v60, %v1002_v61 }
 0x3c4   : > { %7340 = vmatprep.subr.bf16.mxu0 %v8634_v2  ;;  %7668 = vmatprep.subr.bf16.mxu1 %v8636_v27  ;;  %v1005_v2 = vld [vmem:[%s9423_s17 + $0x18d0] sm:$0xff] }
 0x3c5   : > { %v1009_v27 = vld [vmem:[%s9423_s17 + $0x18f0] sm:$0xff] }
 0x3c6   : > { %v8698_v6 = vcombine.high %v1005_v2, %v1009_v27  ;;  %v8697_v10 = vcombine.low %v1005_v2, %v1009_v27 }
 0x3c7   : > { %7341 = vmatpush1.bf16.msra.mxu0 %v8633_v7  ;;  %7669 = vmatpush1.bf16.msra.mxu1 %v8635_v21  ;;  %v8700_v7 = vcombine.high %v1006_v3, %v1010_v4  ;;  %v1013_v21 = vld [vmem:[%s9423_s17 + $0x1910] sm:$0xff] }
 0x3c8   : > { %7342 = vmatprep.subr.bf16.mxu0 %v8642_v8  ;;  %7670 = vmatprep.subr.bf16.mxu1 %v8644_v24  ;;  %v1017_v8 = vld [vmem:[%s9423_s17 + $0x1930] sm:$0xff]  ;;  %v1014_v24 = vld [vmem:[%s9423_s17 + $0x1918] sm:$0xff] }
 0x3c9   : > { %v8706_v11 = vcombine.high %v1013_v21, %v1017_v8  ;;  %v8708_v13 = vcombine.high %v1014_v24, %v1018_v9  ;;  %v8705_v23 = vcombine.low %v1013_v21, %v1017_v8  ;;  %v8707_v59 = vcombine.low %v1014_v24, %v1018_v9 }
 0x3cb   : > { %7343 = vmatpush1.bf16.msra.mxu0 %v8641_v14  ;;  %7671 = vmatpush1.bf16.msra.mxu1 %v8643_v17  ;;  %v1021_v14 = vld [vmem:[%s9423_s17 + $0x1950] sm:$0xff] }
 0x3cc   : > { %7344 = vmatprep.subr.bf16.mxu0 %v8650_v18  ;;  %7672 = vmatprep.subr.bf16.mxu1 %v8652_v20  ;;  %v1025_v17 = vld [vmem:[%s9423_s17 + $0x1970] sm:$0xff]  ;;  %v1022_v18 = vld [vmem:[%s9423_s17 + $0x1958] sm:$0xff] }
 0x3cd   : > { %v1026_v20 = vld [vmem:[%s9423_s17 + $0x1978] sm:$0xff]  ;;  %v8714_v26 = vcombine.high %v1021_v14, %v1025_v17  ;;  %v8713_v32 = vcombine.low %v1021_v14, %v1025_v17 }
 0x3ce   : > { %v8716_v28 = vcombine.high %v1022_v18, %v1026_v20  ;;  %v8715_v33 = vcombine.low %v1022_v18, %v1026_v20 }
 0x3cf   : > { %7345 = vmatpush1.bf16.msra.mxu0 %v8649_v29  ;;  %7673 = vmatpush1.bf16.msra.mxu1 %v8651_v49  ;;  %v1029_v29 = vld [vmem:[%s9423_s17 + $0x1990] sm:$0xff] }
 0x3d0   : > { %7346 = vmatprep.subr.bf16.mxu0 %v8658_v22  ;;  %7674 = vmatprep.subr.bf16.mxu1 %v8660_v15  ;;  %v1033_v49 = vld [vmem:[%s9423_s17 + $0x19b0] sm:$0xff]  ;;  %v1030_v22 = vld [vmem:[%s9423_s17 + $0x1998] sm:$0xff] }
 0x3d1   : > { %v1034_v15 = vld [vmem:[%s9423_s17 + $0x19b8] sm:$0xff]  ;;  %v8722_v34 = vcombine.high %v1029_v29, %v1033_v49  ;;  %v8721_v55 = vcombine.low %v1029_v29, %v1033_v49 }
 0x3d2   : > { %v8724_v57 = vcombine.high %v1030_v22, %v1034_v15  ;;  %v8723_v40 = vcombine.low %v1030_v22, %v1034_v15 }
 0x3d3   : > { %7347 = vmatpush1.bf16.msra.mxu0 %v8657_v35  ;;  %7675 = vmatpush1.bf16.msra.mxu1 %v8659_v37  ;;  %v1037_v35 = vld [vmem:[%s9423_s17 + $0x19d0] sm:$0xff] }
 0x3d4   : > { %7348 = vmatprep.subr.bf16.mxu0 %v8666_v38  ;;  %7676 = vmatprep.subr.bf16.mxu1 %v8668_v31  ;;  %v1041_v37 = vld [vmem:[%s9423_s17 + $0x19f0] sm:$0xff]  ;;  %v1038_v38 = vld [vmem:[%s9423_s17 + $0x19d8] sm:$0xff] }
 0x3d5   : > { %v1042_v31 = vld [vmem:[%s9423_s17 + $0x19f8] sm:$0xff]  ;;  %v8730_v41 = vcombine.high %v1037_v35, %v1041_v37  ;;  %v8729_v48 = vcombine.low %v1037_v35, %v1041_v37 }
 0x3d6   : > { %v8732_v42 = vcombine.high %v1038_v38, %v1042_v31  ;;  %v8731_v1 = vcombine.low %v1038_v38, %v1042_v31 }
 0x3d7   : > { %7349 = vmatpush1.bf16.msra.mxu0 %v8665_v43  ;;  %7677 = vmatpush1.bf16.msra.mxu1 %v8667_v25  ;;  %v1045_v43 = vld [vmem:[%s9423_s17 + $0x1a10] sm:$0xff] }
 0x3d8   : > { %7359 = vmatprep.subr.bf16.mxu0 %v8674_v44  ;;  %7687 = vmatprep.subr.bf16.mxu1 %v8676_v47  ;;  %v1049_v25 = vld [vmem:[%s9423_s17 + $0x1a30] sm:$0xff]  ;;  %v1046_v44 = vld [vmem:[%s9423_s17 + $0x1a18] sm:$0xff] }
 0x3d9   : > { %v1050_v47 = vld [vmem:[%s9423_s17 + $0x1a38] sm:$0xff]  ;;  %v8738_v50 = vcombine.high %v1045_v43, %v1049_v25 }
 0x3da   : > { %7351 = vmatmul.mubr.bf16.vlgmr.msra.gmra.mrb[4].mxu0 %v9921_v46  ;;  %7679 = vmatmul.mubr.bf16.vlgmr.msra.gmra.mrb[4].mxu1 %v9921_v46  ;;  %v8689_v46 = vcombine.low %v997_v16, %v1001_v56  ;;  %v8740_v51 = vcombine.high %v1046_v44, %v1050_v47  ;;  %v8737_v16 = vcombine.low %v1045_v43, %v1049_v25 }
 0x3db   : > { %7360 = vmatpush1.bf16.msra.mxu0 %v8673_v52  ;;  %7688 = vmatpush1.bf16.msra.mxu1 %v8675_v54  ;;  %v1053_v52 = vld [vmem:[%s9423_s17 + $0x1a50] sm:$0xff]  ;;  %v8739_v56 = vcombine.low %v1046_v44, %v1050_v47 }
 0x3dc   : > { %7361 = vmatprep.subr.bf16.mxu0 %v8682_v36  ;;  %7689 = vmatprep.subr.bf16.mxu1 %v8684_v19  ;;  %v1057_v54 = vld [vmem:[%s9423_s17 + $0x1a70] sm:$0xff]  ;;  %v1054_v36 = vld [vmem:[%s9423_s17 + $0x1a58] sm:$0xff] }
 0x3dd   : > { %7391 = vmatprep.mubr.bf16.mxu0 %v9934_v58  ;;  %7719 = vmatprep.mubr.bf16.mxu1 %v9934_v58  ;;  %v8699_v58 = vcombine.low %v1006_v3, %v1010_v4  ;;  %v1058_v19 = vld [vmem:[%s9423_s17 + $0x1a78] sm:$0xff]  ;;  %v8746_v60 = vcombine.high %v1053_v52, %v1057_v54  ;;  %v8745_v2 = vcombine.low %v1053_v52, %v1057_v54 }
 0x3de   : > { %v8748_v61 = vcombine.high %v1054_v36, %v1058_v19  ;;  %v8747_v27 = vcombine.low %v1054_v36, %v1058_v19 }
 0x3df   : > { %7362 = vmatpush1.bf16.msra.mxu0 %v8681_v62  ;;  %7690 = vmatpush1.bf16.msra.mxu1 %v8683_v12  ;;  %v1061_v62 = vld [vmem:[%s9423_s17 + $0x1a90] sm:$0xff] }
 0x3e0   : > { %7363 = vmatprep.subr.bf16.mxu0 %v8690_v63  ;;  %7691 = vmatprep.subr.bf16.mxu1 %v8692_v0  ;;  %v1065_v12 = vld [vmem:[%s9423_s17 + $0x1ab0] sm:$0xff]  ;;  %v1062_v63 = vld [vmem:[%s9423_s17 + $0x1a98] sm:$0xff] }
 0x3e1   : > { %v1066_v0 = vld [vmem:[%s9423_s17 + $0x1ab8] sm:$0xff]  ;;  %v8754_v3 = vcombine.high %v1061_v62, %v1065_v12  ;;  %v8753_v21 = vcombine.low %v1061_v62, %v1065_v12 }
 0x3e2   : > { %v8756_v4 = vcombine.high %v1062_v63, %v1066_v0  ;;  %v8755_v8 = vcombine.low %v1062_v63, %v1066_v0 }
 0x3e3   : > { %7364 = vmatpush1.bf16.msra.mxu0 %v8689_v46  ;;  %7692 = vmatpush1.bf16.msra.mxu1 %v8691_v5  ;;  %v1069_v46 = vld [vmem:[%s9423_s17 + $0x1ad0] sm:$0xff] }
 0x3e4   : > { %7365 = vmatprep.subr.bf16.mxu0 %v8698_v6  ;;  %7693 = vmatprep.subr.bf16.mxu1 %v8700_v7  ;;  %v1073_v5 = vld [vmem:[%s9423_s17 + $0x1af0] sm:$0xff]  ;;  %v1070_v6 = vld [vmem:[%s9423_s17 + $0x1ad8] sm:$0xff] }
 0x3e5   : > { %v1074_v7 = vld [vmem:[%s9423_s17 + $0x1af8] sm:$0xff]  ;;  %v8762_v24 = vcombine.high %v1069_v46, %v1073_v5  ;;  %v8761_v14 = vcombine.low %v1069_v46, %v1073_v5 }
 0x3e6   : > { %v8764_v9 = vcombine.high %v1070_v6, %v1074_v7  ;;  %v8763_v17 = vcombine.low %v1070_v6, %v1074_v7 }
 0x3e7   : > { %7366 = vmatpush1.bf16.msra.mxu0 %v8697_v10  ;;  %7694 = vmatpush1.bf16.msra.mxu1 %v8699_v58  ;;  %v1077_v10 = vld [vmem:[%s9423_s17 + $0x1b10] sm:$0xff] }
 0x3e8   : > { %7367 = vmatprep.subr.bf16.mxu0 %v8706_v11  ;;  %7695 = vmatprep.subr.bf16.mxu1 %v8708_v13  ;;  %v1081_v58 = vld [vmem:[%s9423_s17 + $0x1b30] sm:$0xff]  ;;  %v1078_v11 = vld [vmem:[%s9423_s17 + $0x1b18] sm:$0xff] }
 0x3e9   : > { %v1082_v13 = vld [vmem:[%s9423_s17 + $0x1b38] sm:$0xff]  ;;  %v8770_v18 = vcombine.high %v1077_v10, %v1081_v58  ;;  %v8769_v29 = vcombine.low %v1077_v10, %v1081_v58 }
 0x3ea   : > { %v8772_v20 = vcombine.high %v1078_v11, %v1082_v13  ;;  %v8771_v49 = vcombine.low %v1078_v11, %v1082_v13  ;;  %v1141_v13 = vld [vmem:[%s9423_s17 + $0x1d10] sm:$0xff] }
 0x3eb   : > { %7368 = vmatpush1.bf16.msra.mxu0 %v8705_v23  ;;  %7696 = vmatpush1.bf16.msra.mxu1 %v8707_v59  ;;  %v1085_v23 = vld [vmem:[%s9423_s17 + $0x1b50] sm:$0xff] }
 0x3ec   : > { %7369 = vmatprep.subr.bf16.mxu0 %v8714_v26  ;;  %7697 = vmatprep.subr.bf16.mxu1 %v8716_v28  ;;  %v1089_v59 = vld [vmem:[%s9423_s17 + $0x1b70] sm:$0xff]  ;;  %v1086_v26 = vld [vmem:[%s9423_s17 + $0x1b58] sm:$0xff] }
 0x3ed   : > { %v1090_v28 = vld [vmem:[%s9423_s17 + $0x1b78] sm:$0xff]  ;;  %v8778_v22 = vcombine.high %v1085_v23, %v1089_v59  ;;  %v8777_v35 = vcombine.low %v1085_v23, %v1089_v59 }
 0x3ee   : > { %v8780_v15 = vcombine.high %v1086_v26, %v1090_v28  ;;  %v8779_v37 = vcombine.low %v1086_v26, %v1090_v28  ;;  %v1149_v26 = vld [vmem:[%s9423_s17 + $0x1d50] sm:$0xff] }
 0x3ef   : > { %7370 = vmatpush1.bf16.msra.mxu0 %v8713_v32  ;;  %7698 = vmatpush1.bf16.msra.mxu1 %v8715_v33  ;;  %v1093_v32 = vld [vmem:[%s9423_s17 + $0x1b90] sm:$0xff] }
 0x3f0   : > { %7371 = vmatprep.subr.bf16.mxu0 %v8722_v34  ;;  %7699 = vmatprep.subr.bf16.mxu1 %v8724_v57  ;;  %v1097_v33 = vld [vmem:[%s9423_s17 + $0x1bb0] sm:$0xff]  ;;  %v1094_v34 = vld [vmem:[%s9423_s17 + $0x1b98] sm:$0xff] }
 0x3f1   : > { %v1098_v57 = vld [vmem:[%s9423_s17 + $0x1bb8] sm:$0xff]  ;;  %v8786_v38 = vcombine.high %v1093_v32, %v1097_v33  ;;  %v8785_v43 = vcombine.low %v1093_v32, %v1097_v33  ;;  %v1153_v28 = vld [vmem:[%s9423_s17 + $0x1d70] sm:$0xff] }
 0x3f2   : > { %v8788_v31 = vcombine.high %v1094_v34, %v1098_v57  ;;  %v8787_v25 = vcombine.low %v1094_v34, %v1098_v57  ;;  %v8842_v32 = vcombine.high %v1149_v26, %v1153_v28  ;;  %v1157_v34 = vld [vmem:[%s9423_s17 + $0x1d90] sm:$0xff] }
 0x3f3   : > { %7372 = vmatpush1.bf16.msra.mxu0 %v8721_v55  ;;  %7700 = vmatpush1.bf16.msra.mxu1 %v8723_v40  ;;  %v1101_v55 = vld [vmem:[%s9423_s17 + $0x1bd0] sm:$0xff] }
 0x3f4   : > { %7373 = vmatprep.subr.bf16.mxu0 %v8730_v41  ;;  %7701 = vmatprep.subr.bf16.mxu1 %v8732_v42  ;;  %v1105_v40 = vld [vmem:[%s9423_s17 + $0x1bf0] sm:$0xff]  ;;  %v1102_v41 = vld [vmem:[%s9423_s17 + $0x1bd8] sm:$0xff] }
 0x3f5   : > { %v1106_v42 = vld [vmem:[%s9423_s17 + $0x1bf8] sm:$0xff]  ;;  %v8794_v44 = vcombine.high %v1101_v55, %v1105_v40  ;;  %v8793_v52 = vcombine.low %v1101_v55, %v1105_v40  ;;  %v1161_v57 = vld [vmem:[%s9423_s17 + $0x1db0] sm:$0xff] }
 0x3f6   : > { %v8796_v47 = vcombine.high %v1102_v41, %v1106_v42  ;;  %v8795_v54 = vcombine.low %v1102_v41, %v1106_v42  ;;  %v8850_v55 = vcombine.high %v1157_v34, %v1161_v57  ;;  %v1165_v41 = vld [vmem:[%s9423_s17 + $0x1dd0] sm:$0xff] }
 0x3f7   : > { %7374 = vmatpush1.bf16.msra.mxu0 %v8729_v48  ;;  %7702 = vmatpush1.bf16.msra.mxu1 %v8731_v1  ;;  %v1109_v48 = vld [vmem:[%s9423_s17 + $0x1c10] sm:$0xff] }
 0x3f8   : > { %7375 = vmatprep.subr.bf16.mxu0 %v8738_v50  ;;  %7703 = vmatprep.subr.bf16.mxu1 %v8740_v51  ;;  %v1113_v1 = vld [vmem:[%s9423_s17 + $0x1c30] sm:$0xff]  ;;  %v1110_v50 = vld [vmem:[%s9423_s17 + $0x1c18] sm:$0xff] }
 0x3f9   : > { %v1114_v51 = vld [vmem:[%s9423_s17 + $0x1c38] sm:$0xff]  ;;  %v8802_v36 = vcombine.high %v1109_v48, %v1113_v1  ;;  %v8801_v62 = vcombine.low %v1109_v48, %v1113_v1  ;;  %v1169_v42 = vld [vmem:[%s9423_s17 + $0x1df0] sm:$0xff] }
 0x3fa   : > { %v8804_v19 = vcombine.high %v1110_v50, %v1114_v51  ;;  %v8803_v12 = vcombine.low %v1110_v50, %v1114_v51  ;;  %v8858_v48 = vcombine.high %v1165_v41, %v1169_v42  ;;  %v1173_v50 = vld [vmem:[%s9423_s17 + $0x1e10] sm:$0xff] }
 0x3fb   : > { %7376 = vmatpush1.bf16.msra.mxu0 %v8737_v16  ;;  %7704 = vmatpush1.bf16.msra.mxu1 %v8739_v56  ;;  %v1117_v16 = vld [vmem:[%s9423_s17 + $0x1c50] sm:$0xff] }
 0x3fc   : > { %7377 = vmatprep.subr.bf16.mxu0 %v8746_v60  ;;  %7705 = vmatprep.subr.bf16.mxu1 %v8748_v61  ;;  %v1121_v56 = vld [vmem:[%s9423_s17 + $0x1c70] sm:$0xff]  ;;  %v1118_v60 = vld [vmem:[%s9423_s17 + $0x1c58] sm:$0xff] }
 0x3fd   : > { %v1122_v61 = vld [vmem:[%s9423_s17 + $0x1c78] sm:$0xff]  ;;  %v8810_v63 = vcombine.high %v1117_v16, %v1121_v56  ;;  %v8809_v46 = vcombine.low %v1117_v16, %v1121_v56  ;;  %v1177_v51 = vld [vmem:[%s9423_s17 + $0x1e30] sm:$0xff] }
 0x3fe   : > { %v8812_v0 = vcombine.high %v1118_v60, %v1122_v61  ;;  %v8811_v5 = vcombine.low %v1118_v60, %v1122_v61  ;;  %v8866_v16 = vcombine.high %v1173_v50, %v1177_v51  ;;  %v1181_v60 = vld [vmem:[%s9423_s17 + $0x1e50] sm:$0xff] }
 0x3ff   : > { %7378 = vmatpush1.bf16.msra.mxu0 %v8745_v2  ;;  %7706 = vmatpush1.bf16.msra.mxu1 %v8747_v27  ;;  %v1125_v2 = vld [vmem:[%s9423_s17 + $0x1c90] sm:$0xff] }
 0x400   : > { %7379 = vmatprep.subr.bf16.mxu0 %v8754_v3  ;;  %7707 = vmatprep.subr.bf16.mxu1 %v8756_v4  ;;  %v1129_v27 = vld [vmem:[%s9423_s17 + $0x1cb0] sm:$0xff]  ;;  %v1126_v3 = vld [vmem:[%s9423_s17 + $0x1c98] sm:$0xff] }
 0x401   : > { %v1130_v4 = vld [vmem:[%s9423_s17 + $0x1cb8] sm:$0xff]  ;;  %v8818_v6 = vcombine.high %v1125_v2, %v1129_v27  ;;  %v1185_v61 = vld [vmem:[%s9423_s17 + $0x1e70] sm:$0xff] }
 0x402   : > { %v8820_v7 = vcombine.high %v1126_v3, %v1130_v4  ;;  %v8819_v10 = vcombine.low %v1126_v3, %v1130_v4  ;;  %v1189_v3 = vld [vmem:[%s9423_s17 + $0x1e90] sm:$0xff] }
 0x403   : > { %7380 = vmatpush1.bf16.msra.mxu0 %v8753_v21  ;;  %7708 = vmatpush1.bf16.msra.mxu1 %v8755_v8  ;;  %v1133_v21 = vld [vmem:[%s9423_s17 + $0x1cd0] sm:$0xff] }
 0x404   : > { %7381 = vmatprep.subr.bf16.mxu0 %v8762_v24  ;;  %7709 = vmatprep.subr.bf16.mxu1 %v8764_v9  ;;  %v1137_v8 = vld [vmem:[%s9423_s17 + $0x1cf0] sm:$0xff]  ;;  %v1134_v24 = vld [vmem:[%s9423_s17 + $0x1cd8] sm:$0xff] }
 0x405   : > { %v1138_v9 = vld [vmem:[%s9423_s17 + $0x1cf8] sm:$0xff]  ;;  %v8826_v58 = vcombine.high %v1133_v21, %v1137_v8  ;;  %v1193_v4 = vld [vmem:[%s9423_s17 + $0x1eb0] sm:$0xff] }
 0x406   : > { %v8828_v11 = vcombine.high %v1134_v24, %v1138_v9 }
 0x407   : > { %7382 = vmatpush1.bf16.msra.mxu0 %v8761_v14  ;;  %7710 = vmatpush1.bf16.msra.mxu1 %v8763_v17  ;;  %v1145_v14 = vld [vmem:[%s9423_s17 + $0x1d30] sm:$0xff]  ;;  %v1142_v17 = vld [vmem:[%s9423_s17 + $0x1d18] sm:$0xff] }
 0x408   : > { %7383 = vmatprep.subr.bf16.mxu0 %v8770_v18  ;;  %7711 = vmatprep.subr.bf16.mxu1 %v8772_v20  ;;  %v1146_v18 = vld [vmem:[%s9423_s17 + $0x1d38] sm:$0xff]  ;;  %v8825_v20 = vcombine.low %v1133_v21, %v1137_v8  ;;  %v8834_v23 = vcombine.high %v1141_v13, %v1145_v14  ;;  %v8882_v21 = vcombine.high %v1189_v3, %v1193_v4 }
 0x409   : > { %v8836_v59 = vcombine.high %v1142_v17, %v1146_v18 }
 0x40b   : > { %7384 = vmatpush1.bf16.msra.mxu0 %v8769_v29  ;;  %7712 = vmatpush1.bf16.msra.mxu1 %v8771_v49  ;;  %v1150_v29 = vld [vmem:[%s9423_s17 + $0x1d58] sm:$0xff] }
 0x40c   : > { %7385 = vmatprep.subr.bf16.mxu0 %v8778_v22  ;;  %7713 = vmatprep.subr.bf16.mxu1 %v8780_v15  ;;  %v1154_v49 = vld [vmem:[%s9423_s17 + $0x1d78] sm:$0xff]  ;;  %v8833_v22 = vcombine.low %v1141_v13, %v1145_v14  ;;  %v8835_v15 = vcombine.low %v1142_v17, %v1146_v18  ;;  %v1205_v17 = vld [vmem:[%s9423_s17 + $0x1f10] sm:$0xff] }
 0x40d   : > { %v8844_v33 = vcombine.high %v1150_v29, %v1154_v49  ;;  %v1209_v18 = vld [vmem:[%s9423_s17 + $0x1f30] sm:$0xff] }
 0x40f   : > { %7386 = vmatpush1.bf16.msra.mxu0 %v8777_v35  ;;  %7714 = vmatpush1.bf16.msra.mxu1 %v8779_v37  ;;  %v1158_v35 = vld [vmem:[%s9423_s17 + $0x1d98] sm:$0xff] }
 0x410   : > { %7387 = vmatprep.subr.bf16.mxu0 %v8786_v38  ;;  %7715 = vmatprep.subr.bf16.mxu1 %v8788_v31  ;;  %v1162_v37 = vld [vmem:[%s9423_s17 + $0x1db8] sm:$0xff]  ;;  %v8841_v38 = vcombine.low %v1149_v26, %v1153_v28  ;;  %v8843_v31 = vcombine.low %v1150_v29, %v1154_v49  ;;  %v8898_v26 = vcombine.high %v1205_v17, %v1209_v18  ;;  %v1213_v29 = vld [vmem:[%s9423_s17 + $0x1f50] sm:$0xff] }
 0x411   : > { %v8852_v40 = vcombine.high %v1158_v35, %v1162_v37  ;;  %v1217_v49 = vld [vmem:[%s9423_s17 + $0x1f70] sm:$0xff] }
 0x413   : > { %7388 = vmatpush1.bf16.msra.mxu0 %v8785_v43  ;;  %7716 = vmatpush1.bf16.msra.mxu1 %v8787_v25  ;;  %v1166_v43 = vld [vmem:[%s9423_s17 + $0x1dd8] sm:$0xff] }
 0x414   : > { %7389 = vmatprep.subr.bf16.mxu0 %v8794_v44  ;;  %7717 = vmatprep.subr.bf16.mxu1 %v8796_v47  ;;  %v1170_v25 = vld [vmem:[%s9423_s17 + $0x1df8] sm:$0xff]  ;;  %v8849_v44 = vcombine.low %v1157_v34, %v1161_v57  ;;  %v8851_v47 = vcombine.low %v1158_v35, %v1162_v37  ;;  %v8906_v34 = vcombine.high %v1213_v29, %v1217_v49  ;;  %v1221_v35 = vld [vmem:[%s9423_s17 + $0x1f90] sm:$0xff] }
 0x415   : > { %v8860_v1 = vcombine.high %v1166_v43, %v1170_v25  ;;  %v1225_v37 = vld [vmem:[%s9423_s17 + $0x1fb0] sm:$0xff] }
 0x417   : > { %7390 = vmatpush1.bf16.msra.mxu0 %v8793_v52  ;;  %7718 = vmatpush1.bf16.msra.mxu1 %v8795_v54  ;;  %v1174_v52 = vld [vmem:[%s9423_s17 + $0x1e18] sm:$0xff] }
 0x418   : > { %7400 = vmatprep.subr.bf16.mxu0 %v8802_v36  ;;  %7728 = vmatprep.subr.bf16.mxu1 %v8804_v19  ;;  %v1178_v54 = vld [vmem:[%s9423_s17 + $0x1e38] sm:$0xff]  ;;  %v8857_v36 = vcombine.low %v1165_v41, %v1169_v42  ;;  %v8859_v19 = vcombine.low %v1166_v43, %v1170_v25  ;;  %v8914_v41 = vcombine.high %v1221_v35, %v1225_v37  ;;  %v1229_v43 = vld [vmem:[%s9423_s17 + $0x1fd0] sm:$0xff] }
 0x419   : > { %v8868_v56 = vcombine.high %v1174_v52, %v1178_v54  ;;  %v1233_v25 = vld [vmem:[%s9423_s17 + $0x1ff0] sm:$0xff] }
 0x41a   : > { %7392 = vmatmul.mubr.bf16.vlgmr.msra.gmra.mrb[4].mxu0 %v10002_v53  ;;  %7720 = vmatmul.mubr.bf16.vlgmr.msra.gmra.mrb[4].mxu1 %v10002_v53  ;;  %v8817_v53 = vcombine.low %v1125_v2, %v1129_v27  ;;  %v8874_v2 = vcombine.high %v1181_v60, %v1185_v61 }
 0x41b   : > { %7401 = vmatpush1.bf16.msra.mxu0 %v8801_v62  ;;  %7729 = vmatpush1.bf16.msra.mxu1 %v8803_v12  ;;  %v1182_v62 = vld [vmem:[%s9423_s17 + $0x1e58] sm:$0xff] }
 0x41c   : > { %7402 = vmatprep.subr.bf16.mxu0 %v8810_v63  ;;  %7730 = vmatprep.subr.bf16.mxu1 %v8812_v0  ;;  %v1186_v12 = vld [vmem:[%s9423_s17 + $0x1e78] sm:$0xff]  ;;  %v8865_v63 = vcombine.low %v1173_v50, %v1177_v51  ;;  %v8867_v0 = vcombine.low %v1174_v52, %v1178_v54  ;;  %v8922_v50 = vcombine.high %v1229_v43, %v1233_v25 }
 0x41d   : > { %7432 = vmatprep.mubr.bf16.mxu0 %v10015_v30  ;;  %7760 = vmatprep.mubr.bf16.mxu1 %v10015_v30  ;;  %v8827_v30 = vcombine.low %v1134_v24, %v1138_v9  ;;  %v8876_v27 = vcombine.high %v1182_v62, %v1186_v12  ;;  %v1197_v24 = vld [vmem:[%s9423_s17 + $0x1ed0] sm:$0xff]  ;;  %v8921_v52 = vcombine.low %v1229_v43, %v1233_v25 }
 0x41e   : > { %v1201_v9 = vld [vmem:[%s9423_s17 + $0x1ef0] sm:$0xff] }
 0x41f   : > { %7403 = vmatpush1.bf16.msra.mxu0 %v8809_v46  ;;  %7731 = vmatpush1.bf16.msra.mxu1 %v8811_v5  ;;  %v1190_v46 = vld [vmem:[%s9423_s17 + $0x1e98] sm:$0xff]  ;;  %v8890_v13 = vcombine.high %v1197_v24, %v1201_v9 }
 0x420   : > { %7404 = vmatprep.subr.bf16.mxu0 %v8818_v6  ;;  %7732 = vmatprep.subr.bf16.mxu1 %v8820_v7  ;;  %v1194_v5 = vld [vmem:[%s9423_s17 + $0x1eb8] sm:$0xff]  ;;  %v8873_v6 = vcombine.low %v1181_v60, %v1185_v61  ;;  %v8875_v7 = vcombine.low %v1182_v62, %v1186_v12  ;;  %v9127_v60 = vld [vmem:[%s1238_s4] sm:$0xff] }
 0x421   : > { %v8884_v8 = vcombine.high %v1190_v46, %v1194_v5 }
 0x423   : > { %7405 = vmatpush1.bf16.msra.mxu0 %v8817_v53  ;;  %7733 = vmatpush1.bf16.msra.mxu1 %v8819_v10  ;;  %v1198_v53 = vld [vmem:[%s9423_s17 + $0x1ed8] sm:$0xff] }
 0x424   : > { %7406 = vmatprep.subr.bf16.mxu0 %v8826_v58  ;;  %7734 = vmatprep.subr.bf16.mxu1 %v8828_v11  ;;  %v1202_v10 = vld [vmem:[%s9423_s17 + $0x1ef8] sm:$0xff]  ;;  %v8881_v58 = vcombine.low %v1189_v3, %v1193_v4  ;;  %v8883_v11 = vcombine.low %v1190_v46, %v1194_v5 }
 0x425   : > { %v8892_v14 = vcombine.high %v1198_v53, %v1202_v10 }
 0x427   : > { %7407 = vmatpush1.bf16.msra.mxu0 %v8825_v20  ;;  %7735 = vmatpush1.bf16.msra.mxu1 %v8827_v30  ;;  %v1206_v20 = vld [vmem:[%s9423_s17 + $0x1f18] sm:$0xff] }
 0x428   : > { %7408 = vmatprep.subr.bf16.mxu0 %v8834_v23  ;;  %7736 = vmatprep.subr.bf16.mxu1 %v8836_v59  ;;  %v1210_v30 = vld [vmem:[%s9423_s17 + $0x1f38] sm:$0xff]  ;;  %v8889_v23 = vcombine.low %v1197_v24, %v1201_v9  ;;  %v8891_v59 = vcombine.low %v1198_v53, %v1202_v10 }
 0x429   : > { %v8900_v28 = vcombine.high %v1206_v20, %v1210_v30 }
 0x42b   : > { %7409 = vmatpush1.bf16.msra.mxu0 %v8833_v22  ;;  %7737 = vmatpush1.bf16.msra.mxu1 %v8835_v15  ;;  %v1214_v22 = vld [vmem:[%s9423_s17 + $0x1f58] sm:$0xff] }
 0x42c   : > { %7410 = vmatprep.subr.bf16.mxu0 %v8842_v32  ;;  %7738 = vmatprep.subr.bf16.mxu1 %v8844_v33  ;;  %v1218_v15 = vld [vmem:[%s9423_s17 + $0x1f78] sm:$0xff]  ;;  %v8897_v32 = vcombine.low %v1205_v17, %v1209_v18  ;;  %v8899_v33 = vcombine.low %v1206_v20, %v1210_v30 }
 0x42d   : > { %v8908_v57 = vcombine.high %v1214_v22, %v1218_v15 }
 0x42f   : > { %7411 = vmatpush1.bf16.msra.mxu0 %v8841_v38  ;;  %7739 = vmatpush1.bf16.msra.mxu1 %v8843_v31  ;;  %v1222_v38 = vld [vmem:[%s9423_s17 + $0x1f98] sm:$0xff] }
 0x430   : > { %7412 = vmatprep.subr.bf16.mxu0 %v8850_v55  ;;  %7740 = vmatprep.subr.bf16.mxu1 %v8852_v40  ;;  %v1226_v31 = vld [vmem:[%s9423_s17 + $0x1fb8] sm:$0xff]  ;;  %v8905_v55 = vcombine.low %v1213_v29, %v1217_v49  ;;  %v8907_v40 = vcombine.low %v1214_v22, %v1218_v15 }
 0x431   : > { %v8916_v42 = vcombine.high %v1222_v38, %v1226_v31 }
 0x433   : > { %7413 = vmatpush1.bf16.msra.mxu0 %v8849_v44  ;;  %7741 = vmatpush1.bf16.msra.mxu1 %v8851_v47  ;;  %v1230_v44 = vld [vmem:[%s9423_s17 + $0x1fd8] sm:$0xff] }
 0x434   : > { %7414 = vmatprep.subr.bf16.mxu0 %v8858_v48  ;;  %7742 = vmatprep.subr.bf16.mxu1 %v8860_v1  ;;  %v1234_v47 = vld [vmem:[%s9423_s17 + $0x1ff8] sm:$0xff]  ;;  %v8913_v48 = vcombine.low %v1221_v35, %v1225_v37  ;;  %v8915_v1 = vcombine.low %v1222_v38, %v1226_v31  ;;  %s7792_s17 = sshll.u32 %s10334_s10, 4  ;;  %s10661_s17 = int_to_ptr.vmem [resolvable:$true] %s7792_s17 }
 0x435   : > { %v8924_v51 = vcombine.high %v1230_v44, %v1234_v47  ;;  %v8923_v54 = vcombine.low %v1230_v44, %v1234_v47  ;;  %s9186_s30 = scalar_lea.vmem %s10661_s17, 1024  ;;  %p9193_p5 = scmp.lt.s32.totalorder %s10661_s17, %s9191_s27 }
 0x436   : > { %p9187_p9 = scmp.ne.s32.totalorder %s10661_s17, %s9186_s30  ;;  %p9194_p0 = scmp.lt.s32.totalorder %s9192_s6, %s9186_s30 }
 0x437   : > { %7415 = vmatpush1.bf16.msra.mxu0 %v8857_v36  ;;  %7743 = vmatpush1.bf16.msra.mxu1 %v8859_v19  ;;  %v1259_v36 = vsub.s32 4, %v10312_v45  ;;  %v1267_v19 = vsub.s32 6, %v10312_v45 }
 0x438   : > { %7416 = vmatprep.subr.bf16.mxu0 %v8866_v16  ;;  %7744 = vmatprep.subr.bf16.mxu1 %v8868_v56  ;;  %v1263_v16 = vsub.s32 5, %v10312_v45  ;;  %v1271_v56 = vsub.s32 7, %v10312_v45  ;;  %p9188_p2 = pnand %p9187_p9, %p10728_p10  ;;  %p9195_p6 = por %p9194_p0, %p9193_p5 }
 0x439   : > { %v1260_v61 = vrot.slane %v9127_v60, %v1259_v36  ;;  %v1268_v62 = vrot.slane %v9127_v60, %v1267_v19 }
 0x43a   : > { %v1264_v12 = vrot.slane %v9127_v60, %v1263_v16  ;;  %p9189_p4 = pneg %p9188_p2 }
 0x43b   : > { %7417 = vmatpush1.bf16.msra.mxu0 %v8865_v63  ;;  %7745 = vmatpush1.bf16.msra.mxu1 %v8867_v0  ;;  %v1272_v63 = vrot.slane %v9127_v60, %v1271_v56 }
 0x43c   : > { %7418 = vmatprep.subr.bf16.mxu0 %v8874_v2  ;;  %7746 = vmatprep.subr.bf16.mxu1 %v8876_v27  ;;  %p9196_p13 = pnand %p9195_p6, %p9189_p4 }
 0x43f   : > { %7419 = vmatpush1.bf16.msra.mxu0 %v8873_v6  ;;  %7747 = vmatpush1.bf16.msra.mxu1 %v8875_v7 }
 0x440   : > { %7420 = vmatprep.subr.bf16.mxu0 %v8882_v21  ;;  %7748 = vmatprep.subr.bf16.mxu1 %v8884_v8 }
 0x443   : > { %7421 = vmatpush1.bf16.msra.mxu0 %v8881_v58  ;;  %7749 = vmatpush1.bf16.msra.mxu1 %v8883_v11 }
 0x444   : > { %7422 = vmatprep.subr.bf16.mxu0 %v8890_v13  ;;  %7750 = vmatprep.subr.bf16.mxu1 %v8892_v14 }
 0x447   : > { %7423 = vmatpush1.bf16.msra.mxu0 %v8889_v23  ;;  %7751 = vmatpush1.bf16.msra.mxu1 %v8891_v59 }
 0x448   : > { %7424 = vmatprep.subr.bf16.mxu0 %v8898_v26  ;;  %7752 = vmatprep.subr.bf16.mxu1 %v8900_v28 }
 0x44b   : > { %7425 = vmatpush1.bf16.msra.mxu0 %v8897_v32  ;;  %7753 = vmatpush1.bf16.msra.mxu1 %v8899_v33 }
 0x44c   : > { %7426 = vmatprep.subr.bf16.mxu0 %v8906_v34  ;;  %7754 = vmatprep.subr.bf16.mxu1 %v8908_v57 }
 0x44f   : > { %7427 = vmatpush1.bf16.msra.mxu0 %v8905_v55  ;;  %7755 = vmatpush1.bf16.msra.mxu1 %v8907_v40 }
 0x450   : > { %7428 = vmatprep.subr.bf16.mxu0 %v8914_v41  ;;  %7756 = vmatprep.subr.bf16.mxu1 %v8916_v42 }
 0x453   : > { %7429 = vmatpush1.bf16.msra.mxu0 %v8913_v48  ;;  %7757 = vmatpush1.bf16.msra.mxu1 %v8915_v1 }
 0x454   : > { %7430 = vmatprep.subr.bf16.mxu0 %v8922_v50  ;;  %7758 = vmatprep.subr.bf16.mxu1 %v8924_v51 }
 0x457   : > { %7431 = vmatpush1.bf16.msra.mxu0 %v8921_v52  ;;  %7759 = vmatpush1.bf16.msra.mxu1 %v8923_v54 }
 0x45a   : > { %7433 = vmatmul.mubr.bf16.vlgmr.msra.gmra.mrb[4].mxu0 %v10083_v39  ;;  %7761 = vmatmul.mubr.bf16.vlgmr.msra.gmra.mrb[4].mxu1 %v10083_v39 }
 0x52d   : > { %v7434_v0 = vpop.f32.mrb[4].mxu0  ;;  %v7762_v2 = vpop.f32.mrb[4].mxu1 }
 0x52e   : > { %v8936_v39 = vadd.f32 %v7434_v0, %v1260_v61  ;;  %v7436_v27 = vpop.f32.mrb[5].mxu0  ;;  %v8938_v45 = vadd.f32 %v7762_v2, %v1268_v62  ;;  %v7764_v4 = vpop.f32.mrb[5].mxu1 }
 0x52f   : > { %v8937_v3 = vadd.f32 %v7436_v27, %v1264_v12  ;;  %v7438_v46 = vpop.f32.mrb[6].mxu0  ;;  %v8939_v5 = vadd.f32 %v7764_v4, %v1272_v63  ;;  %v7766_v6 = vpop.f32.mrb[6].mxu1 }
 0x530   : > { %7773 = vst [vmem:[%s10334_s10 + $0x20] sm:$0xff] %v8936_v39  ;;  %v7439_v7 = vpop.f32.mrb[7].mxu0  ;;  %7775 = vst [vmem:[%s10334_s10 + $0x30] sm:$0xff] %v8938_v45  ;;  %v7767_v21 = vpop.f32.mrb[7].mxu1 }
 0x531   : > { %7774 = vst [vmem:[%s10334_s10 + $0x28] sm:$0xff] %v8937_v3  ;;  %7776 = vst [vmem:[%s10334_s10 + $0x38] sm:$0xff] %v8939_v5 }
 0x532   : > { %9199 = shalt.err (!%p9196_p13)
}
 0x533   : > { %s9200_s11 = scalar_lea.hbm %s10658_s20, 1024  ;;  %s9204_s28 = scalar_lea.hbm %s10709_s3, 2048 }
 0x534   : > { %p9201_p7 = scmp.ne.s32.totalorder %s10658_s20, %s9200_s11  ;;  %p9205_p1 = scmp.lt.u32.totalorder %s10658_s20, %s10709_s3 }
 0x535   : > { %p9206_p11 = scmp.lt.u32.totalorder %s9204_s28, %s9200_s11  ;;  %p9208_p9 = scmp.lt.u32.totalorder %s9200_s11, %s10658_s20 }
 0x536   : > { %p9202_p3 = pnand %p9201_p7, %p10728_p10 }
 0x537   : > { %p9207_p8 = por %p9206_p11, %p9205_p1 }
 0x538   : > { %p9203_p12 = pneg %p9202_p3 }
 0x539   : > { %p9209_p2 = por %p9208_p9, %p9207_p8 }
 0x53b   : > { %p9210_p4 = pnand %p9209_p2, %p9203_p12 }
 0x53d   : > { %9213 = shalt.err (!%p9210_p4)
}
 0x53e   : > { %9058 = dma.vmem_to_hbm [thread:$0]  (%p10728_p10), %s10661_s17, 1024, %s10658_s20, %s7778_s16  }
 0x53f PF: > { %s7804_s26 = sand.u32 1, %s9244_s12   ;;  %p10729_p5 = scmp.ne.s32.totalorder %s10718_s25, 0 }
 0x540   : > { %p10730_p0 = scmp.ge.s32.totalorder %s9256_s15, 2  ;;  %s7805_s4 = scalar_lea.sflag [#allocation4], %s7804_s26 }
 0x542   : > { %p9069_p6 = pnand %p10730_p0, %p10729_p5 }
 0x544   : > { %9239 = dma.done.wait (!%p9069_p6), %s7805_s4, 1024  }
 0x545   : > { %9241 = vsyncadd (!%p9069_p6), %s7805_s4, 4294966272  ;;  %p17_p13 = scmp.ge.s32.totalorder %s9308_s18, 4   ;;  %s10731_s12 = smov %s9248_s13 }
 0x546   : > { %s10732_s13 = smov %s9252_s14  ;;  %s10733_s14 = smov %s9320_s21 }
 0x547   : > { %s10734_s15 = smov %s9308_s18  ;;  %19 = sbr.rel (!%p17_p13) target bundleno = 6 (0x6), region = 82 }
 0x54e   :  { %7810 = vsyncpa [#allocation3], 1 }
 0x54f   :  { %7812 = vsyncpa [#allocation3 + $0x1], 1 }
 0x550   :  { %7813 = vsyncpa [#allocation6], 1 }
 0x551   :  { %7814 = vsyncpa [#allocation4], 1 }
 0x552   :  { %7816 = vsyncpa [#allocation4 + $0x1], 1 }

</bundles_post_ra>
